<compile_context>
chip_gen: v7x
topology: tpu7x:2x2x1
jax: 0.10.0
libtpu: 0.0.40
codegen_flags: <defaults>
</compile_context>

<pallas_src>
import numpy as np

import jax
import jax.numpy as jnp
from jax.experimental import pallas as pl
from jax.experimental.pallas import tpu as pltpu

# ---- FocalModulation hyper-parameters (mirrors the PyTorch __init__ defaults) ----
DIM = 8
FOCAL_WINDOW = 3
FOCAL_LEVEL = 3
FOCAL_FACTOR = 2
KERNEL_SIZES = [FOCAL_FACTOR * k + FOCAL_WINDOW for k in range(FOCAL_LEVEL)]  # [3, 5, 7]
PMAX = max(k // 2 for k in KERNEL_SIZES)                                       # 3


def _erf(x):
    # Abramowitz & Stegun 7.1.26 polynomial erf, |error| <= 1.5e-7 (float32-accurate).
    # TODO(synk): switch to lax.erf if/when Mosaic guarantees an erf_p lowering.
    a1, a2, a3 = 0.254829592, -0.284496736, 1.421413741
    a4, a5, pp = -1.453152027, 1.061405429, 0.3275911
    sgn = jnp.where(x >= 0.0, 1.0, -1.0)
    ax = jnp.abs(x)
    t = 1.0 / (1.0 + pp * ax)
    poly = ((((a5 * t + a4) * t + a3) * t + a2) * t + a1) * t
    return sgn * (1.0 - poly * jnp.exp(-ax * ax))


def _gelu(x):
    # exact (erf-based) GELU, matching torch.nn.GELU() default
    return 0.5 * x * (1.0 + _erf(x * 0.7071067811865476))


# --------------------------------------------------------------------------------
# One-time weight packing (perf item #1: keep this OUT of the per-call hot path).
# --------------------------------------------------------------------------------
def pack_focal_params(p, x_shape):
    """Pack FocalModulation parameters for the lane-dense kernel.  Call ONCE."""
    B, C, H, W = x_shape
    L = FOCAL_LEVEL
    WC = W * C
    BH = B * H

    wf = np.asarray(p["wf"], np.float32)
    bf = np.asarray(p["bf"], np.float32)
    wh = np.asarray(p["wh"], np.float32)
    bh = np.asarray(p["bh"], np.float32)
    wp = np.asarray(p["wp"], np.float32)
    bp = np.asarray(p["bp"], np.float32)

    eye_w = np.eye(W, dtype=np.float32)
    wq, wc_, wg = wf[:, :C], wf[:, C:2 * C], wf[:, 2 * C:]
    bq, bc_, bg = bf[:, :C], bf[:, C:2 * C], bf[:, 2 * C:]
    ones_c = np.ones((1, C), np.float32)

    # fused f 1x1 conv: [ q | ctx | gate_0..gate_L ] as block-diagonal lane-dense maps;
    # gate blocks are rank-1 broadcasts so each gate map is constant over channels.
    wf_big = np.concatenate(
        [np.kron(eye_w, wq), np.kron(eye_w, wc_)]
        + [np.kron(eye_w, wg[:, g:g + 1] @ ones_c) for g in range(L + 1)], axis=1)
    bf_big = np.concatenate(
        [np.tile(bq, (1, W)), np.tile(bc_, (1, W))]
        + [np.full((1, WC), bg[0, g], np.float32) for g in range(L + 1)], axis=1)

    # row-shift matrices for shifts r = -PMAX..PMAX: out_row (b,i) <- in_row (b,i+r),
    # zero outside [0,H) (realises the vertical conv padding and keeps batches apart).
    rshift = np.zeros((2 * PMAX + 1, BH, BH), np.float32)
    eye_b = np.eye(B, dtype=np.float32)
    for s_idx, r in enumerate(range(-PMAX, PMAX + 1)):
        S = np.zeros((H, H), np.float32)
        for i in range(H):
            ip = i + r
            if 0 <= ip < H:
                S[i, ip] = 1.0
        rshift[s_idx] = np.kron(eye_b, S)

    # banded block-diagonal column matrices per level / per row offset di:
    #   Band_di[(j'*C+c), (j*C+c)] = dw[di, j'-j+pd, c]   (zero outside the band)
    # so (row_shifted_ctx @ Band_di) folds all dj taps of row offset di in ONE matmul.
    c_idx = np.arange(C)
    bands = []
    for l, k in enumerate(KERNEL_SIZES):
        pd = k // 2
        dw = np.asarray(p[f"dw{l}"], np.float32)          # (k, k, C)
        bl = np.zeros((k, WC, WC), np.float32)
        for di in range(k):
            for j in range(W):
                for dj in range(k):
                    jp = j + dj - pd
                    if 0 <= jp < W:
                        bl[di, jp * C + c_idx, j * C + c_idx] = dw[di, dj, :]
        bands.append(bl)

    # spatial-mean helpers (global context), all lane-dense matmuls:
    rsum = np.kron(eye_b, np.ones((H, H), np.float32))                       # (BH, BH)
    sumc = np.kron(np.ones((W, 1), np.float32), np.eye(C, dtype=np.float32))  # (WC, C)
    bcastc = np.kron(np.ones((1, W), np.float32), np.eye(C, dtype=np.float32))  # (C, WC)

    # h and proj 1x1 convs, block-diagonalised and concatenated
    w_hp = np.concatenate([np.kron(eye_w, wh), np.kron(eye_w, wp)], axis=1)
    b_hp = np.concatenate([np.tile(bh, (1, W)), np.tile(bp, (1, W))], axis=1)

    packed = dict(wf_big=wf_big, bf_big=bf_big, rshift=rshift,
                  bands0=bands[0], bands1=bands[1], bands2=bands[2],
                  rsum=rsum, sumc=sumc, bcastc=bcastc, w_hp=w_hp, b_hp=b_hp)
    return {k: jnp.asarray(v) for k, v in packed.items()}


# --------------------------------------------------------------------------------
# Jitted apply: NCHW -> (B*H, W*C) packing + ONE Pallas kernel launch.
# --------------------------------------------------------------------------------
def focal_modulation(x_nchw, packed):
    B, C, H, W = x_nchw.shape
    L = FOCAL_LEVEL
    WC = W * C
    BH = B * H
    NF = (2 + L + 1) * WC

    x2d = jnp.transpose(x_nchw, (0, 2, 3, 1)).reshape(BH, WC)  # row=b*H+h, lane=w*C+c

    def kernel(x_ref, wf_ref, bf_ref, rsh_ref, b0_ref, sumc_ref, bcastc_ref,
               rsum_ref, bhp_ref, b1_hbm, b2_hbm, whp_hbm,
               out_ref, f_ref, b1_vmem, b2_vmem, whp_vmem, dma_sem):
        # Late-used weights: start the HBM->VMEM copies now so they overlap the
        # f matmul and the earlier focal levels (perf item #5).
        cp_b1 = pltpu.make_async_copy(b1_hbm, b1_vmem, dma_sem.at[0])
        cp_b2 = pltpu.make_async_copy(b2_hbm, b2_vmem, dma_sem.at[1])
        cp_hp = pltpu.make_async_copy(whp_hbm, whp_vmem, dma_sem.at[2])
        cp_b1.start()
        cp_b2.start()
        cp_hp.start()

        # fused f 1x1 conv: ONE lane-dense MXU matmul -> [ q | ctx | gate maps ]
        f_ref[...] = (jnp.dot(x_ref[...], wf_ref[...],
                              preferred_element_type=jnp.float32) + bf_ref[...])

        def depthwise_level(ctx, k, band_at):
            # out = gelu( sum_di  (RowShift_{di-pd} @ ctx) @ Band_di )
            pd = k // 2
            acc = jnp.zeros((BH, WC), jnp.float32)
            for di in range(k):
                sh = jnp.dot(rsh_ref[PMAX + di - pd], ctx,
                             preferred_element_type=jnp.float32)       # (BH,BH)@(BH,WC)
                acc = acc + jnp.dot(sh, band_at(di),
                                    preferred_element_type=jnp.float32)  # (BH,WC)@(WC,WC)
            return _gelu(acc)

        ctx = f_ref[:, WC:2 * WC]                    # raw ctx (pre-activation)
        ctx_all = jnp.zeros((BH, WC), jnp.float32)

        # level 0: band weights arrived with the regular (prologue) pipeline
        ctx = depthwise_level(ctx, KERNEL_SIZES[0], lambda di: b0_ref[di])
        ctx_all = ctx_all + ctx * f_ref[:, 2 * WC:3 * WC]

        # level 1: wait for its overlapped band DMA, then matmul
        cp_b1.wait()
        ctx = depthwise_level(ctx, KERNEL_SIZES[1], lambda di: b1_vmem[di])
        ctx_all = ctx_all + ctx * f_ref[:, 3 * WC:4 * WC]

        # level 2
        cp_b2.wait()
        ctx = depthwise_level(ctx, KERNEL_SIZES[2], lambda di: b2_vmem[di])
        ctx_all = ctx_all + ctx * f_ref[:, 4 * WC:5 * WC]

        # global context: per-(batch, channel) spatial mean of last-level ctx,
        # computed + re-broadcast with tiny lane-dense matmuls.
        s = jnp.dot(ctx, sumc_ref[...], preferred_element_type=jnp.float32)   # (BH, C)
        s = jnp.dot(rsum_ref[...], s, preferred_element_type=jnp.float32)     # (BH, C)
        s = jnp.dot(s, bcastc_ref[...], preferred_element_type=jnp.float32)   # (BH, WC)
        ctx_global = _gelu(s * (1.0 / (H * W)))
        ctx_all = ctx_all + ctx_global * f_ref[:, 5 * WC:6 * WC]

        # h (modulator) -> q * modulator -> proj, as block-diag lane-dense matmuls
        cp_hp.wait()
        mod = (jnp.dot(ctx_all, whp_vmem[:, 0:WC],
                       preferred_element_type=jnp.float32) + bhp_ref[:, 0:WC])
        xo = f_ref[:, 0:WC] * mod
        out_ref[...] = (jnp.dot(xo, whp_vmem[:, WC:2 * WC],
                                preferred_element_type=jnp.float32)
                        + bhp_ref[:, WC:2 * WC])

    def full(shape):
        nd = len(shape)
        return pl.BlockSpec(shape, lambda i, _nd=nd: (0,) * _nd)

    out2d = pl.pallas_call(
        kernel,
        out_shape=jax.ShapeDtypeStruct((BH, WC), jnp.float32),
        grid=(1,),
        in_specs=[
            full((BH, WC)),                       # x, packed (B*H, W*C)
            full((WC, NF)),                       # fused f weight (block-diagonal)
            full((1, NF)),                        # fused f bias
            full((2 * PMAX + 1, BH, BH)),         # row-shift matrices (shared by levels)
            full((KERNEL_SIZES[0], WC, WC)),      # level-0 banded matrices (needed first)
            full((WC, C)),                        # column-sum matrix
            full((C, WC)),                        # column-broadcast matrix
            full((BH, BH)),                       # per-batch row-sum matrix
            full((1, 2 * WC)),                    # [h | proj] biases
            pl.BlockSpec(memory_space=pl.ANY),    # level-1 bands  (manual overlapped DMA)
            pl.BlockSpec(memory_space=pl.ANY),    # level-2 bands  (manual overlapped DMA)
            pl.BlockSpec(memory_space=pl.ANY),    # [h | proj] weights (manual DMA)
        ],
        out_specs=full((BH, WC)),
        scratch_shapes=[
            pltpu.VMEM((BH, NF), jnp.float32),                       # stashed f output
            pltpu.VMEM((KERNEL_SIZES[1], WC, WC), jnp.float32),      # level-1 bands buf
            pltpu.VMEM((KERNEL_SIZES[2], WC, WC), jnp.float32),      # level-2 bands buf
            pltpu.VMEM((WC, 2 * WC), jnp.float32),                   # [h | proj] buf
            pltpu.SemaphoreType.DMA((3,)),
        ],
        compiler_params=pltpu.CompilerParams(dimension_semantics=("arbitrary",)),
    )(x2d, packed["wf_big"], packed["bf_big"], packed["rshift"], packed["bands0"],
      packed["sumc"], packed["bcastc"], packed["rsum"], packed["b_hp"],
      packed["bands1"], packed["bands2"], packed["w_hp"])

    return jnp.transpose(out2d.reshape(B, H, W, C), (0, 3, 1, 2))   # -> NCHW


def focal_modulation_ref(x, p):
    """Pure-JAX (XLA) reference matching the PyTorch forward, for validation."""
    B, C, H, W = x.shape
    L = FOCAL_LEVEL
    gelu = lambda v: jax.nn.gelu(v, approximate=False)

    def conv1x1(v, w, b):  # w: (Cin, Cout), b: (1, Cout)
        return jnp.einsum("bihw,io->bohw", v, w) + b[0][None, :, None, None]

    t = conv1x1(x, p["wf"], p["bf"])
    q, ctx, gates = t[:, :C], t[:, C:2 * C], t[:, 2 * C:]
    ctx_all = jnp.zeros_like(ctx)
    for l, k in enumerate(KERNEL_SIZES):
        wdw = jnp.transpose(p[f"dw{l}"], (2, 0, 1))[:, None]      # (C, 1, k, k)
        ctx = jax.lax.conv_general_dilated(
            ctx, wdw, window_strides=(1, 1), padding=[(k // 2, k // 2)] * 2,
            feature_group_count=C, dimension_numbers=("NCHW", "OIHW", "NCHW"))
        ctx = gelu(ctx)
        ctx_all = ctx_all + ctx * gates[:, l:l + 1]
    ctx_global = gelu(ctx.mean(axis=(2, 3), keepdims=True))
    ctx_all = ctx_all + ctx_global * gates[:, L:]
    mod = conv1x1(ctx_all, p["wh"], p["bh"])
    return conv1x1(q * mod, p["wp"], p["bp"])


def init_params(key, C):
    L = FOCAL_LEVEL
    NF = 2 * C + L + 1
    ks = jax.random.split(key, 16)

    def rnd(k, shape, scale):
        return scale * jax.random.normal(k, shape, jnp.float32)

    p = {
        "wf": rnd(ks[0], (C, NF), 0.2), "bf": rnd(ks[1], (1, NF), 0.1),
        "wh": rnd(ks[2], (C, C), 0.2),  "bh": rnd(ks[3], (1, C), 0.1),
        "wp": rnd(ks[4], (C, C), 0.2),  "bp": rnd(ks[5], (1, C), 0.1),
    }
    for l, k in enumerate(KERNEL_SIZES):
        p[f"dw{l}"] = rnd(ks[6 + l], (k, k, C), 1.0 / (k * k))
    return p


if __name__ == "__main__":
    key = jax.random.PRNGKey(0)
    kx, kp = jax.random.split(key)
    B, C, H, W = 2, DIM, 16, 16          # W*C = 128 -> exactly one lane group
    x = jax.random.normal(kx, (B, C, H, W), jnp.float32)
    params = init_params(kp, C)

    # Weight packing happens ONCE here (perf item #1); the jitted apply is lean.
    packed = pack_focal_params(params, (B, C, H, W))
    apply_fn = jax.jit(focal_modulation)

    out = apply_fn(x, packed)
    out = jax.block_until_ready(out)
    assert out.shape == (B, C, H, W)

    ref = focal_modulation_ref(x, params)
    err = float(jnp.max(jnp.abs(out - ref)))
    assert err < 5e-3, f"max abs error vs reference: {err}"
    print("KERNEL_OK")
</pallas_src>

<mosaic_0001>
module attributes {stable_mosaic.version = 11 : i64} {
  func.func @kernel(%arg0: i32, %arg1: memref<32x128xf32, #tpu.memory_space<vmem>>, %arg2: memref<128x768xf32, #tpu.memory_space<vmem>>, %arg3: memref<1x768xf32, #tpu.memory_space<vmem>>, %arg4: memref<7x32x32xf32, #tpu.memory_space<vmem>>, %arg5: memref<3x128x128xf32, #tpu.memory_space<vmem>>, %arg6: memref<128x8xf32, #tpu.memory_space<vmem>>, %arg7: memref<8x128xf32, #tpu.memory_space<vmem>>, %arg8: memref<32x32xf32, #tpu.memory_space<vmem>>, %arg9: memref<1x256xf32, #tpu.memory_space<vmem>>, %arg10: memref<5x128x128xf32, #tpu.memory_space<any>>, %arg11: memref<7x128x128xf32, #tpu.memory_space<any>>, %arg12: memref<128x256xf32, #tpu.memory_space<any>>, %arg13: memref<32x128xf32, #tpu.memory_space<vmem>>, %arg14: memref<32x768xf32, #tpu.memory_space<vmem>>, %arg15: memref<5x128x128xf32, #tpu.memory_space<vmem>>, %arg16: memref<7x128x128xf32, #tpu.memory_space<vmem>>, %arg17: memref<128x256xf32, #tpu.memory_space<vmem>>, %arg18: memref<3x!tpu.dma_semaphore, #tpu.memory_space<semaphore_mem>>) attributes {dimension_semantics = [#tpu.dimension_semantics<arbitrary>], iteration_bounds = array<i64: 1>, scalar_prefetch = 0 : i64, scratch_operands = 5 : i64, tpu.core_type = #tpu.core_type<tc>, window_params = [{pipeline_mode = #tpu.pipeline_mode<synchronous>, transform_indices = @transform_0, window_bounds = array<i64: 32, 128>}, {pipeline_mode = #tpu.pipeline_mode<synchronous>, transform_indices = @transform_1, window_bounds = array<i64: 128, 768>}, {pipeline_mode = #tpu.pipeline_mode<synchronous>, transform_indices = @transform_2, window_bounds = array<i64: 1, 768>}, {pipeline_mode = #tpu.pipeline_mode<synchronous>, transform_indices = @transform_3, window_bounds = array<i64: 7, 32, 32>}, {pipeline_mode = #tpu.pipeline_mode<synchronous>, transform_indices = @transform_4, window_bounds = array<i64: 3, 128, 128>}, {pipeline_mode = #tpu.pipeline_mode<synchronous>, transform_indices = @transform_5, window_bounds = array<i64: 128, 8>}, {pipeline_mode = #tpu.pipeline_mode<synchronous>, transform_indices = @transform_6, window_bounds = array<i64: 8, 128>}, {pipeline_mode = #tpu.pipeline_mode<synchronous>, transform_indices = @transform_7, window_bounds = array<i64: 32, 32>}, {pipeline_mode = #tpu.pipeline_mode<synchronous>, transform_indices = @transform_8, window_bounds = array<i64: 1, 256>}, {}, {}, {}, {pipeline_mode = #tpu.pipeline_mode<synchronous>, transform_indices = @transform_12, window_bounds = array<i64: 32, 128>}]} {
    %c0_i32 = arith.constant 0 : i32
    %0 = tpu.memref_slice %arg18[%c0_i32] : memref<3x!tpu.dma_semaphore, #tpu.memory_space<semaphore_mem>> -> memref<1x!tpu.dma_semaphore, #tpu.memory_space<semaphore_mem>>
    %1 = tpu.memref_squeeze %0 : memref<1x!tpu.dma_semaphore, #tpu.memory_space<semaphore_mem>> -> memref<!tpu.dma_semaphore, #tpu.memory_space<semaphore_mem>>
    tpu.enqueue_dma source(%arg10 : memref<5x128x128xf32, #tpu.memory_space<any>>) target(%arg15 : memref<5x128x128xf32, #tpu.memory_space<vmem>>) target_semaphore(%1 : memref<!tpu.dma_semaphore, #tpu.memory_space<semaphore_mem>>)
    %c1_i32 = arith.constant 1 : i32
    %2 = tpu.memref_slice %arg18[%c1_i32] : memref<3x!tpu.dma_semaphore, #tpu.memory_space<semaphore_mem>> -> memref<1x!tpu.dma_semaphore, #tpu.memory_space<semaphore_mem>>
    %3 = tpu.memref_squeeze %2 : memref<1x!tpu.dma_semaphore, #tpu.memory_space<semaphore_mem>> -> memref<!tpu.dma_semaphore, #tpu.memory_space<semaphore_mem>>
    tpu.enqueue_dma source(%arg11 : memref<7x128x128xf32, #tpu.memory_space<any>>) target(%arg16 : memref<7x128x128xf32, #tpu.memory_space<vmem>>) target_semaphore(%3 : memref<!tpu.dma_semaphore, #tpu.memory_space<semaphore_mem>>)
    %c2_i32 = arith.constant 2 : i32
    %4 = tpu.memref_slice %arg18[%c2_i32] : memref<3x!tpu.dma_semaphore, #tpu.memory_space<semaphore_mem>> -> memref<1x!tpu.dma_semaphore, #tpu.memory_space<semaphore_mem>>
    %5 = tpu.memref_squeeze %4 : memref<1x!tpu.dma_semaphore, #tpu.memory_space<semaphore_mem>> -> memref<!tpu.dma_semaphore, #tpu.memory_space<semaphore_mem>>
    tpu.enqueue_dma source(%arg12 : memref<128x256xf32, #tpu.memory_space<any>>) target(%arg17 : memref<128x256xf32, #tpu.memory_space<vmem>>) target_semaphore(%5 : memref<!tpu.dma_semaphore, #tpu.memory_space<semaphore_mem>>)
    %c0 = arith.constant 0 : index
    %c0_0 = arith.constant 0 : index
    %6 = vector.load %arg1[%c0, %c0_0] : memref<32x128xf32, #tpu.memory_space<vmem>>, vector<32x128xf32>
    %c0_1 = arith.constant 0 : index
    %c0_2 = arith.constant 0 : index
    %7 = vector.load %arg2[%c0_1, %c0_2] : memref<128x768xf32, #tpu.memory_space<vmem>>, vector<128x768xf32>
    %cst = arith.constant dense<0.000000e+00> : vector<32x768xf32>
    %8 = tpu.matmul %6, %7, %cst {dimension_numbers = #tpu.dot_dimension_numbers<[1], [0], [0], [1], [0, 0, 1, 1], [], []>} : vector<32x128xf32>, vector<128x768xf32>, vector<32x768xf32> -> vector<32x768xf32>
    %c0_3 = arith.constant 0 : index
    %c0_4 = arith.constant 0 : index
    %9 = vector.load %arg3[%c0_3, %c0_4] : memref<1x768xf32, #tpu.memory_space<vmem>>, vector<1x768xf32>
    %10 = vector.broadcast %9 : vector<1x768xf32> to vector<32x768xf32>
    %11 = arith.addf %8, %10 : vector<32x768xf32>
    %c0_5 = arith.constant 0 : index
    %c0_6 = arith.constant 0 : index
    %12 = vector.load %arg14[%c0_5, %c0_6] : memref<32x768xf32, #tpu.memory_space<vmem>>, vector<32x768xf32>
    tpu.vector_store %arg14[%c0_5, %c0_6], %11 {strides = array<i32>} : memref<32x768xf32, #tpu.memory_space<vmem>>, vector<32x768xf32>,
    %c0_7 = arith.constant 0 : index
    %c128 = arith.constant 128 : index
    %13 = vector.load %arg14[%c0_7, %c128] : memref<32x768xf32, #tpu.memory_space<vmem>>, vector<32x128xf32>
    %cst_8 = arith.constant 0.000000e+00 : f32
    %14 = vector.broadcast %cst_8 : f32 to vector<32x128xf32>
    %cst_9 = arith.constant 0.000000e+00 : f32
    %15 = vector.broadcast %cst_9 : f32 to vector<32x128xf32>
    %c2 = arith.constant 2 : index
    %c0_10 = arith.constant 0 : index
    %c0_11 = arith.constant 0 : index
    %16 = vector.load %arg4[%c2, %c0_10, %c0_11] : memref<7x32x32xf32, #tpu.memory_space<vmem>>, vector<1x32x32xf32>
    %17 = vector.shape_cast %16 : vector<1x32x32xf32> to vector<32x32xf32>
    %cst_12 = arith.constant dense<0.000000e+00> : vector<32x128xf32>
    %18 = tpu.matmul %17, %13, %cst_12 {dimension_numbers = #tpu.dot_dimension_numbers<[1], [0], [0], [1], [0, 0, 1, 1], [], []>} : vector<32x32xf32>, vector<32x128xf32>, vector<32x128xf32> -> vector<32x128xf32>
    %c0_13 = arith.constant 0 : index
    %c0_14 = arith.constant 0 : index
    %c0_15 = arith.constant 0 : index
    %19 = vector.load %arg5[%c0_13, %c0_14, %c0_15] : memref<3x128x128xf32, #tpu.memory_space<vmem>>, vector<1x128x128xf32>
    %20 = vector.shape_cast %19 : vector<1x128x128xf32> to vector<128x128xf32>
    %cst_16 = arith.constant dense<0.000000e+00> : vector<32x128xf32>
    %21 = tpu.matmul %18, %20, %cst_16 {dimension_numbers = #tpu.dot_dimension_numbers<[1], [0], [0], [1], [0, 0, 1, 1], [], []>} : vector<32x128xf32>, vector<128x128xf32>, vector<32x128xf32> -> vector<32x128xf32>
    %22 = arith.addf %15, %21 : vector<32x128xf32>
    %c3 = arith.constant 3 : index
    %c0_17 = arith.constant 0 : index
    %c0_18 = arith.constant 0 : index
    %23 = vector.load %arg4[%c3, %c0_17, %c0_18] : memref<7x32x32xf32, #tpu.memory_space<vmem>>, vector<1x32x32xf32>
    %24 = vector.shape_cast %23 : vector<1x32x32xf32> to vector<32x32xf32>
    %cst_19 = arith.constant dense<0.000000e+00> : vector<32x128xf32>
    %25 = tpu.matmul %24, %13, %cst_19 {dimension_numbers = #tpu.dot_dimension_numbers<[1], [0], [0], [1], [0, 0, 1, 1], [], []>} : vector<32x32xf32>, vector<32x128xf32>, vector<32x128xf32> -> vector<32x128xf32>
    %c1 = arith.constant 1 : index
    %c0_20 = arith.constant 0 : index
    %c0_21 = arith.constant 0 : index
    %26 = vector.load %arg5[%c1, %c0_20, %c0_21] : memref<3x128x128xf32, #tpu.memory_space<vmem>>, vector<1x128x128xf32>
    %27 = vector.shape_cast %26 : vector<1x128x128xf32> to vector<128x128xf32>
    %cst_22 = arith.constant dense<0.000000e+00> : vector<32x128xf32>
    %28 = tpu.matmul %25, %27, %cst_22 {dimension_numbers = #tpu.dot_dimension_numbers<[1], [0], [0], [1], [0, 0, 1, 1], [], []>} : vector<32x128xf32>, vector<128x128xf32>, vector<32x128xf32> -> vector<32x128xf32>
    %29 = arith.addf %22, %28 : vector<32x128xf32>
    %c4 = arith.constant 4 : index
    %c0_23 = arith.constant 0 : index
    %c0_24 = arith.constant 0 : index
    %30 = vector.load %arg4[%c4, %c0_23, %c0_24] : memref<7x32x32xf32, #tpu.memory_space<vmem>>, vector<1x32x32xf32>
    %31 = vector.shape_cast %30 : vector<1x32x32xf32> to vector<32x32xf32>
    %cst_25 = arith.constant dense<0.000000e+00> : vector<32x128xf32>
    %32 = tpu.matmul %31, %13, %cst_25 {dimension_numbers = #tpu.dot_dimension_numbers<[1], [0], [0], [1], [0, 0, 1, 1], [], []>} : vector<32x32xf32>, vector<32x128xf32>, vector<32x128xf32> -> vector<32x128xf32>
    %c2_26 = arith.constant 2 : index
    %c0_27 = arith.constant 0 : index
    %c0_28 = arith.constant 0 : index
    %33 = vector.load %arg5[%c2_26, %c0_27, %c0_28] : memref<3x128x128xf32, #tpu.memory_space<vmem>>, vector<1x128x128xf32>
    %34 = vector.shape_cast %33 : vector<1x128x128xf32> to vector<128x128xf32>
    %cst_29 = arith.constant dense<0.000000e+00> : vector<32x128xf32>
    %35 = tpu.matmul %32, %34, %cst_29 {dimension_numbers = #tpu.dot_dimension_numbers<[1], [0], [0], [1], [0, 0, 1, 1], [], []>} : vector<32x128xf32>, vector<128x128xf32>, vector<32x128xf32> -> vector<32x128xf32>
    %36 = arith.addf %29, %35 : vector<32x128xf32>
    %cst_30 = arith.constant 5.000000e-01 : f32
    %37 = vector.broadcast %cst_30 : f32 to vector<32x128xf32>
    %38 = arith.mulf %37, %36 : vector<32x128xf32>
    %cst_31 = arith.constant 0.707106769 : f32
    %39 = vector.broadcast %cst_31 : f32 to vector<32x128xf32>
    %40 = arith.mulf %36, %39 : vector<32x128xf32>
    %cst_32 = arith.constant 0.000000e+00 : f32
    %41 = vector.broadcast %cst_32 : f32 to vector<32x128xf32>
    %42 = arith.cmpf oge, %40, %41 : vector<32x128xf32>
    %cst_33 = arith.constant 1.000000e+00 : f32
    %cst_34 = arith.constant -1.000000e+00 : f32
    %43 = vector.broadcast %cst_33 : f32 to vector<32x128xf32>
    %44 = vector.broadcast %cst_34 : f32 to vector<32x128xf32>
    %45 = arith.select %42, %43, %44 : vector<32x128xi1>, vector<32x128xf32>
    %46 = math.absf %40 : vector<32x128xf32>
    %cst_35 = arith.constant 0.327591091 : f32
    %47 = vector.broadcast %cst_35 : f32 to vector<32x128xf32>
    %48 = arith.mulf %47, %46 : vector<32x128xf32>
    %cst_36 = arith.constant 1.000000e+00 : f32
    %49 = vector.broadcast %cst_36 : f32 to vector<32x128xf32>
    %50 = arith.addf %49, %48 : vector<32x128xf32>
    %cst_37 = arith.constant 1.000000e+00 : f32
    %51 = vector.broadcast %cst_37 : f32 to vector<32x128xf32>
    %52 = arith.divf %51, %50 : vector<32x128xf32>
    %cst_38 = arith.constant 1.06140542 : f32
    %53 = vector.broadcast %cst_38 : f32 to vector<32x128xf32>
    %54 = arith.mulf %53, %52 : vector<32x128xf32>
    %cst_39 = arith.constant -1.45315206 : f32
    %55 = vector.broadcast %cst_39 : f32 to vector<32x128xf32>
    %56 = arith.addf %54, %55 : vector<32x128xf32>
    %57 = arith.mulf %56, %52 : vector<32x128xf32>
    %cst_40 = arith.constant 1.42141378 : f32
    %58 = vector.broadcast %cst_40 : f32 to vector<32x128xf32>
    %59 = arith.addf %57, %58 : vector<32x128xf32>
    %60 = arith.mulf %59, %52 : vector<32x128xf32>
    %cst_41 = arith.constant -0.284496725 : f32
    %61 = vector.broadcast %cst_41 : f32 to vector<32x128xf32>
    %62 = arith.addf %60, %61 : vector<32x128xf32>
    %63 = arith.mulf %62, %52 : vector<32x128xf32>
    %cst_42 = arith.constant 0.254829586 : f32
    %64 = vector.broadcast %cst_42 : f32 to vector<32x128xf32>
    %65 = arith.addf %63, %64 : vector<32x128xf32>
    %66 = arith.mulf %65, %52 : vector<32x128xf32>
    %cst_43 = arith.constant 0.000000e+00 : f32
    %67 = vector.broadcast %cst_43 : f32 to vector<32x128xf32>
    %68 = arith.subf %67, %46 : vector<32x128xf32>
    %69 = arith.mulf %68, %46 : vector<32x128xf32>
    %70 = math.exp %69 : vector<32x128xf32>
    %71 = arith.mulf %66, %70 : vector<32x128xf32>
    %cst_44 = arith.constant 1.000000e+00 : f32
    %72 = vector.broadcast %cst_44 : f32 to vector<32x128xf32>
    %73 = arith.subf %72, %71 : vector<32x128xf32>
    %74 = arith.mulf %45, %73 : vector<32x128xf32>
    %cst_45 = arith.constant 1.000000e+00 : f32
    %75 = vector.broadcast %cst_45 : f32 to vector<32x128xf32>
    %76 = arith.addf %75, %74 : vector<32x128xf32>
    %77 = arith.mulf %38, %76 : vector<32x128xf32>
    %c0_46 = arith.constant 0 : index
    %c256 = arith.constant 256 : index
    %78 = vector.load %arg14[%c0_46, %c256] : memref<32x768xf32, #tpu.memory_space<vmem>>, vector<32x128xf32>
    %79 = arith.mulf %77, %78 : vector<32x128xf32>
    %80 = arith.addf %14, %79 : vector<32x128xf32>
    %c0_i32_47 = arith.constant 0 : i32
    %81 = tpu.memref_slice %arg18[%c0_i32_47] : memref<3x!tpu.dma_semaphore, #tpu.memory_space<semaphore_mem>> -> memref<1x!tpu.dma_semaphore, #tpu.memory_space<semaphore_mem>>
    %82 = tpu.memref_squeeze %81 : memref<1x!tpu.dma_semaphore, #tpu.memory_space<semaphore_mem>> -> memref<!tpu.dma_semaphore, #tpu.memory_space<semaphore_mem>>
    tpu.wait_dma2 semaphore(%82 : memref<!tpu.dma_semaphore, #tpu.memory_space<semaphore_mem>>) src(%arg10 : memref<5x128x128xf32, #tpu.memory_space<any>>) dst(%arg15 : memref<5x128x128xf32, #tpu.memory_space<vmem>>)
    %cst_48 = arith.constant 0.000000e+00 : f32
    %83 = vector.broadcast %cst_48 : f32 to vector<32x128xf32>
    %c1_49 = arith.constant 1 : index
    %c0_50 = arith.constant 0 : index
    %c0_51 = arith.constant 0 : index
    %84 = vector.load %arg4[%c1_49, %c0_50, %c0_51] : memref<7x32x32xf32, #tpu.memory_space<vmem>>, vector<1x32x32xf32>
    %85 = vector.shape_cast %84 : vector<1x32x32xf32> to vector<32x32xf32>
    %cst_52 = arith.constant dense<0.000000e+00> : vector<32x128xf32>
    %86 = tpu.matmul %85, %77, %cst_52 {dimension_numbers = #tpu.dot_dimension_numbers<[1], [0], [0], [1], [0, 0, 1, 1], [], []>} : vector<32x32xf32>, vector<32x128xf32>, vector<32x128xf32> -> vector<32x128xf32>
    %c0_53 = arith.constant 0 : index
    %c0_54 = arith.constant 0 : index
    %c0_55 = arith.constant 0 : index
    %87 = vector.load %arg15[%c0_53, %c0_54, %c0_55] : memref<5x128x128xf32, #tpu.memory_space<vmem>>, vector<1x128x128xf32>
    %88 = vector.shape_cast %87 : vector<1x128x128xf32> to vector<128x128xf32>
    %cst_56 = arith.constant dense<0.000000e+00> : vector<32x128xf32>
    %89 = tpu.matmul %86, %88, %cst_56 {dimension_numbers = #tpu.dot_dimension_numbers<[1], [0], [0], [1], [0, 0, 1, 1], [], []>} : vector<32x128xf32>, vector<128x128xf32>, vector<32x128xf32> -> vector<32x128xf32>
    %90 = arith.addf %83, %89 : vector<32x128xf32>
    %c2_57 = arith.constant 2 : index
    %c0_58 = arith.constant 0 : index
    %c0_59 = arith.constant 0 : index
    %91 = vector.load %arg4[%c2_57, %c0_58, %c0_59] : memref<7x32x32xf32, #tpu.memory_space<vmem>>, vector<1x32x32xf32>
    %92 = vector.shape_cast %91 : vector<1x32x32xf32> to vector<32x32xf32>
    %cst_60 = arith.constant dense<0.000000e+00> : vector<32x128xf32>
    %93 = tpu.matmul %92, %77, %cst_60 {dimension_numbers = #tpu.dot_dimension_numbers<[1], [0], [0], [1], [0, 0, 1, 1], [], []>} : vector<32x32xf32>, vector<32x128xf32>, vector<32x128xf32> -> vector<32x128xf32>
    %c1_61 = arith.constant 1 : index
    %c0_62 = arith.constant 0 : index
    %c0_63 = arith.constant 0 : index
    %94 = vector.load %arg15[%c1_61, %c0_62, %c0_63] : memref<5x128x128xf32, #tpu.memory_space<vmem>>, vector<1x128x128xf32>
    %95 = vector.shape_cast %94 : vector<1x128x128xf32> to vector<128x128xf32>
    %cst_64 = arith.constant dense<0.000000e+00> : vector<32x128xf32>
    %96 = tpu.matmul %93, %95, %cst_64 {dimension_numbers = #tpu.dot_dimension_numbers<[1], [0], [0], [1], [0, 0, 1, 1], [], []>} : vector<32x128xf32>, vector<128x128xf32>, vector<32x128xf32> -> vector<32x128xf32>
    %97 = arith.addf %90, %96 : vector<32x128xf32>
    %c3_65 = arith.constant 3 : index
    %c0_66 = arith.constant 0 : index
    %c0_67 = arith.constant 0 : index
    %98 = vector.load %arg4[%c3_65, %c0_66, %c0_67] : memref<7x32x32xf32, #tpu.memory_space<vmem>>, vector<1x32x32xf32>
    %99 = vector.shape_cast %98 : vector<1x32x32xf32> to vector<32x32xf32>
    %cst_68 = arith.constant dense<0.000000e+00> : vector<32x128xf32>
    %100 = tpu.matmul %99, %77, %cst_68 {dimension_numbers = #tpu.dot_dimension_numbers<[1], [0], [0], [1], [0, 0, 1, 1], [], []>} : vector<32x32xf32>, vector<32x128xf32>, vector<32x128xf32> -> vector<32x128xf32>
    %c2_69 = arith.constant 2 : index
    %c0_70 = arith.constant 0 : index
    %c0_71 = arith.constant 0 : index
    %101 = vector.load %arg15[%c2_69, %c0_70, %c0_71] : memref<5x128x128xf32, #tpu.memory_space<vmem>>, vector<1x128x128xf32>
    %102 = vector.shape_cast %101 : vector<1x128x128xf32> to vector<128x128xf32>
    %cst_72 = arith.constant dense<0.000000e+00> : vector<32x128xf32>
    %103 = tpu.matmul %100, %102, %cst_72 {dimension_numbers = #tpu.dot_dimension_numbers<[1], [0], [0], [1], [0, 0, 1, 1], [], []>} : vector<32x128xf32>, vector<128x128xf32>, vector<32x128xf32> -> vector<32x128xf32>
    %104 = arith.addf %97, %103 : vector<32x128xf32>
    %c4_73 = arith.constant 4 : index
    %c0_74 = arith.constant 0 : index
    %c0_75 = arith.constant 0 : index
    %105 = vector.load %arg4[%c4_73, %c0_74, %c0_75] : memref<7x32x32xf32, #tpu.memory_space<vmem>>, vector<1x32x32xf32>
    %106 = vector.shape_cast %105 : vector<1x32x32xf32> to vector<32x32xf32>
    %cst_76 = arith.constant dense<0.000000e+00> : vector<32x128xf32>
    %107 = tpu.matmul %106, %77, %cst_76 {dimension_numbers = #tpu.dot_dimension_numbers<[1], [0], [0], [1], [0, 0, 1, 1], [], []>} : vector<32x32xf32>, vector<32x128xf32>, vector<32x128xf32> -> vector<32x128xf32>
    %c3_77 = arith.constant 3 : index
    %c0_78 = arith.constant 0 : index
    %c0_79 = arith.constant 0 : index
    %108 = vector.load %arg15[%c3_77, %c0_78, %c0_79] : memref<5x128x128xf32, #tpu.memory_space<vmem>>, vector<1x128x128xf32>
    %109 = vector.shape_cast %108 : vector<1x128x128xf32> to vector<128x128xf32>
    %cst_80 = arith.constant dense<0.000000e+00> : vector<32x128xf32>
    %110 = tpu.matmul %107, %109, %cst_80 {dimension_numbers = #tpu.dot_dimension_numbers<[1], [0], [0], [1], [0, 0, 1, 1], [], []>} : vector<32x128xf32>, vector<128x128xf32>, vector<32x128xf32> -> vector<32x128xf32>
    %111 = arith.addf %104, %110 : vector<32x128xf32>
    %c5 = arith.constant 5 : index
    %c0_81 = arith.constant 0 : index
    %c0_82 = arith.constant 0 : index
    %112 = vector.load %arg4[%c5, %c0_81, %c0_82] : memref<7x32x32xf32, #tpu.memory_space<vmem>>, vector<1x32x32xf32>
    %113 = vector.shape_cast %112 : vector<1x32x32xf32> to vector<32x32xf32>
    %cst_83 = arith.constant dense<0.000000e+00> : vector<32x128xf32>
    %114 = tpu.matmul %113, %77, %cst_83 {dimension_numbers = #tpu.dot_dimension_numbers<[1], [0], [0], [1], [0, 0, 1, 1], [], []>} : vector<32x32xf32>, vector<32x128xf32>, vector<32x128xf32> -> vector<32x128xf32>
    %c4_84 = arith.constant 4 : index
    %c0_85 = arith.constant 0 : index
    %c0_86 = arith.constant 0 : index
    %115 = vector.load %arg15[%c4_84, %c0_85, %c0_86] : memref<5x128x128xf32, #tpu.memory_space<vmem>>, vector<1x128x128xf32>
    %116 = vector.shape_cast %115 : vector<1x128x128xf32> to vector<128x128xf32>
    %cst_87 = arith.constant dense<0.000000e+00> : vector<32x128xf32>
    %117 = tpu.matmul %114, %116, %cst_87 {dimension_numbers = #tpu.dot_dimension_numbers<[1], [0], [0], [1], [0, 0, 1, 1], [], []>} : vector<32x128xf32>, vector<128x128xf32>, vector<32x128xf32> -> vector<32x128xf32>
    %118 = arith.addf %111, %117 : vector<32x128xf32>
    %cst_88 = arith.constant 5.000000e-01 : f32
    %119 = vector.broadcast %cst_88 : f32 to vector<32x128xf32>
    %120 = arith.mulf %119, %118 : vector<32x128xf32>
    %cst_89 = arith.constant 0.707106769 : f32
    %121 = vector.broadcast %cst_89 : f32 to vector<32x128xf32>
    %122 = arith.mulf %118, %121 : vector<32x128xf32>
    %cst_90 = arith.constant 0.000000e+00 : f32
    %123 = vector.broadcast %cst_90 : f32 to vector<32x128xf32>
    %124 = arith.cmpf oge, %122, %123 : vector<32x128xf32>
    %cst_91 = arith.constant 1.000000e+00 : f32
    %cst_92 = arith.constant -1.000000e+00 : f32
    %125 = vector.broadcast %cst_91 : f32 to vector<32x128xf32>
    %126 = vector.broadcast %cst_92 : f32 to vector<32x128xf32>
    %127 = arith.select %124, %125, %126 : vector<32x128xi1>, vector<32x128xf32>
    %128 = math.absf %122 : vector<32x128xf32>
    %cst_93 = arith.constant 0.327591091 : f32
    %129 = vector.broadcast %cst_93 : f32 to vector<32x128xf32>
    %130 = arith.mulf %129, %128 : vector<32x128xf32>
    %cst_94 = arith.constant 1.000000e+00 : f32
    %131 = vector.broadcast %cst_94 : f32 to vector<32x128xf32>
    %132 = arith.addf %131, %130 : vector<32x128xf32>
    %cst_95 = arith.constant 1.000000e+00 : f32
    %133 = vector.broadcast %cst_95 : f32 to vector<32x128xf32>
    %134 = arith.divf %133, %132 : vector<32x128xf32>
    %cst_96 = arith.constant 1.06140542 : f32
    %135 = vector.broadcast %cst_96 : f32 to vector<32x128xf32>
    %136 = arith.mulf %135, %134 : vector<32x128xf32>
    %cst_97 = arith.constant -1.45315206 : f32
    %137 = vector.broadcast %cst_97 : f32 to vector<32x128xf32>
    %138 = arith.addf %136, %137 : vector<32x128xf32>
    %139 = arith.mulf %138, %134 : vector<32x128xf32>
    %cst_98 = arith.constant 1.42141378 : f32
    %140 = vector.broadcast %cst_98 : f32 to vector<32x128xf32>
    %141 = arith.addf %139, %140 : vector<32x128xf32>
    %142 = arith.mulf %141, %134 : vector<32x128xf32>
    %cst_99 = arith.constant -0.284496725 : f32
    %143 = vector.broadcast %cst_99 : f32 to vector<32x128xf32>
    %144 = arith.addf %142, %143 : vector<32x128xf32>
    %145 = arith.mulf %144, %134 : vector<32x128xf32>
    %cst_100 = arith.constant 0.254829586 : f32
    %146 = vector.broadcast %cst_100 : f32 to vector<32x128xf32>
    %147 = arith.addf %145, %146 : vector<32x128xf32>
    %148 = arith.mulf %147, %134 : vector<32x128xf32>
    %cst_101 = arith.constant 0.000000e+00 : f32
    %149 = vector.broadcast %cst_101 : f32 to vector<32x128xf32>
    %150 = arith.subf %149, %128 : vector<32x128xf32>
    %151 = arith.mulf %150, %128 : vector<32x128xf32>
    %152 = math.exp %151 : vector<32x128xf32>
    %153 = arith.mulf %148, %152 : vector<32x128xf32>
    %cst_102 = arith.constant 1.000000e+00 : f32
    %154 = vector.broadcast %cst_102 : f32 to vector<32x128xf32>
    %155 = arith.subf %154, %153 : vector<32x128xf32>
    %156 = arith.mulf %127, %155 : vector<32x128xf32>
    %cst_103 = arith.constant 1.000000e+00 : f32
    %157 = vector.broadcast %cst_103 : f32 to vector<32x128xf32>
    %158 = arith.addf %157, %156 : vector<32x128xf32>
    %159 = arith.mulf %120, %158 : vector<32x128xf32>
    %c0_104 = arith.constant 0 : index
    %c384 = arith.constant 384 : index
    %160 = vector.load %arg14[%c0_104, %c384] : memref<32x768xf32, #tpu.memory_space<vmem>>, vector<32x128xf32>
    %161 = arith.mulf %159, %160 : vector<32x128xf32>
    %162 = arith.addf %80, %161 : vector<32x128xf32>
    %c1_i32_105 = arith.constant 1 : i32
    %163 = tpu.memref_slice %arg18[%c1_i32_105] : memref<3x!tpu.dma_semaphore, #tpu.memory_space<semaphore_mem>> -> memref<1x!tpu.dma_semaphore, #tpu.memory_space<semaphore_mem>>
    %164 = tpu.memref_squeeze %163 : memref<1x!tpu.dma_semaphore, #tpu.memory_space<semaphore_mem>> -> memref<!tpu.dma_semaphore, #tpu.memory_space<semaphore_mem>>
    tpu.wait_dma2 semaphore(%164 : memref<!tpu.dma_semaphore, #tpu.memory_space<semaphore_mem>>) src(%arg11 : memref<7x128x128xf32, #tpu.memory_space<any>>) dst(%arg16 : memref<7x128x128xf32, #tpu.memory_space<vmem>>)
    %cst_106 = arith.constant 0.000000e+00 : f32
    %165 = vector.broadcast %cst_106 : f32 to vector<32x128xf32>
    %c0_107 = arith.constant 0 : index
    %c0_108 = arith.constant 0 : index
    %c0_109 = arith.constant 0 : index
    %166 = vector.load %arg4[%c0_107, %c0_108, %c0_109] : memref<7x32x32xf32, #tpu.memory_space<vmem>>, vector<1x32x32xf32>
    %167 = vector.shape_cast %166 : vector<1x32x32xf32> to vector<32x32xf32>
    %cst_110 = arith.constant dense<0.000000e+00> : vector<32x128xf32>
    %168 = tpu.matmul %167, %159, %cst_110 {dimension_numbers = #tpu.dot_dimension_numbers<[1], [0], [0], [1], [0, 0, 1, 1], [], []>} : vector<32x32xf32>, vector<32x128xf32>, vector<32x128xf32> -> vector<32x128xf32>
    %c0_111 = arith.constant 0 : index
    %c0_112 = arith.constant 0 : index
    %c0_113 = arith.constant 0 : index
    %169 = vector.load %arg16[%c0_111, %c0_112, %c0_113] : memref<7x128x128xf32, #tpu.memory_space<vmem>>, vector<1x128x128xf32>
    %170 = vector.shape_cast %169 : vector<1x128x128xf32> to vector<128x128xf32>
    %cst_114 = arith.constant dense<0.000000e+00> : vector<32x128xf32>
    %171 = tpu.matmul %168, %170, %cst_114 {dimension_numbers = #tpu.dot_dimension_numbers<[1], [0], [0], [1], [0, 0, 1, 1], [], []>} : vector<32x128xf32>, vector<128x128xf32>, vector<32x128xf32> -> vector<32x128xf32>
    %172 = arith.addf %165, %171 : vector<32x128xf32>
    %c1_115 = arith.constant 1 : index
    %c0_116 = arith.constant 0 : index
    %c0_117 = arith.constant 0 : index
    %173 = vector.load %arg4[%c1_115, %c0_116, %c0_117] : memref<7x32x32xf32, #tpu.memory_space<vmem>>, vector<1x32x32xf32>
    %174 = vector.shape_cast %173 : vector<1x32x32xf32> to vector<32x32xf32>
    %cst_118 = arith.constant dense<0.000000e+00> : vector<32x128xf32>
    %175 = tpu.matmul %174, %159, %cst_118 {dimension_numbers = #tpu.dot_dimension_numbers<[1], [0], [0], [1], [0, 0, 1, 1], [], []>} : vector<32x32xf32>, vector<32x128xf32>, vector<32x128xf32> -> vector<32x128xf32>
    %c1_119 = arith.constant 1 : index
    %c0_120 = arith.constant 0 : index
    %c0_121 = arith.constant 0 : index
    %176 = vector.load %arg16[%c1_119, %c0_120, %c0_121] : memref<7x128x128xf32, #tpu.memory_space<vmem>>, vector<1x128x128xf32>
    %177 = vector.shape_cast %176 : vector<1x128x128xf32> to vector<128x128xf32>
    %cst_122 = arith.constant dense<0.000000e+00> : vector<32x128xf32>
    %178 = tpu.matmul %175, %177, %cst_122 {dimension_numbers = #tpu.dot_dimension_numbers<[1], [0], [0], [1], [0, 0, 1, 1], [], []>} : vector<32x128xf32>, vector<128x128xf32>, vector<32x128xf32> -> vector<32x128xf32>
    %179 = arith.addf %172, %178 : vector<32x128xf32>
    %c2_123 = arith.constant 2 : index
    %c0_124 = arith.constant 0 : index
    %c0_125 = arith.constant 0 : index
    %180 = vector.load %arg4[%c2_123, %c0_124, %c0_125] : memref<7x32x32xf32, #tpu.memory_space<vmem>>, vector<1x32x32xf32>
    %181 = vector.shape_cast %180 : vector<1x32x32xf32> to vector<32x32xf32>
    %cst_126 = arith.constant dense<0.000000e+00> : vector<32x128xf32>
    %182 = tpu.matmul %181, %159, %cst_126 {dimension_numbers = #tpu.dot_dimension_numbers<[1], [0], [0], [1], [0, 0, 1, 1], [], []>} : vector<32x32xf32>, vector<32x128xf32>, vector<32x128xf32> -> vector<32x128xf32>
    %c2_127 = arith.constant 2 : index
    %c0_128 = arith.constant 0 : index
    %c0_129 = arith.constant 0 : index
    %183 = vector.load %arg16[%c2_127, %c0_128, %c0_129] : memref<7x128x128xf32, #tpu.memory_space<vmem>>, vector<1x128x128xf32>
    %184 = vector.shape_cast %183 : vector<1x128x128xf32> to vector<128x128xf32>
    %cst_130 = arith.constant dense<0.000000e+00> : vector<32x128xf32>
    %185 = tpu.matmul %182, %184, %cst_130 {dimension_numbers = #tpu.dot_dimension_numbers<[1], [0], [0], [1], [0, 0, 1, 1], [], []>} : vector<32x128xf32>, vector<128x128xf32>, vector<32x128xf32> -> vector<32x128xf32>
    %186 = arith.addf %179, %185 : vector<32x128xf32>
    %c3_131 = arith.constant 3 : index
    %c0_132 = arith.constant 0 : index
    %c0_133 = arith.constant 0 : index
    %187 = vector.load %arg4[%c3_131, %c0_132, %c0_133] : memref<7x32x32xf32, #tpu.memory_space<vmem>>, vector<1x32x32xf32>
    %188 = vector.shape_cast %187 : vector<1x32x32xf32> to vector<32x32xf32>
    %cst_134 = arith.constant dense<0.000000e+00> : vector<32x128xf32>
    %189 = tpu.matmul %188, %159, %cst_134 {dimension_numbers = #tpu.dot_dimension_numbers<[1], [0], [0], [1], [0, 0, 1, 1], [], []>} : vector<32x32xf32>, vector<32x128xf32>, vector<32x128xf32> -> vector<32x128xf32>
    %c3_135 = arith.constant 3 : index
    %c0_136 = arith.constant 0 : index
    %c0_137 = arith.constant 0 : index
    %190 = vector.load %arg16[%c3_135, %c0_136, %c0_137] : memref<7x128x128xf32, #tpu.memory_space<vmem>>, vector<1x128x128xf32>
    %191 = vector.shape_cast %190 : vector<1x128x128xf32> to vector<128x128xf32>
    %cst_138 = arith.constant dense<0.000000e+00> : vector<32x128xf32>
    %192 = tpu.matmul %189, %191, %cst_138 {dimension_numbers = #tpu.dot_dimension_numbers<[1], [0], [0], [1], [0, 0, 1, 1], [], []>} : vector<32x128xf32>, vector<128x128xf32>, vector<32x128xf32> -> vector<32x128xf32>
    %193 = arith.addf %186, %192 : vector<32x128xf32>
    %c4_139 = arith.constant 4 : index
    %c0_140 = arith.constant 0 : index
    %c0_141 = arith.constant 0 : index
    %194 = vector.load %arg4[%c4_139, %c0_140, %c0_141] : memref<7x32x32xf32, #tpu.memory_space<vmem>>, vector<1x32x32xf32>
    %195 = vector.shape_cast %194 : vector<1x32x32xf32> to vector<32x32xf32>
    %cst_142 = arith.constant dense<0.000000e+00> : vector<32x128xf32>
    %196 = tpu.matmul %195, %159, %cst_142 {dimension_numbers = #tpu.dot_dimension_numbers<[1], [0], [0], [1], [0, 0, 1, 1], [], []>} : vector<32x32xf32>, vector<32x128xf32>, vector<32x128xf32> -> vector<32x128xf32>
    %c4_143 = arith.constant 4 : index
    %c0_144 = arith.constant 0 : index
    %c0_145 = arith.constant 0 : index
    %197 = vector.load %arg16[%c4_143, %c0_144, %c0_145] : memref<7x128x128xf32, #tpu.memory_space<vmem>>, vector<1x128x128xf32>
    %198 = vector.shape_cast %197 : vector<1x128x128xf32> to vector<128x128xf32>
    %cst_146 = arith.constant dense<0.000000e+00> : vector<32x128xf32>
    %199 = tpu.matmul %196, %198, %cst_146 {dimension_numbers = #tpu.dot_dimension_numbers<[1], [0], [0], [1], [0, 0, 1, 1], [], []>} : vector<32x128xf32>, vector<128x128xf32>, vector<32x128xf32> -> vector<32x128xf32>
    %200 = arith.addf %193, %199 : vector<32x128xf32>
    %c5_147 = arith.constant 5 : index
    %c0_148 = arith.constant 0 : index
    %c0_149 = arith.constant 0 : index
    %201 = vector.load %arg4[%c5_147, %c0_148, %c0_149] : memref<7x32x32xf32, #tpu.memory_space<vmem>>, vector<1x32x32xf32>
    %202 = vector.shape_cast %201 : vector<1x32x32xf32> to vector<32x32xf32>
    %cst_150 = arith.constant dense<0.000000e+00> : vector<32x128xf32>
    %203 = tpu.matmul %202, %159, %cst_150 {dimension_numbers = #tpu.dot_dimension_numbers<[1], [0], [0], [1], [0, 0, 1, 1], [], []>} : vector<32x32xf32>, vector<32x128xf32>, vector<32x128xf32> -> vector<32x128xf32>
    %c5_151 = arith.constant 5 : index
    %c0_152 = arith.constant 0 : index
    %c0_153 = arith.constant 0 : index
    %204 = vector.load %arg16[%c5_151, %c0_152, %c0_153] : memref<7x128x128xf32, #tpu.memory_space<vmem>>, vector<1x128x128xf32>
    %205 = vector.shape_cast %204 : vector<1x128x128xf32> to vector<128x128xf32>
    %cst_154 = arith.constant dense<0.000000e+00> : vector<32x128xf32>
    %206 = tpu.matmul %203, %205, %cst_154 {dimension_numbers = #tpu.dot_dimension_numbers<[1], [0], [0], [1], [0, 0, 1, 1], [], []>} : vector<32x128xf32>, vector<128x128xf32>, vector<32x128xf32> -> vector<32x128xf32>
    %207 = arith.addf %200, %206 : vector<32x128xf32>
    %c6 = arith.constant 6 : index
    %c0_155 = arith.constant 0 : index
    %c0_156 = arith.constant 0 : index
    %208 = vector.load %arg4[%c6, %c0_155, %c0_156] : memref<7x32x32xf32, #tpu.memory_space<vmem>>, vector<1x32x32xf32>
    %209 = vector.shape_cast %208 : vector<1x32x32xf32> to vector<32x32xf32>
    %cst_157 = arith.constant dense<0.000000e+00> : vector<32x128xf32>
    %210 = tpu.matmul %209, %159, %cst_157 {dimension_numbers = #tpu.dot_dimension_numbers<[1], [0], [0], [1], [0, 0, 1, 1], [], []>} : vector<32x32xf32>, vector<32x128xf32>, vector<32x128xf32> -> vector<32x128xf32>
    %c6_158 = arith.constant 6 : index
    %c0_159 = arith.constant 0 : index
    %c0_160 = arith.constant 0 : index
    %211 = vector.load %arg16[%c6_158, %c0_159, %c0_160] : memref<7x128x128xf32, #tpu.memory_space<vmem>>, vector<1x128x128xf32>
    %212 = vector.shape_cast %211 : vector<1x128x128xf32> to vector<128x128xf32>
    %cst_161 = arith.constant dense<0.000000e+00> : vector<32x128xf32>
    %213 = tpu.matmul %210, %212, %cst_161 {dimension_numbers = #tpu.dot_dimension_numbers<[1], [0], [0], [1], [0, 0, 1, 1], [], []>} : vector<32x128xf32>, vector<128x128xf32>, vector<32x128xf32> -> vector<32x128xf32>
    %214 = arith.addf %207, %213 : vector<32x128xf32>
    %cst_162 = arith.constant 5.000000e-01 : f32
    %215 = vector.broadcast %cst_162 : f32 to vector<32x128xf32>
    %216 = arith.mulf %215, %214 : vector<32x128xf32>
    %cst_163 = arith.constant 0.707106769 : f32
    %217 = vector.broadcast %cst_163 : f32 to vector<32x128xf32>
    %218 = arith.mulf %214, %217 : vector<32x128xf32>
    %cst_164 = arith.constant 0.000000e+00 : f32
    %219 = vector.broadcast %cst_164 : f32 to vector<32x128xf32>
    %220 = arith.cmpf oge, %218, %219 : vector<32x128xf32>
    %cst_165 = arith.constant 1.000000e+00 : f32
    %cst_166 = arith.constant -1.000000e+00 : f32
    %221 = vector.broadcast %cst_165 : f32 to vector<32x128xf32>
    %222 = vector.broadcast %cst_166 : f32 to vector<32x128xf32>
    %223 = arith.select %220, %221, %222 : vector<32x128xi1>, vector<32x128xf32>
    %224 = math.absf %218 : vector<32x128xf32>
    %cst_167 = arith.constant 0.327591091 : f32
    %225 = vector.broadcast %cst_167 : f32 to vector<32x128xf32>
    %226 = arith.mulf %225, %224 : vector<32x128xf32>
    %cst_168 = arith.constant 1.000000e+00 : f32
    %227 = vector.broadcast %cst_168 : f32 to vector<32x128xf32>
    %228 = arith.addf %227, %226 : vector<32x128xf32>
    %cst_169 = arith.constant 1.000000e+00 : f32
    %229 = vector.broadcast %cst_169 : f32 to vector<32x128xf32>
    %230 = arith.divf %229, %228 : vector<32x128xf32>
    %cst_170 = arith.constant 1.06140542 : f32
    %231 = vector.broadcast %cst_170 : f32 to vector<32x128xf32>
    %232 = arith.mulf %231, %230 : vector<32x128xf32>
    %cst_171 = arith.constant -1.45315206 : f32
    %233 = vector.broadcast %cst_171 : f32 to vector<32x128xf32>
    %234 = arith.addf %232, %233 : vector<32x128xf32>
    %235 = arith.mulf %234, %230 : vector<32x128xf32>
    %cst_172 = arith.constant 1.42141378 : f32
    %236 = vector.broadcast %cst_172 : f32 to vector<32x128xf32>
    %237 = arith.addf %235, %236 : vector<32x128xf32>
    %238 = arith.mulf %237, %230 : vector<32x128xf32>
    %cst_173 = arith.constant -0.284496725 : f32
    %239 = vector.broadcast %cst_173 : f32 to vector<32x128xf32>
    %240 = arith.addf %238, %239 : vector<32x128xf32>
    %241 = arith.mulf %240, %230 : vector<32x128xf32>
    %cst_174 = arith.constant 0.254829586 : f32
    %242 = vector.broadcast %cst_174 : f32 to vector<32x128xf32>
    %243 = arith.addf %241, %242 : vector<32x128xf32>
    %244 = arith.mulf %243, %230 : vector<32x128xf32>
    %cst_175 = arith.constant 0.000000e+00 : f32
    %245 = vector.broadcast %cst_175 : f32 to vector<32x128xf32>
    %246 = arith.subf %245, %224 : vector<32x128xf32>
    %247 = arith.mulf %246, %224 : vector<32x128xf32>
    %248 = math.exp %247 : vector<32x128xf32>
    %249 = arith.mulf %244, %248 : vector<32x128xf32>
    %cst_176 = arith.constant 1.000000e+00 : f32
    %250 = vector.broadcast %cst_176 : f32 to vector<32x128xf32>
    %251 = arith.subf %250, %249 : vector<32x128xf32>
    %252 = arith.mulf %223, %251 : vector<32x128xf32>
    %cst_177 = arith.constant 1.000000e+00 : f32
    %253 = vector.broadcast %cst_177 : f32 to vector<32x128xf32>
    %254 = arith.addf %253, %252 : vector<32x128xf32>
    %255 = arith.mulf %216, %254 : vector<32x128xf32>
    %c0_178 = arith.constant 0 : index
    %c512 = arith.constant 512 : index
    %256 = vector.load %arg14[%c0_178, %c512] : memref<32x768xf32, #tpu.memory_space<vmem>>, vector<32x128xf32>
    %257 = arith.mulf %255, %256 : vector<32x128xf32>
    %258 = arith.addf %162, %257 : vector<32x128xf32>
    %c0_179 = arith.constant 0 : index
    %c0_180 = arith.constant 0 : index
    %259 = vector.load %arg6[%c0_179, %c0_180] : memref<128x8xf32, #tpu.memory_space<vmem>>, vector<128x8xf32>
    %cst_181 = arith.constant dense<0.000000e+00> : vector<32x8xf32>
    %260 = tpu.matmul %255, %259, %cst_181 {dimension_numbers = #tpu.dot_dimension_numbers<[1], [0], [0], [1], [0, 0, 1, 1], [], []>} : vector<32x128xf32>, vector<128x8xf32>, vector<32x8xf32> -> vector<32x8xf32>
    %c0_182 = arith.constant 0 : index
    %c0_183 = arith.constant 0 : index
    %261 = vector.load %arg8[%c0_182, %c0_183] : memref<32x32xf32, #tpu.memory_space<vmem>>, vector<32x32xf32>
    %cst_184 = arith.constant dense<0.000000e+00> : vector<32x8xf32>
    %262 = tpu.matmul %261, %260, %cst_184 {dimension_numbers = #tpu.dot_dimension_numbers<[1], [0], [0], [1], [0, 0, 1, 1], [], []>} : vector<32x32xf32>, vector<32x8xf32>, vector<32x8xf32> -> vector<32x8xf32>
    %c0_185 = arith.constant 0 : index
    %c0_186 = arith.constant 0 : index
    %263 = vector.load %arg7[%c0_185, %c0_186] : memref<8x128xf32, #tpu.memory_space<vmem>>, vector<8x128xf32>
    %cst_187 = arith.constant dense<0.000000e+00> : vector<32x128xf32>
    %264 = tpu.matmul %262, %263, %cst_187 {dimension_numbers = #tpu.dot_dimension_numbers<[1], [0], [0], [1], [0, 0, 1, 1], [], []>} : vector<32x8xf32>, vector<8x128xf32>, vector<32x128xf32> -> vector<32x128xf32>
    %cst_188 = arith.constant 3.906250e-03 : f32
    %265 = vector.broadcast %cst_188 : f32 to vector<32x128xf32>
    %266 = arith.mulf %264, %265 : vector<32x128xf32>
    %cst_189 = arith.constant 5.000000e-01 : f32
    %267 = vector.broadcast %cst_189 : f32 to vector<32x128xf32>
    %268 = arith.mulf %267, %266 : vector<32x128xf32>
    %cst_190 = arith.constant 0.707106769 : f32
    %269 = vector.broadcast %cst_190 : f32 to vector<32x128xf32>
    %270 = arith.mulf %266, %269 : vector<32x128xf32>
    %cst_191 = arith.constant 0.000000e+00 : f32
    %271 = vector.broadcast %cst_191 : f32 to vector<32x128xf32>
    %272 = arith.cmpf oge, %270, %271 : vector<32x128xf32>
    %cst_192 = arith.constant 1.000000e+00 : f32
    %cst_193 = arith.constant -1.000000e+00 : f32
    %273 = vector.broadcast %cst_192 : f32 to vector<32x128xf32>
    %274 = vector.broadcast %cst_193 : f32 to vector<32x128xf32>
    %275 = arith.select %272, %273, %274 : vector<32x128xi1>, vector<32x128xf32>
    %276 = math.absf %270 : vector<32x128xf32>
    %cst_194 = arith.constant 0.327591091 : f32
    %277 = vector.broadcast %cst_194 : f32 to vector<32x128xf32>
    %278 = arith.mulf %277, %276 : vector<32x128xf32>
    %cst_195 = arith.constant 1.000000e+00 : f32
    %279 = vector.broadcast %cst_195 : f32 to vector<32x128xf32>
    %280 = arith.addf %279, %278 : vector<32x128xf32>
    %cst_196 = arith.constant 1.000000e+00 : f32
    %281 = vector.broadcast %cst_196 : f32 to vector<32x128xf32>
    %282 = arith.divf %281, %280 : vector<32x128xf32>
    %cst_197 = arith.constant 1.06140542 : f32
    %283 = vector.broadcast %cst_197 : f32 to vector<32x128xf32>
    %284 = arith.mulf %283, %282 : vector<32x128xf32>
    %cst_198 = arith.constant -1.45315206 : f32
    %285 = vector.broadcast %cst_198 : f32 to vector<32x128xf32>
    %286 = arith.addf %284, %285 : vector<32x128xf32>
    %287 = arith.mulf %286, %282 : vector<32x128xf32>
    %cst_199 = arith.constant 1.42141378 : f32
    %288 = vector.broadcast %cst_199 : f32 to vector<32x128xf32>
    %289 = arith.addf %287, %288 : vector<32x128xf32>
    %290 = arith.mulf %289, %282 : vector<32x128xf32>
    %cst_200 = arith.constant -0.284496725 : f32
    %291 = vector.broadcast %cst_200 : f32 to vector<32x128xf32>
    %292 = arith.addf %290, %291 : vector<32x128xf32>
    %293 = arith.mulf %292, %282 : vector<32x128xf32>
    %cst_201 = arith.constant 0.254829586 : f32
    %294 = vector.broadcast %cst_201 : f32 to vector<32x128xf32>
    %295 = arith.addf %293, %294 : vector<32x128xf32>
    %296 = arith.mulf %295, %282 : vector<32x128xf32>
    %cst_202 = arith.constant 0.000000e+00 : f32
    %297 = vector.broadcast %cst_202 : f32 to vector<32x128xf32>
    %298 = arith.subf %297, %276 : vector<32x128xf32>
    %299 = arith.mulf %298, %276 : vector<32x128xf32>
    %300 = math.exp %299 : vector<32x128xf32>
    %301 = arith.mulf %296, %300 : vector<32x128xf32>
    %cst_203 = arith.constant 1.000000e+00 : f32
    %302 = vector.broadcast %cst_203 : f32 to vector<32x128xf32>
    %303 = arith.subf %302, %301 : vector<32x128xf32>
    %304 = arith.mulf %275, %303 : vector<32x128xf32>
    %cst_204 = arith.constant 1.000000e+00 : f32
    %305 = vector.broadcast %cst_204 : f32 to vector<32x128xf32>
    %306 = arith.addf %305, %304 : vector<32x128xf32>
    %307 = arith.mulf %268, %306 : vector<32x128xf32>
    %c0_205 = arith.constant 0 : index
    %c640 = arith.constant 640 : index
    %308 = vector.load %arg14[%c0_205, %c640] : memref<32x768xf32, #tpu.memory_space<vmem>>, vector<32x128xf32>
    %309 = arith.mulf %307, %308 : vector<32x128xf32>
    %310 = arith.addf %258, %309 : vector<32x128xf32>
    %c2_i32_206 = arith.constant 2 : i32
    %311 = tpu.memref_slice %arg18[%c2_i32_206] : memref<3x!tpu.dma_semaphore, #tpu.memory_space<semaphore_mem>> -> memref<1x!tpu.dma_semaphore, #tpu.memory_space<semaphore_mem>>
    %312 = tpu.memref_squeeze %311 : memref<1x!tpu.dma_semaphore, #tpu.memory_space<semaphore_mem>> -> memref<!tpu.dma_semaphore, #tpu.memory_space<semaphore_mem>>
    tpu.wait_dma2 semaphore(%312 : memref<!tpu.dma_semaphore, #tpu.memory_space<semaphore_mem>>) src(%arg12 : memref<128x256xf32, #tpu.memory_space<any>>) dst(%arg17 : memref<128x256xf32, #tpu.memory_space<vmem>>)
    %c0_207 = arith.constant 0 : index
    %c0_208 = arith.constant 0 : index
    %313 = vector.load %arg17[%c0_207, %c0_208] : memref<128x256xf32, #tpu.memory_space<vmem>>, vector<128x128xf32>
    %cst_209 = arith.constant dense<0.000000e+00> : vector<32x128xf32>
    %314 = tpu.matmul %310, %313, %cst_209 {dimension_numbers = #tpu.dot_dimension_numbers<[1], [0], [0], [1], [0, 0, 1, 1], [], []>} : vector<32x128xf32>, vector<128x128xf32>, vector<32x128xf32> -> vector<32x128xf32>
    %c0_210 = arith.constant 0 : index
    %c0_211 = arith.constant 0 : index
    %315 = vector.load %arg9[%c0_210, %c0_211] : memref<1x256xf32, #tpu.memory_space<vmem>>, vector<1x128xf32>
    %316 = vector.broadcast %315 : vector<1x128xf32> to vector<32x128xf32>
    %317 = arith.addf %314, %316 : vector<32x128xf32>
    %c0_212 = arith.constant 0 : index
    %c0_213 = arith.constant 0 : index
    %318 = vector.load %arg14[%c0_212, %c0_213] : memref<32x768xf32, #tpu.memory_space<vmem>>, vector<32x128xf32>
    %319 = arith.mulf %318, %317 : vector<32x128xf32>
    %c0_214 = arith.constant 0 : index
    %c128_215 = arith.constant 128 : index
    %320 = vector.load %arg17[%c0_214, %c128_215] : memref<128x256xf32, #tpu.memory_space<vmem>>, vector<128x128xf32>
    %cst_216 = arith.constant dense<0.000000e+00> : vector<32x128xf32>
    %321 = tpu.matmul %319, %320, %cst_216 {dimension_numbers = #tpu.dot_dimension_numbers<[1], [0], [0], [1], [0, 0, 1, 1], [], []>} : vector<32x128xf32>, vector<128x128xf32>, vector<32x128xf32> -> vector<32x128xf32>
    %c0_217 = arith.constant 0 : index
    %c128_218 = arith.constant 128 : index
    %322 = vector.load %arg9[%c0_217, %c128_218] : memref<1x256xf32, #tpu.memory_space<vmem>>, vector<1x128xf32>
    %323 = vector.broadcast %322 : vector<1x128xf32> to vector<32x128xf32>
    %324 = arith.addf %321, %323 : vector<32x128xf32>
    %c0_219 = arith.constant 0 : index
    %c0_220 = arith.constant 0 : index
    %325 = vector.load %arg13[%c0_219, %c0_220] : memref<32x128xf32, #tpu.memory_space<vmem>>, vector<32x128xf32>
    tpu.vector_store %arg13[%c0_219, %c0_220], %324 {strides = array<i32>} : memref<32x128xf32, #tpu.memory_space<vmem>>, vector<32x128xf32>,
    return
  }
  func.func @transform_0(%arg0: i32) -> (i32, i32) {
    %c0_i32 = arith.constant 0 : i32
    %c0_i32_0 = arith.constant 0 : i32
    %c0_i32_1 = arith.constant 0 : i32
    return %c0_i32, %c0_i32_0 : i32, i32
  }
  func.func @transform_1(%arg0: i32) -> (i32, i32) {
    %c0_i32 = arith.constant 0 : i32
    %c0_i32_0 = arith.constant 0 : i32
    %c0_i32_1 = arith.constant 0 : i32
    return %c0_i32, %c0_i32_0 : i32, i32
  }
  func.func @transform_2(%arg0: i32) -> (i32, i32) {
    %c0_i32 = arith.constant 0 : i32
    %c0_i32_0 = arith.constant 0 : i32
    %c0_i32_1 = arith.constant 0 : i32
    return %c0_i32, %c0_i32_0 : i32, i32
  }
  func.func @transform_3(%arg0: i32) -> (i32, i32, i32) {
    %c0_i32 = arith.constant 0 : i32
    %c0_i32_0 = arith.constant 0 : i32
    %c0_i32_1 = arith.constant 0 : i32
    %c0_i32_2 = arith.constant 0 : i32
    return %c0_i32, %c0_i32_0, %c0_i32_1 : i32, i32, i32
  }
  func.func @transform_4(%arg0: i32) -> (i32, i32, i32) {
    %c0_i32 = arith.constant 0 : i32
    %c0_i32_0 = arith.constant 0 : i32
    %c0_i32_1 = arith.constant 0 : i32
    %c0_i32_2 = arith.constant 0 : i32
    return %c0_i32, %c0_i32_0, %c0_i32_1 : i32, i32, i32
  }
  func.func @transform_5(%arg0: i32) -> (i32, i32) {
    %c0_i32 = arith.constant 0 : i32
    %c0_i32_0 = arith.constant 0 : i32
    %c0_i32_1 = arith.constant 0 : i32
    return %c0_i32, %c0_i32_0 : i32, i32
  }
  func.func @transform_6(%arg0: i32) -> (i32, i32) {
    %c0_i32 = arith.constant 0 : i32
    %c0_i32_0 = arith.constant 0 : i32
    %c0_i32_1 = arith.constant 0 : i32
    return %c0_i32, %c0_i32_0 : i32, i32
  }
  func.func @transform_7(%arg0: i32) -> (i32, i32) {
    %c0_i32 = arith.constant 0 : i32
    %c0_i32_0 = arith.constant 0 : i32
    %c0_i32_1 = arith.constant 0 : i32
    return %c0_i32, %c0_i32_0 : i32, i32
  }
  func.func @transform_8(%arg0: i32) -> (i32, i32) {
    %c0_i32 = arith.constant 0 : i32
    %c0_i32_0 = arith.constant 0 : i32
    %c0_i32_1 = arith.constant 0 : i32
    return %c0_i32, %c0_i32_0 : i32, i32
  }
  func.func @transform_12(%arg0: i32) -> (i32, i32) {
    %c0_i32 = arith.constant 0 : i32
    %c0_i32_0 = arith.constant 0 : i32
    %c0_i32_1 = arith.constant 0 : i32
    return %c0_i32, %c0_i32_0 : i32, i32
  }
}

</mosaic_0001>

<bundles_post_ra>
// kernel: focal_modulation.1
= control target key start
LH: loop header
LB: loop body
LE: loop exit
PB: predicated region body
PF: predicated region fallthrough
CT: control target
= control target key end

     0   :  { %17 = vsyncpa [#allocation8], 0  ;;  %s9139_s0 = inlined_call_operand.vmem [shape: f32[32,128], index: 0, kind: input, shape index: {}]   ;;  %s9140_s1 = inlined_call_operand.hbm [shape: f32[128,768], index: 1, kind: input, shape index: {}]   ;;  %s9141_s2 = inlined_call_operand.vmem [shape: f32[1,768], index: 2, kind: input, shape index: {}]   ;;  %s9142_s3 = inlined_call_operand.hbm [shape: f32[7,32,32], index: 3, kind: input, shape index: {}]   ;;  %s9143_s4 = inlined_call_operand.hbm [shape: f32[3,128,128], index: 4, kind: input, shape index: {}]   ;;  %s9144_s5 = inlined_call_operand.vmem [shape: f32[128,8], index: 5, kind: input, shape index: {}]   ;;  %s9145_s6 = inlined_call_operand.vmem [shape: f32[8,128], index: 6, kind: input, shape index: {}]   ;;  %s9146_s7 = inlined_call_operand.vmem [shape: f32[32,32], index: 7, kind: input, shape index: {}]   ;;  %s9147_s8 = inlined_call_operand.vmem [shape: f32[1,256], index: 8, kind: input, shape index: {}]   ;;  %s9148_s9 = inlined_call_operand.hbm [shape: f32[5,128,128], index: 9, kind: input, shape index: {}]   ;;  %s9149_s10 = inlined_call_operand.vmem [shape: f32[7,128,128], index: 10, kind: input, shape index: {}]   ;;  %s9150_s11 = inlined_call_operand.vmem [shape: f32[128,256], index: 11, kind: input, shape index: {}]   ;;  %s9151_s12 = inlined_call_operand.vmem [shape: f32[32,128], index: 12, kind: output, shape index: {}]  }
   0x1   :  { %18 = vsyncpa [#allocation10], 0  ;;  %s7538_s21 = smov [#allocation9]   ;;  %s7440_s25 = scalar_lea.hbm %s9142_s3, 3584 }
   0x2   :  { %s40_s22 = sshll.u32 %s7538_s21, 4  ;;  %p7441_p0 = scmp.ne.s32.totalorder %s9142_s3, %s7440_s25  ;;  %s41_s22 = int_to_ptr.vmem [resolvable:$true] %s40_s22 }
   0x3   :  { %p7444_p1 = scmp.lt.u32.totalorder %s7440_s25, %s9142_s3 }
   0x5   :  { %p7446_p2 = pnand %p7444_p1, %p7441_p0 }
   0x7   :  { %7449 = shalt.err (!%p7446_p2)
}
   0x8   :  { %s7450_s30 = scalar_lea.vmem %s41_s22, 3584  ;;  %p7455_p4 = scmp.lt.s32.totalorder %s41_s22, %s41_s22 }
   0x9   :  { %p7451_p3 = scmp.ne.s32.totalorder %s41_s22, %s7450_s30  ;;  %p7456_p5 = scmp.lt.s32.totalorder %s7450_s30, %s7450_s30 }
   0xb   :  { %p7457_p6 = por %p7456_p5, %p7455_p4 }
   0xd   :  { %p7458_p7 = pnand %p7457_p6, %p7451_p3 }
   0xf   :  { %7461 = shalt.err (!%p7458_p7)
}
  0x10   :  { %s7539_s13 = smov 128   ;;  %s7540_s14 = smov 8  }
  0x11   :  { %46 = dma.hbm_to_vmem [thread:$0]  %s9142_s3, 3584, %s41_s22, [#allocation10], %s7539_s13, %s7539_s13, %s7540_s14  }
  0x12   :  { %s7541_s17 = smov [#allocation7]   ;;  %s7462_s21 = scalar_lea.hbm %s9140_s1, 12288 }
  0x13   :  { %s26_s18 = sshll.u32 %s7541_s17, 4  ;;  %p7463_p8 = scmp.ne.s32.totalorder %s9140_s1, %s7462_s21  ;;  %s27_s18 = int_to_ptr.vmem [resolvable:$true] %s26_s18 }
  0x14   :  { %p7466_p9 = scmp.lt.u32.totalorder %s7462_s21, %s9140_s1 }
  0x16   :  { %p7468_p10 = pnand %p7466_p9, %p7463_p8 }
  0x18   :  { %7471 = shalt.err (!%p7468_p10)
}
  0x19   :  { %s7472_s27 = scalar_lea.vmem %s27_s18, 12288  ;;  %p7477_p12 = scmp.lt.s32.totalorder %s27_s18, %s27_s18 }
  0x1a   :  { %p7473_p11 = scmp.ne.s32.totalorder %s27_s18, %s7472_s27  ;;  %p7478_p13 = scmp.lt.s32.totalorder %s7472_s27, %s7472_s27 }
  0x1c   :  { %p7479_p0 = por %p7478_p13, %p7477_p12 }
  0x1e   :  { %p7480_p1 = pnand %p7479_p0, %p7473_p11 }
  0x20   :  { %7483 = shalt.err (!%p7480_p1)
}
  0x21   :  { %s7542_s3 = smov 768   ;;  %s7543_s22 = smov 48  }
  0x22   :  { %32 = dma.hbm_to_vmem [thread:$0]  %s9140_s1, 12288, %s27_s18, [#allocation8], %s7542_s3, %s7542_s3, %s7543_s22  }
  0x23   :  { %s7544_s30 = smov [#allocation11]   ;;  %s7484_s19 = scalar_lea.hbm %s9143_s4, 6144 }
  0x24   :  { %s52_s15 = sshll.u32 %s7544_s30, 4  ;;  %p7485_p2 = scmp.ne.s32.totalorder %s9143_s4, %s7484_s19  ;;  %s53_s15 = int_to_ptr.vmem [resolvable:$true] %s52_s15 }
  0x25   :  { %p7488_p3 = scmp.lt.u32.totalorder %s7484_s19, %s9143_s4 }
  0x27   :  { %p7490_p4 = pnand %p7488_p3, %p7485_p2 }
  0x29   :  { %7493 = shalt.err (!%p7490_p4)
}
  0x2a   :  { %s7494_s25 = scalar_lea.vmem %s53_s15, 6144  ;;  %p7499_p6 = scmp.lt.s32.totalorder %s53_s15, %s53_s15 }
  0x2b   :  { %p7495_p5 = scmp.ne.s32.totalorder %s53_s15, %s7494_s25  ;;  %p7500_p7 = scmp.lt.s32.totalorder %s7494_s25, %s7494_s25 }
  0x2d   :  { %p7501_p8 = por %p7500_p7, %p7499_p6 }
  0x2f   :  { %p7502_p9 = pnand %p7501_p8, %p7495_p5 }
  0x31   :  { %7505 = shalt.err (!%p7502_p9)
}
  0x32   :  { %58 = dma.hbm_to_vmem [thread:$0]  %s9143_s4, 6144, %s53_s15, [#allocation10], %s7539_s13, %s7539_s13, %s7540_s14  }
  0x33   :  { %7528 = dma.done.wait [#allocation8], 12288  }
  0x34   :  { %7529 = vsyncadd [#allocation8], 4294955008 }
  0x35   :  { %7530 = dma.done.wait [#allocation10], 9728  }
  0x36   :  { %7531 = vsyncadd [#allocation10], 4294957568  ;;  %s7545_s26 = smov [#allocation3]   ;;  %s7506_s28 = scalar_lea.hbm %s9148_s9, 10240 }
  0x37   :  { %s83_s27 = sshll.u32 %s7545_s26, 4  ;;  %p7507_p10 = scmp.ne.s32.totalorder %s9148_s9, %s7506_s28  ;;  %s84_s27 = int_to_ptr.vmem [resolvable:$true] %s83_s27 }
  0x38   :  { %p7510_p11 = scmp.lt.u32.totalorder %s7506_s28, %s9148_s9 }
  0x3a   :  { %p7512_p12 = pnand %p7510_p11, %p7507_p10 }
  0x3c   :  { %7515 = shalt.err (!%p7512_p12)  }
  0x3d   :  { %s7516_s4 = scalar_lea.vmem %s84_s27, 10240  ;;  %p7521_p0 = scmp.lt.s32.totalorder %s84_s27, %s84_s27 }
  0x3e   :  { %p7517_p13 = scmp.ne.s32.totalorder %s84_s27, %s7516_s4  ;;  %p7522_p1 = scmp.lt.s32.totalorder %s7516_s4, %s7516_s4 }
  0x40   :  { %p7523_p2 = por %p7522_p1, %p7521_p0 }
  0x42   :  { %p7524_p3 = pnand %p7523_p2, %p7517_p13 }
  0x44   :  { %7527 = shalt.err (!%p7524_p3)  }
  0x45   :  { %86 = dma.hbm_to_vmem [thread:$0]  %s9148_s9, 10240, %s84_s27, [#allocation6]  ;;  %v7670_v0 = vld [vmem:[%s9149_s10] sm:$0xff]  ;;  %v7675_v1 = vld [vmem:[%s9149_s10 + $0x8] sm:$0xff]  ;;  %v7680_v2 = vld [vmem:[%s9149_s10 + $0x10] sm:$0xff] }
  0x46   :  { %9154 = vst [vmem:[#allocation23_spill] sm:$0xff] %v7675_v1  ;;  %9155 = vst [vmem:[#allocation24_spill] sm:$0xff] %v7680_v2  ;;  %v7685_v3 = vld [vmem:[%s9149_s10 + $0x18] sm:$0xff]  ;;  %v7690_v4 = vld [vmem:[%s9149_s10 + $0x20] sm:$0xff] }
  0x47   :  { %9156 = vst [vmem:[#allocation25_spill] sm:$0xff] %v7685_v3  ;;  %9157 = vst [vmem:[#allocation26_spill] sm:$0xff] %v7690_v4  ;;  %v7695_v5 = vld [vmem:[%s9149_s10 + $0x28] sm:$0xff]  ;;  %v7700_v6 = vld [vmem:[%s9149_s10 + $0x30] sm:$0xff] }
  0x48   :  { %9158 = vst [vmem:[#allocation27_spill] sm:$0xff] %v7695_v5  ;;  %9159 = vst [vmem:[#allocation28_spill] sm:$0xff] %v7700_v6  ;;  %v7705_v7 = vld [vmem:[%s9149_s10 + $0x38] sm:$0xff]  ;;  %v7710_v8 = vld [vmem:[%s9149_s10 + $0x40] sm:$0xff] }
  0x49   :  { %9160 = vst [vmem:[#allocation29_spill] sm:$0xff] %v7705_v7  ;;  %9161 = vst [vmem:[#allocation30_spill] sm:$0xff] %v7710_v8  ;;  %v7715_v9 = vld [vmem:[%s9149_s10 + $0x48] sm:$0xff]  ;;  %v7720_v10 = vld [vmem:[%s9149_s10 + $0x50] sm:$0xff] }
  0x4a   :  { %9162 = vst [vmem:[#allocation31_spill] sm:$0xff] %v7715_v9  ;;  %9163 = vst [vmem:[#allocation32_spill] sm:$0xff] %v7720_v10  ;;  %v7725_v11 = vld [vmem:[%s9149_s10 + $0x58] sm:$0xff]  ;;  %v7730_v12 = vld [vmem:[%s9149_s10 + $0x60] sm:$0xff] }
  0x4b   :  { %9164 = vst [vmem:[#allocation33_spill] sm:$0xff] %v7725_v11  ;;  %9165 = vst [vmem:[#allocation34_spill] sm:$0xff] %v7730_v12  ;;  %v7735_v13 = vld [vmem:[%s9149_s10 + $0x68] sm:$0xff]  ;;  %v7740_v14 = vld [vmem:[%s9149_s10 + $0x70] sm:$0xff] }
  0x4c   :  { %9166 = vst [vmem:[#allocation35_spill] sm:$0xff] %v7735_v13  ;;  %9167 = vst [vmem:[#allocation36_spill] sm:$0xff] %v7740_v14  ;;  %v7745_v15 = vld [vmem:[%s9149_s10 + $0x78] sm:$0xff]  ;;  %v7750_v16 = vld [vmem:[%s9149_s10 + $0x80] sm:$0xff] }
  0x4d   :  { %9168 = vst [vmem:[#allocation37_spill] sm:$0xff] %v7745_v15  ;;  %v7755_v17 = vld [vmem:[%s9149_s10 + $0x88] sm:$0xff]  ;;  %v7760_v18 = vld [vmem:[%s9149_s10 + $0x90] sm:$0xff]  ;;  %v7765_v19 = vld [vmem:[%s9149_s10 + $0x98] sm:$0xff] }
  0x4e   :  { %v7770_v20 = vld [vmem:[%s9149_s10 + $0xa0] sm:$0xff]  ;;  %v7775_v21 = vld [vmem:[%s9149_s10 + $0xa8] sm:$0xff]  ;;  %v7780_v22 = vld [vmem:[%s9149_s10 + $0xb0] sm:$0xff] }
  0x4f   :  { %v7785_v23 = vld [vmem:[%s9149_s10 + $0xb8] sm:$0xff]  ;;  %v7790_v24 = vld [vmem:[%s9149_s10 + $0xc0] sm:$0xff]  ;;  %v7795_v25 = vld [vmem:[%s9149_s10 + $0xc8] sm:$0xff] }
  0x50   :  { %v7800_v26 = vld [vmem:[%s9149_s10 + $0xd0] sm:$0xff]  ;;  %v7805_v27 = vld [vmem:[%s9149_s10 + $0xd8] sm:$0xff]  ;;  %v7810_v28 = vld [vmem:[%s9149_s10 + $0xe0] sm:$0xff] }
  0x51   :  { %v7815_v29 = vld [vmem:[%s9149_s10 + $0xe8] sm:$0xff]  ;;  %v7820_v30 = vld [vmem:[%s9149_s10 + $0xf0] sm:$0xff]  ;;  %v7825_v31 = vld [vmem:[%s9149_s10 + $0xf8] sm:$0xff] }
  0x52   :  { %v7830_v32 = vld [vmem:[%s9149_s10 + $0x100] sm:$0xff]  ;;  %v7835_v33 = vld [vmem:[%s9149_s10 + $0x108] sm:$0xff]  ;;  %v7840_v34 = vld [vmem:[%s9149_s10 + $0x110] sm:$0xff] }
  0x53   :  { %9169 = vst [vmem:[#allocation38_spill] sm:$0xff] %v7830_v32  ;;  %9170 = vst [vmem:[#allocation39_spill] sm:$0xff] %v7835_v33  ;;  %v7845_v35 = vld [vmem:[%s9149_s10 + $0x118] sm:$0xff]  ;;  %v7850_v36 = vld [vmem:[%s9149_s10 + $0x120] sm:$0xff] }
  0x54   :  { %9171 = vst [vmem:[#allocation40_spill] sm:$0xff] %v7840_v34  ;;  %9172 = vst [vmem:[#allocation41_spill] sm:$0xff] %v7845_v35  ;;  %v7855_v37 = vld [vmem:[%s9149_s10 + $0x128] sm:$0xff]  ;;  %v7860_v38 = vld [vmem:[%s9149_s10 + $0x130] sm:$0xff] }
  0x55   :  { %9173 = vst [vmem:[#allocation42_spill] sm:$0xff] %v7850_v36  ;;  %9174 = vst [vmem:[#allocation43_spill] sm:$0xff] %v7855_v37  ;;  %v7865_v39 = vld [vmem:[%s9149_s10 + $0x138] sm:$0xff]  ;;  %v7870_v40 = vld [vmem:[%s9149_s10 + $0x140] sm:$0xff] }
  0x56   :  { %9175 = vst [vmem:[#allocation44_spill] sm:$0xff] %v7860_v38  ;;  %9176 = vst [vmem:[#allocation45_spill] sm:$0xff] %v7865_v39  ;;  %v7875_v41 = vld [vmem:[%s9149_s10 + $0x148] sm:$0xff]  ;;  %v7880_v42 = vld [vmem:[%s9149_s10 + $0x150] sm:$0xff] }
  0x57   :  { %9177 = vst [vmem:[#allocation46_spill] sm:$0xff] %v7870_v40  ;;  %9178 = vst [vmem:[#allocation47_spill] sm:$0xff] %v7875_v41  ;;  %v7885_v43 = vld [vmem:[%s9149_s10 + $0x158] sm:$0xff]  ;;  %v7890_v44 = vld [vmem:[%s9149_s10 + $0x160] sm:$0xff] }
  0x58   :  { %9179 = vst [vmem:[#allocation48_spill] sm:$0xff] %v7880_v42  ;;  %9180 = vst [vmem:[#allocation49_spill] sm:$0xff] %v7885_v43  ;;  %v7895_v45 = vld [vmem:[%s9149_s10 + $0x168] sm:$0xff]  ;;  %v7900_v46 = vld [vmem:[%s9149_s10 + $0x170] sm:$0xff] }
  0x59   :  { %9181 = vst [vmem:[#allocation50_spill] sm:$0xff] %v7890_v44  ;;  %9182 = vst [vmem:[#allocation51_spill] sm:$0xff] %v7895_v45  ;;  %v7905_v47 = vld [vmem:[%s9149_s10 + $0x178] sm:$0xff]  ;;  %v7910_v48 = vld [vmem:[%s9149_s10 + $0x180] sm:$0xff] }
  0x5a   :  { %9183 = vst [vmem:[#allocation52_spill] sm:$0xff] %v7900_v46  ;;  %9184 = vst [vmem:[#allocation53_spill] sm:$0xff] %v7905_v47  ;;  %v7915_v49 = vld [vmem:[%s9149_s10 + $0x188] sm:$0xff]  ;;  %v7920_v50 = vld [vmem:[%s9149_s10 + $0x190] sm:$0xff] }
  0x5b   :  { %9185 = vst [vmem:[#allocation54_spill] sm:$0xff] %v7910_v48  ;;  %9186 = vst [vmem:[#allocation55_spill] sm:$0xff] %v7915_v49  ;;  %v7925_v51 = vld [vmem:[%s9149_s10 + $0x198] sm:$0xff]  ;;  %v7930_v52 = vld [vmem:[%s9149_s10 + $0x1a0] sm:$0xff] }
  0x5c   :  { %9187 = vst [vmem:[#allocation56_spill] sm:$0xff] %v7920_v50  ;;  %9188 = vst [vmem:[#allocation57_spill] sm:$0xff] %v7925_v51  ;;  %v7935_v53 = vld [vmem:[%s9149_s10 + $0x1a8] sm:$0xff]  ;;  %v7940_v54 = vld [vmem:[%s9149_s10 + $0x1b0] sm:$0xff] }
  0x5d   :  { %9189 = vst [vmem:[#allocation58_spill] sm:$0xff] %v7930_v52  ;;  %9190 = vst [vmem:[#allocation59_spill] sm:$0xff] %v7935_v53  ;;  %v7945_v55 = vld [vmem:[%s9149_s10 + $0x1b8] sm:$0xff]  ;;  %v7950_v56 = vld [vmem:[%s9149_s10 + $0x1c0] sm:$0xff] }
  0x5e   :  { %9191 = vst [vmem:[#allocation60_spill] sm:$0xff] %v7940_v54  ;;  %9192 = vst [vmem:[#allocation61_spill] sm:$0xff] %v7945_v55  ;;  %v7955_v57 = vld [vmem:[%s9149_s10 + $0x1c8] sm:$0xff]  ;;  %v7960_v58 = vld [vmem:[%s9149_s10 + $0x1d0] sm:$0xff] }
  0x5f   :  { %9193 = vst [vmem:[#allocation62_spill] sm:$0xff] %v7950_v56  ;;  %9194 = vst [vmem:[#allocation63_spill] sm:$0xff] %v7955_v57  ;;  %v7965_v59 = vld [vmem:[%s9149_s10 + $0x1d8] sm:$0xff]  ;;  %v7970_v60 = vld [vmem:[%s9149_s10 + $0x1e0] sm:$0xff] }
  0x60   :  { %9195 = vst [vmem:[#allocation64_spill] sm:$0xff] %v7960_v58  ;;  %9196 = vst [vmem:[#allocation65_spill] sm:$0xff] %v7965_v59  ;;  %v7975_v61 = vld [vmem:[%s9149_s10 + $0x1e8] sm:$0xff]  ;;  %v7980_v62 = vld [vmem:[%s9149_s10 + $0x1f0] sm:$0xff] }
  0x61   :  { %9197 = vst [vmem:[#allocation66_spill] sm:$0xff] %v7970_v60  ;;  %9198 = vst [vmem:[#allocation67_spill] sm:$0xff] %v7975_v61  ;;  %v7985_v63 = vld [vmem:[%s9149_s10 + $0x1f8] sm:$0xff]  ;;  %v7990_v59 = vld [vmem:[%s9149_s10 + $0x200] sm:$0xff] }
  0x62   :  { %9199 = vst [vmem:[#allocation68_spill] sm:$0xff] %v7980_v62  ;;  %9200 = vst [vmem:[#allocation69_spill] sm:$0xff] %v7985_v63  ;;  %v7995_v60 = vld [vmem:[%s9149_s10 + $0x208] sm:$0xff]  ;;  %v8000_v61 = vld [vmem:[%s9149_s10 + $0x210] sm:$0xff] }
  0x63   :  { %9201 = vst [vmem:[#allocation70_spill] sm:$0xff] %v7990_v59  ;;  %9202 = vst [vmem:[#allocation71_spill] sm:$0xff] %v7995_v60  ;;  %v8005_v62 = vld [vmem:[%s9149_s10 + $0x218] sm:$0xff]  ;;  %v8010_v63 = vld [vmem:[%s9149_s10 + $0x220] sm:$0xff] }
  0x64   :  { %9203 = vst [vmem:[#allocation72_spill] sm:$0xff] %v8000_v61  ;;  %9204 = vst [vmem:[#allocation73_spill] sm:$0xff] %v8005_v62  ;;  %v8015_v59 = vld [vmem:[%s9149_s10 + $0x228] sm:$0xff]  ;;  %v8020_v60 = vld [vmem:[%s9149_s10 + $0x230] sm:$0xff] }
  0x65   :  { %9205 = vst [vmem:[#allocation74_spill] sm:$0xff] %v8010_v63  ;;  %9206 = vst [vmem:[#allocation75_spill] sm:$0xff] %v8015_v59  ;;  %v8025_v61 = vld [vmem:[%s9149_s10 + $0x238] sm:$0xff]  ;;  %v8030_v62 = vld [vmem:[%s9149_s10 + $0x240] sm:$0xff] }
  0x66   :  { %9207 = vst [vmem:[#allocation76_spill] sm:$0xff] %v8020_v60  ;;  %9208 = vst [vmem:[#allocation77_spill] sm:$0xff] %v8025_v61  ;;  %v8035_v63 = vld [vmem:[%s9149_s10 + $0x248] sm:$0xff]  ;;  %v8040_v59 = vld [vmem:[%s9149_s10 + $0x250] sm:$0xff] }
  0x67   :  { %9209 = vst [vmem:[#allocation78_spill] sm:$0xff] %v8030_v62  ;;  %9210 = vst [vmem:[#allocation79_spill] sm:$0xff] %v8035_v63  ;;  %v8045_v60 = vld [vmem:[%s9149_s10 + $0x258] sm:$0xff]  ;;  %v8050_v61 = vld [vmem:[%s9149_s10 + $0x260] sm:$0xff] }
  0x68   :  { %9211 = vst [vmem:[#allocation80_spill] sm:$0xff] %v8040_v59  ;;  %9212 = vst [vmem:[#allocation81_spill] sm:$0xff] %v8045_v60  ;;  %v8055_v62 = vld [vmem:[%s9149_s10 + $0x268] sm:$0xff]  ;;  %v8060_v63 = vld [vmem:[%s9149_s10 + $0x270] sm:$0xff] }
  0x69   :  { %9213 = vst [vmem:[#allocation82_spill] sm:$0xff] %v8050_v61  ;;  %9214 = vst [vmem:[#allocation83_spill] sm:$0xff] %v8055_v62  ;;  %v8065_v59 = vld [vmem:[%s9149_s10 + $0x278] sm:$0xff]  ;;  %v8070_v60 = vld [vmem:[%s9149_s10 + $0x280] sm:$0xff] }
  0x6a   :  { %9215 = vst [vmem:[#allocation84_spill] sm:$0xff] %v8060_v63  ;;  %9216 = vst [vmem:[#allocation85_spill] sm:$0xff] %v8065_v59  ;;  %v8075_v61 = vld [vmem:[%s9149_s10 + $0x288] sm:$0xff]  ;;  %v8080_v62 = vld [vmem:[%s9149_s10 + $0x290] sm:$0xff] }
  0x6b   :  { %9217 = vst [vmem:[#allocation86_spill] sm:$0xff] %v8070_v60  ;;  %9218 = vst [vmem:[#allocation87_spill] sm:$0xff] %v8075_v61  ;;  %v8085_v63 = vld [vmem:[%s9149_s10 + $0x298] sm:$0xff]  ;;  %v8090_v59 = vld [vmem:[%s9149_s10 + $0x2a0] sm:$0xff] }
  0x6c   :  { %9219 = vst [vmem:[#allocation88_spill] sm:$0xff] %v8080_v62  ;;  %9220 = vst [vmem:[#allocation89_spill] sm:$0xff] %v8085_v63  ;;  %v8095_v60 = vld [vmem:[%s9149_s10 + $0x2a8] sm:$0xff]  ;;  %v8100_v61 = vld [vmem:[%s9149_s10 + $0x2b0] sm:$0xff] }
  0x6d   :  { %9221 = vst [vmem:[#allocation90_spill] sm:$0xff] %v8090_v59  ;;  %9222 = vst [vmem:[#allocation91_spill] sm:$0xff] %v8095_v60  ;;  %v8105_v62 = vld [vmem:[%s9149_s10 + $0x2b8] sm:$0xff]  ;;  %v8110_v63 = vld [vmem:[%s9149_s10 + $0x2c0] sm:$0xff] }
  0x6e   :  { %9223 = vst [vmem:[#allocation92_spill] sm:$0xff] %v8100_v61  ;;  %9224 = vst [vmem:[#allocation93_spill] sm:$0xff] %v8105_v62  ;;  %v8115_v59 = vld [vmem:[%s9149_s10 + $0x2c8] sm:$0xff]  ;;  %v8120_v60 = vld [vmem:[%s9149_s10 + $0x2d0] sm:$0xff] }
  0x6f   :  { %9225 = vst [vmem:[#allocation94_spill] sm:$0xff] %v8110_v63  ;;  %9226 = vst [vmem:[#allocation95_spill] sm:$0xff] %v8115_v59  ;;  %v8125_v61 = vld [vmem:[%s9149_s10 + $0x2d8] sm:$0xff]  ;;  %v8130_v62 = vld [vmem:[%s9149_s10 + $0x2e0] sm:$0xff] }
  0x70   :  { %9227 = vst [vmem:[#allocation96_spill] sm:$0xff] %v8120_v60  ;;  %9228 = vst [vmem:[#allocation97_spill] sm:$0xff] %v8125_v61  ;;  %v8135_v63 = vld [vmem:[%s9149_s10 + $0x2e8] sm:$0xff]  ;;  %v8140_v59 = vld [vmem:[%s9149_s10 + $0x2f0] sm:$0xff] }
  0x71   :  { %9229 = vst [vmem:[#allocation98_spill] sm:$0xff] %v8130_v62  ;;  %9230 = vst [vmem:[#allocation99_spill] sm:$0xff] %v8135_v63  ;;  %v8145_v60 = vld [vmem:[%s9149_s10 + $0x2f8] sm:$0xff]  ;;  %v8150_v61 = vld [vmem:[%s9149_s10 + $0x300] sm:$0xff] }
  0x72   :  { %9231 = vst [vmem:[#allocation100_spill] sm:$0xff] %v8140_v59  ;;  %9232 = vst [vmem:[#allocation101_spill] sm:$0xff] %v8145_v60  ;;  %v8155_v62 = vld [vmem:[%s9149_s10 + $0x308] sm:$0xff]  ;;  %v8160_v63 = vld [vmem:[%s9149_s10 + $0x310] sm:$0xff] }
  0x73   :  { %9233 = vst [vmem:[#allocation102_spill] sm:$0xff] %v8150_v61  ;;  %9234 = vst [vmem:[#allocation103_spill] sm:$0xff] %v8155_v62  ;;  %v8165_v59 = vld [vmem:[%s9149_s10 + $0x318] sm:$0xff]  ;;  %v8170_v60 = vld [vmem:[%s9149_s10 + $0x320] sm:$0xff] }
  0x74   :  { %9235 = vst [vmem:[#allocation104_spill] sm:$0xff] %v8160_v63  ;;  %9236 = vst [vmem:[#allocation105_spill] sm:$0xff] %v8165_v59  ;;  %v8175_v61 = vld [vmem:[%s9149_s10 + $0x328] sm:$0xff]  ;;  %v8180_v62 = vld [vmem:[%s9149_s10 + $0x330] sm:$0xff] }
  0x75   :  { %9237 = vst [vmem:[#allocation106_spill] sm:$0xff] %v8170_v60  ;;  %9238 = vst [vmem:[#allocation107_spill] sm:$0xff] %v8175_v61  ;;  %v8185_v63 = vld [vmem:[%s9149_s10 + $0x338] sm:$0xff]  ;;  %v8190_v59 = vld [vmem:[%s9149_s10 + $0x340] sm:$0xff] }
  0x76   :  { %9239 = vst [vmem:[#allocation108_spill] sm:$0xff] %v8180_v62  ;;  %9240 = vst [vmem:[#allocation109_spill] sm:$0xff] %v8185_v63  ;;  %v8195_v60 = vld [vmem:[%s9149_s10 + $0x348] sm:$0xff]  ;;  %v8200_v61 = vld [vmem:[%s9149_s10 + $0x350] sm:$0xff] }
  0x77   :  { %9241 = vst [vmem:[#allocation110_spill] sm:$0xff] %v8190_v59  ;;  %9242 = vst [vmem:[#allocation111_spill] sm:$0xff] %v8195_v60  ;;  %v8205_v62 = vld [vmem:[%s9149_s10 + $0x358] sm:$0xff]  ;;  %v8210_v63 = vld [vmem:[%s9149_s10 + $0x360] sm:$0xff] }
  0x78   :  { %9243 = vst [vmem:[#allocation112_spill] sm:$0xff] %v8200_v61  ;;  %9244 = vst [vmem:[#allocation113_spill] sm:$0xff] %v8205_v62  ;;  %v8215_v59 = vld [vmem:[%s9149_s10 + $0x368] sm:$0xff]  ;;  %v8220_v60 = vld [vmem:[%s9149_s10 + $0x370] sm:$0xff] }
  0x79   :  { %9245 = vst [vmem:[#allocation114_spill] sm:$0xff] %v8210_v63  ;;  %9246 = vst [vmem:[#allocation115_spill] sm:$0xff] %v8215_v59  ;;  %v8225_v61 = vld [vmem:[%s9149_s10 + $0x378] sm:$0xff] }
  0x7a   :  { %9247 = vst [vmem:[#allocation116_spill] sm:$0xff] %v8220_v60  ;;  %9248 = vst [vmem:[#allocation117_spill] sm:$0xff] %v8225_v61 }
  0x7b   :  { %351 = vsyncadd [#allocation6 + $0x1], 14336  ;;  %v8230_v63 = vld [vmem:[%s9150_s11] sm:$0xff]  ;;  %v8235_v59 = vld [vmem:[%s9150_s11 + $0x8] sm:$0xff] }
  0x7c   :  { %9249 = vst [vmem:[#allocation118_spill] sm:$0xff] %v8230_v63  ;;  %9250 = vst [vmem:[#allocation119_spill] sm:$0xff] %v8235_v59  ;;  %v8240_v60 = vld [vmem:[%s9150_s11 + $0x10] sm:$0xff]  ;;  %v8245_v61 = vld [vmem:[%s9150_s11 + $0x18] sm:$0xff] }
  0x7d   :  { %9251 = vst [vmem:[#allocation120_spill] sm:$0xff] %v8240_v60  ;;  %9252 = vst [vmem:[#allocation121_spill] sm:$0xff] %v8245_v61  ;;  %v8250_v62 = vld [vmem:[%s9150_s11 + $0x20] sm:$0xff]  ;;  %v8255_v63 = vld [vmem:[%s9150_s11 + $0x28] sm:$0xff] }
  0x7e   :  { %9253 = vst [vmem:[#allocation122_spill] sm:$0xff] %v8250_v62  ;;  %9254 = vst [vmem:[#allocation123_spill] sm:$0xff] %v8255_v63  ;;  %v8260_v59 = vld [vmem:[%s9150_s11 + $0x30] sm:$0xff]  ;;  %v8265_v60 = vld [vmem:[%s9150_s11 + $0x38] sm:$0xff] }
  0x7f   :  { %9255 = vst [vmem:[#allocation124_spill] sm:$0xff] %v8260_v59  ;;  %9256 = vst [vmem:[#allocation125_spill] sm:$0xff] %v8265_v60  ;;  %v8270_v61 = vld [vmem:[%s9150_s11 + $0x40] sm:$0xff]  ;;  %v8275_v62 = vld [vmem:[%s9150_s11 + $0x48] sm:$0xff] }
  0x80   :  { %9257 = vst [vmem:[#allocation126_spill] sm:$0xff] %v8270_v61  ;;  %9258 = vst [vmem:[#allocation127_spill] sm:$0xff] %v8275_v62  ;;  %v8280_v63 = vld [vmem:[%s9150_s11 + $0x50] sm:$0xff]  ;;  %v8285_v59 = vld [vmem:[%s9150_s11 + $0x58] sm:$0xff] }
  0x81   :  { %9259 = vst [vmem:[#allocation128_spill] sm:$0xff] %v8280_v63  ;;  %9260 = vst [vmem:[#allocation129_spill] sm:$0xff] %v8285_v59  ;;  %v8290_v60 = vld [vmem:[%s9150_s11 + $0x60] sm:$0xff]  ;;  %v8295_v61 = vld [vmem:[%s9150_s11 + $0x68] sm:$0xff] }
  0x82   :  { %9261 = vst [vmem:[#allocation130_spill] sm:$0xff] %v8290_v60  ;;  %9262 = vst [vmem:[#allocation131_spill] sm:$0xff] %v8295_v61  ;;  %v8300_v62 = vld [vmem:[%s9150_s11 + $0x70] sm:$0xff]  ;;  %v8305_v63 = vld [vmem:[%s9150_s11 + $0x78] sm:$0xff] }
  0x83   :  { %9263 = vst [vmem:[#allocation132_spill] sm:$0xff] %v8300_v62  ;;  %9264 = vst [vmem:[#allocation133_spill] sm:$0xff] %v8305_v63  ;;  %v8310_v59 = vld [vmem:[%s9150_s11 + $0x80] sm:$0xff]  ;;  %v8315_v60 = vld [vmem:[%s9150_s11 + $0x88] sm:$0xff] }
  0x84   :  { %9265 = vst [vmem:[#allocation134_spill] sm:$0xff] %v8310_v59  ;;  %9266 = vst [vmem:[#allocation135_spill] sm:$0xff] %v8315_v60  ;;  %v8320_v61 = vld [vmem:[%s9150_s11 + $0x90] sm:$0xff]  ;;  %v8325_v62 = vld [vmem:[%s9150_s11 + $0x98] sm:$0xff] }
  0x85   :  { %9267 = vst [vmem:[#allocation136_spill] sm:$0xff] %v8320_v61  ;;  %9268 = vst [vmem:[#allocation137_spill] sm:$0xff] %v8325_v62  ;;  %v8330_v63 = vld [vmem:[%s9150_s11 + $0xa0] sm:$0xff]  ;;  %v8335_v59 = vld [vmem:[%s9150_s11 + $0xa8] sm:$0xff] }
  0x86   :  { %9269 = vst [vmem:[#allocation138_spill] sm:$0xff] %v8330_v63  ;;  %9270 = vst [vmem:[#allocation139_spill] sm:$0xff] %v8335_v59  ;;  %v8340_v60 = vld [vmem:[%s9150_s11 + $0xb0] sm:$0xff]  ;;  %v8345_v61 = vld [vmem:[%s9150_s11 + $0xb8] sm:$0xff] }
  0x87   :  { %9271 = vst [vmem:[#allocation140_spill] sm:$0xff] %v8340_v60  ;;  %9272 = vst [vmem:[#allocation141_spill] sm:$0xff] %v8345_v61  ;;  %v8350_v62 = vld [vmem:[%s9150_s11 + $0xc0] sm:$0xff]  ;;  %v8355_v63 = vld [vmem:[%s9150_s11 + $0xc8] sm:$0xff] }
  0x88   :  { %9273 = vst [vmem:[#allocation142_spill] sm:$0xff] %v8350_v62  ;;  %9274 = vst [vmem:[#allocation143_spill] sm:$0xff] %v8355_v63  ;;  %v8360_v59 = vld [vmem:[%s9150_s11 + $0xd0] sm:$0xff]  ;;  %v8365_v60 = vld [vmem:[%s9150_s11 + $0xd8] sm:$0xff] }
  0x89   :  { %9275 = vst [vmem:[#allocation144_spill] sm:$0xff] %v8360_v59  ;;  %9276 = vst [vmem:[#allocation145_spill] sm:$0xff] %v8365_v60  ;;  %v8370_v61 = vld [vmem:[%s9150_s11 + $0xe0] sm:$0xff]  ;;  %v8375_v62 = vld [vmem:[%s9150_s11 + $0xe8] sm:$0xff] }
  0x8a   :  { %9277 = vst [vmem:[#allocation146_spill] sm:$0xff] %v8370_v61  ;;  %9278 = vst [vmem:[#allocation147_spill] sm:$0xff] %v8375_v62  ;;  %v8380_v63 = vld [vmem:[%s9150_s11 + $0xf0] sm:$0xff]  ;;  %v8385_v59 = vld [vmem:[%s9150_s11 + $0xf8] sm:$0xff] }
  0x8b   :  { %9279 = vst [vmem:[#allocation148_spill] sm:$0xff] %v8380_v63  ;;  %9280 = vst [vmem:[#allocation149_spill] sm:$0xff] %v8385_v59 }
  0x8c   :  { %456 = vsyncadd [#allocation6 + $0x2], 4096  ;;  %v462_v60 = vld [vmem:[#allocation7 + $0x8] sm:$0xff]  ;;  %v468_v58 = vld [vmem:[#allocation7 + $0x38] sm:$0xff]  ;;  %v9152_v54 = vmov 0.0   ;;  %vm889_vm0 = vcmask 261120  }
  0x8d   :  { %v6518_v57 = vpack.c.bf16 %v468_v58, %v462_v60  ;;  %v461_v61 = vld [vmem:[#allocation7] sm:$0xff]  ;;  %v467_v56 = vld [vmem:[#allocation7 + $0x30] sm:$0xff]  ;;  %v474_v55 = vld [vmem:[#allocation7 + $0x68] sm:$0xff]  ;;  %653 = vmatprep.mubr.f32.mxu0 %v9152_v54  ;;  %742 = vmatprep.mubr.f32.mxu1 %v9152_v54 }
  0x8e   :  { %v6520_v62 = vpack.c.bf16 %v467_v56, %v461_v61  ;;  %v480_v53 = vld [vmem:[#allocation7 + $0x98] sm:$0xff]  ;;  %v473_v63 = vld [vmem:[#allocation7 + $0x60] sm:$0xff]  ;;  %v479_v52 = vld [vmem:[#allocation7 + $0x90] sm:$0xff] }
  0x8f   :  { %6519 = vmatprep.subr.bf16.mxu0 %v6518_v57  ;;  %v6522_v51 = vpack.c.bf16 %v480_v53, %v474_v55  ;;  %v486_v50 = vld [vmem:[#allocation7 + $0xc8] sm:$0xff]  ;;  %v492_v59 = vld [vmem:[#allocation7 + $0xf8] sm:$0xff]  ;;  %v6524_v49 = vpack.c.bf16 %v479_v52, %v473_v63  ;;  %v485_v60 = vld [vmem:[#allocation7 + $0xc0] sm:$0xff] }
  0x90   :  { %6521 = vmatpush1.bf16.msra.mxu0 %v6520_v62  ;;  %v6526_v58 = vpack.c.bf16 %v492_v59, %v486_v50  ;;  %v491_v48 = vld [vmem:[#allocation7 + $0xf0] sm:$0xff]  ;;  %v498_v47 = vld [vmem:[#allocation7 + $0x128] sm:$0xff]  ;;  %v504_v46 = vld [vmem:[#allocation7 + $0x158] sm:$0xff] }
  0x91   :  { %6523 = vmatprep.subr.bf16.mxu0 %v6522_v51  ;;  %v6528_v45 = vpack.c.bf16 %v491_v48, %v485_v60  ;;  %v6530_v54 = vpack.c.bf16 %v504_v46, %v498_v47  ;;  %v497_v56 = vld [vmem:[#allocation7 + $0x120] sm:$0xff]  ;;  %v503_v61 = vld [vmem:[#allocation7 + $0x150] sm:$0xff]  ;;  %v510_v44 = vld [vmem:[#allocation7 + $0x188] sm:$0xff] }
  0x92   :  { %v516_v43 = vld [vmem:[#allocation7 + $0x1b8] sm:$0xff]  ;;  %v509_v57 = vld [vmem:[#allocation7 + $0x180] sm:$0xff]  ;;  %v6532_v53 = vpack.c.bf16 %v503_v61, %v497_v56  ;;  %v515_v55 = vld [vmem:[#allocation7 + $0x1b0] sm:$0xff] }
  0x93   :  { %v464_v62 = vld [vmem:[#allocation7 + $0x18] sm:$0xff]  ;;  %v470_v52 = vld [vmem:[#allocation7 + $0x48] sm:$0xff]  ;;  %v6534_v50 = vpack.c.bf16 %v516_v43, %v510_v44  ;;  %v463_v59 = vld [vmem:[#allocation7 + $0x10] sm:$0xff] }
  0x94   :  { %6525 = vmatpush1.bf16.msra.mxu0 %v6524_v49  ;;  %v6550_v51 = vpack.c.bf16 %v470_v52, %v464_v62  ;;  %v469_v63 = vld [vmem:[#allocation7 + $0x40] sm:$0xff]  ;;  %v476_v42 = vld [vmem:[#allocation7 + $0x78] sm:$0xff]  ;;  %v522_v49 = vld [vmem:[#allocation7 + $0x1e8] sm:$0xff] }
  0x95   :  { %6527 = vmatprep.subr.bf16.mxu0 %v6526_v58  ;;  %v528_v48 = vld [vmem:[#allocation7 + $0x218] sm:$0xff]  ;;  %v6552_v58 = vpack.c.bf16 %v469_v63, %v463_v59  ;;  %v482_v46 = vld [vmem:[#allocation7 + $0xa8] sm:$0xff]  ;;  %v475_v60 = vld [vmem:[#allocation7 + $0x70] sm:$0xff] }
  0x96   :  { %6551 = vmatprep.subr.bf16.mxu1 %v6550_v51  ;;  %v6554_v47 = vpack.c.bf16 %v482_v46, %v476_v42  ;;  %v481_v41 = vld [vmem:[#allocation7 + $0xa0] sm:$0xff]  ;;  %v488_v61 = vld [vmem:[#allocation7 + $0xd8] sm:$0xff]  ;;  %v494_v40 = vld [vmem:[#allocation7 + $0x108] sm:$0xff]  ;;  %v6538_v43 = vpack.c.bf16 %v528_v48, %v522_v49 }
  0x97   :  { %6553 = vmatpush1.bf16.msra.mxu1 %v6552_v58  ;;  %v6556_v56 = vpack.c.bf16 %v481_v41, %v475_v60  ;;  %v521_v44 = vld [vmem:[#allocation7 + $0x1e0] sm:$0xff]  ;;  %v6558_v62 = vpack.c.bf16 %v494_v40, %v488_v61  ;;  %v487_v52 = vld [vmem:[#allocation7 + $0xd0] sm:$0xff]  ;;  %v534_v39 = vld [vmem:[#allocation7 + $0x248] sm:$0xff] }
  0x98   :  { %6529 = vmatpush1.bf16.msra.mxu0 %v6528_v45  ;;  %v6536_v45 = vpack.c.bf16 %v515_v55, %v509_v57  ;;  %6555 = vmatprep.subr.bf16.mxu1 %v6554_v47  ;;  %v540_v59 = vld [vmem:[#allocation7 + $0x278] sm:$0xff]  ;;  %v493_v63 = vld [vmem:[#allocation7 + $0x100] sm:$0xff]  ;;  %v506_v42 = vld [vmem:[#allocation7 + $0x168] sm:$0xff] }
  0x99   :  { %6531 = vmatprep.subr.bf16.mxu0 %v6530_v54  ;;  %v527_v54 = vld [vmem:[#allocation7 + $0x210] sm:$0xff]  ;;  %v500_v51 = vld [vmem:[#allocation7 + $0x138] sm:$0xff]  ;;  %v6560_v41 = vpack.c.bf16 %v493_v63, %v487_v52  ;;  %v6542_v55 = vpack.c.bf16 %v540_v59, %v534_v39  ;;  %v505_v58 = vld [vmem:[#allocation7 + $0x160] sm:$0xff] }
  0x9a   :  { %v6540_v46 = vpack.c.bf16 %v527_v54, %v521_v44  ;;  %v539_v57 = vld [vmem:[#allocation7 + $0x270] sm:$0xff]  ;;  %v6562_v49 = vpack.c.bf16 %v506_v42, %v500_v51  ;;  %v552_v40 = vld [vmem:[#allocation7 + $0x2d8] sm:$0xff]  ;;  %v518_v60 = vld [vmem:[#allocation7 + $0x1c8] sm:$0xff] }
  0x9b   :  { %6557 = vmatpush1.bf16.msra.mxu1 %v6556_v56  ;;  %v499_v48 = vld [vmem:[#allocation7 + $0x130] sm:$0xff]  ;;  %v512_v47 = vld [vmem:[#allocation7 + $0x198] sm:$0xff]  ;;  %v545_v38 = vld [vmem:[#allocation7 + $0x2a0] sm:$0xff] }
  0x9c   :  { %6533 = vmatpush1.bf16.msra.mxu0 %v6532_v53  ;;  %v533_v53 = vld [vmem:[#allocation7 + $0x240] sm:$0xff]  ;;  %6559 = vmatprep.subr.bf16.mxu1 %v6558_v62  ;;  %v551_v37 = vld [vmem:[#allocation7 + $0x2d0] sm:$0xff]  ;;  %v466_v56 = vld [vmem:[#allocation7 + $0x28] sm:$0xff] }
  0x9d   :  { %6535 = vmatprep.subr.bf16.mxu0 %v6534_v50  ;;  %v546_v50 = vld [vmem:[#allocation7 + $0x2a8] sm:$0xff]  ;;  %v6544_v61 = vpack.c.bf16 %v539_v57, %v533_v53  ;;  %v511_v39 = vld [vmem:[#allocation7 + $0x190] sm:$0xff]  ;;  %v517_v54 = vld [vmem:[#allocation7 + $0x1c0] sm:$0xff]  ;;  %v6548_v63 = vpack.c.bf16 %v551_v37, %v545_v38 }
  0x9e   :  { %v6546_v44 = vpack.c.bf16 %v552_v40, %v546_v50  ;;  %v472_v62 = vld [vmem:[#allocation7 + $0x58] sm:$0xff]  ;;  %v530_v59 = vld [vmem:[#allocation7 + $0x228] sm:$0xff]  ;;  %v6568_v51 = vpack.c.bf16 %v517_v54, %v511_v39  ;;  %v471_v53 = vld [vmem:[#allocation7 + $0x50] sm:$0xff]  ;;  %v9281_v54 = vmov 0.0  }
  0x9f   :  { %6561 = vmatpush1.bf16.msra.mxu1 %v6560_v41  ;;  %v524_v52 = vld [vmem:[#allocation7 + $0x1f8] sm:$0xff]  ;;  %v6582_v42 = vpack.c.bf16 %v472_v62, %v466_v56  ;;  %v478_v57 = vld [vmem:[#allocation7 + $0x88] sm:$0xff]  ;;  %v523_v50 = vld [vmem:[#allocation7 + $0x1f0] sm:$0xff] }
  0xa0   :  { %6537 = vmatpush1.bf16.msra.mxu0 %v6536_v45  ;;  %v6564_v45 = vpack.c.bf16 %v505_v58, %v499_v48  ;;  %6563 = vmatprep.subr.bf16.mxu1 %v6562_v49  ;;  %v6570_v41 = vpack.c.bf16 %v530_v59, %v524_v52  ;;  %v529_v49 = vld [vmem:[#allocation7 + $0x220] sm:$0xff]  ;;  %v536_v48 = vld [vmem:[#allocation7 + $0x258] sm:$0xff]  ;;  %v542_v58 = vld [vmem:[#allocation7 + $0x288] sm:$0xff] }
  0xa1   :  { %6539 = vmatprep.subr.bf16.mxu0 %v6538_v43  ;;  %v6566_v43 = vpack.c.bf16 %v518_v60, %v512_v47  ;;  %v8392_v40 = vld [vmem:[%s9139_s0] sm:$0xff]  ;;  %v483_v60 = vld [vmem:[#allocation7 + $0xb0] sm:$0xff]  ;;  %v6574_v56 = vpack.c.bf16 %v542_v58, %v536_v48  ;;  %v8399_v62 = vld [vmem:[%s9139_s0 + $0x8] sm:$0xff] }
  0xa2   :  { %v477_v47 = vld [vmem:[#allocation7 + $0x80] sm:$0xff]  ;;  %v514_v48 = vld [vmem:[#allocation7 + $0x1a8] sm:$0xff]  ;;  %v520_v58 = vld [vmem:[#allocation7 + $0x1d8] sm:$0xff] }
  0xa3   :  { %6565 = vmatpush1.bf16.msra.mxu1 %v6564_v45  ;;  %v6572_v45 = vpack.c.bf16 %v529_v49, %v523_v50  ;;  %v541_v39 = vld [vmem:[#allocation7 + $0x280] sm:$0xff]  ;;  %v6588_v52 = vpack.c.bf16 %v483_v60, %v477_v47  ;;  %v507_v49 = vld [vmem:[#allocation7 + $0x170] sm:$0xff]  ;;  %v6598_v47 = vpack.c.bf16 %v520_v58, %v514_v48  ;;  %v994_v33 = vld [vmem:[#allocation11 + $0x38] sm:$0xff] }
  0xa4   :  { %6541 = vmatpush1.bf16.msra.mxu0 %v6540_v46  ;;  %v465_v46 = vld [vmem:[#allocation7 + $0x20] sm:$0xff]  ;;  %6567 = vmatprep.subr.bf16.mxu1 %v6566_v43  ;;  %v535_v43 = vld [vmem:[#allocation7 + $0x250] sm:$0xff]  ;;  %v996_v14 = vld [vmem:[#allocation11 + $0x48] sm:$0xff] }
  0xa5   :  { %6543 = vmatprep.subr.bf16.mxu0 %v6542_v55  ;;  %v484_v55 = vld [vmem:[#allocation7 + $0xb8] sm:$0xff]  ;;  %v6584_v37 = vpack.c.bf16 %v471_v53, %v465_v46  ;;  %v502_v46 = vld [vmem:[#allocation7 + $0x148] sm:$0xff]  ;;  %v501_v50 = vld [vmem:[#allocation7 + $0x140] sm:$0xff] }
  0xa6   :  { %v6586_v38 = vpack.c.bf16 %v484_v55, %v478_v57  ;;  %v508_v53 = vld [vmem:[#allocation7 + $0x178] sm:$0xff]  ;;  %v8406_v57 = vld [vmem:[%s9139_s0 + $0x10] sm:$0xff]  ;;  %v513_v60 = vld [vmem:[#allocation7 + $0x1a0] sm:$0xff] }
  0xa7   :  { %6569 = vmatpush1.bf16.msra.mxu1 %v6568_v51  ;;  %v495_v51 = vld [vmem:[#allocation7 + $0x110] sm:$0xff]  ;;  %v6594_v55 = vpack.c.bf16 %v508_v53, %v502_v46  ;;  %v538_v46 = vld [vmem:[#allocation7 + $0x268] sm:$0xff]  ;;  %v544_v53 = vld [vmem:[#allocation7 + $0x298] sm:$0xff] }
  0xa8   :  { %6545 = vmatpush1.bf16.msra.mxu0 %v6544_v61  ;;  %v490_v61 = vld [vmem:[#allocation7 + $0xe8] sm:$0xff]  ;;  %6571 = vmatprep.subr.bf16.mxu1 %v6570_v41  ;;  %v543_v48 = vld [vmem:[#allocation7 + $0x290] sm:$0xff]  ;;  %v995_v15 = vld [vmem:[#allocation11 + $0x40] sm:$0xff] }
  0xa9   :  { %6547 = vmatprep.subr.bf16.mxu0 %v6546_v44  ;;  %v496_v44 = vld [vmem:[#allocation7 + $0x118] sm:$0xff]  ;;  %v993_v34 = vld [vmem:[#allocation11 + $0x30] sm:$0xff] }
  0xaa   :  { %v6590_v59 = vpack.c.bf16 %v496_v44, %v490_v61  ;;  %v519_v61 = vld [vmem:[#allocation7 + $0x1d0] sm:$0xff]  ;;  %v532_v44 = vld [vmem:[#allocation7 + $0x238] sm:$0xff]  ;;  %v6674_v32 = vpack.c.bf16 %v994_v33, %v993_v34  ;;  %v1395_v34 = vld [vmem:[#allocation11 + $0x100] sm:$0xff] }
  0xab   :  { %6573 = vmatpush1.bf16.msra.mxu1 %v6572_v45  ;;  %v526_v45 = vld [vmem:[#allocation7 + $0x208] sm:$0xff] }
  0xac   :  { %6549 = vmatpush1.bf16.msra.mxu0 %v6548_v63  ;;  %v489_v63 = vld [vmem:[#allocation7 + $0xe0] sm:$0xff]  ;;  %6575 = vmatprep.subr.bf16.mxu1 %v6574_v56  ;;  %v6600_v56 = vpack.c.bf16 %v519_v61, %v513_v60  ;;  %v556_v60 = vld [vmem:[#allocation7 + $0x2f8] sm:$0xff] }
  0xad   :  { %6583 = vmatprep.subr.bf16.mxu0 %v6582_v42  ;;  %v6576_v42 = vpack.c.bf16 %v541_v39, %v535_v43  ;;  %v6592_v41 = vpack.c.bf16 %v495_v51, %v489_v63  ;;  %v6602_v43 = vpack.c.bf16 %v532_v44, %v526_v45  ;;  %v525_v39 = vld [vmem:[#allocation7 + $0x200] sm:$0xff]  ;;  %v548_v63 = vld [vmem:[#allocation7 + $0x2b8] sm:$0xff]  ;;  %v554_v51 = vld [vmem:[#allocation7 + $0x2e8] sm:$0xff] }
  0xae   :  { %v549_v45 = vld [vmem:[#allocation7 + $0x2c0] sm:$0xff]  ;;  %v555_v44 = vld [vmem:[#allocation7 + $0x2f0] sm:$0xff] }
  0xaf   :  { %654 = vmatmul.mubr.f32.vlgmr.msra.gmra.mrb[0].mxu0 %v8392_v40  ;;  %6577 = vmatpush1.bf16.msra.mxu1 %v6576_v42  ;;  %v6578_v42 = vpack.c.bf16 %v554_v51, %v548_v63 }
  0xb0   :  { %659 = vmatprep.mubr.f32.mxu0 %v9281_v54  ;;  %6585 = vmatpush1.bf16.msra.mxu0 %v6584_v37  ;;  %v460_v37 = vld [vmem:[%s9139_s0 + $0x18] sm:$0xff] }
  0xb1   :  { %6587 = vmatprep.subr.bf16.mxu0 %v6586_v38  ;;  %v6596_v38 = vpack.c.bf16 %v507_v49, %v501_v50  ;;  %v553_v50 = vld [vmem:[#allocation7 + $0x2e0] sm:$0xff]  ;;  %6579 = vmatprep.subr.bf16.mxu1 %v6578_v42 }
  0xb2   :  { %v537_v49 = vld [vmem:[#allocation7 + $0x260] sm:$0xff] }
  0xb3   :  { %660 = vmatmul.mubr.f32.gmra.mrb[2].mxu0 %v8399_v62 }
  0xb4   :  { %665 = vmatprep.mubr.f32.mxu0 %v9281_v54  ;;  %6589 = vmatpush1.bf16.msra.mxu0 %v6588_v52  ;;  %v531_v52 = vld [vmem:[#allocation7 + $0x230] sm:$0xff] }
  0xb5   :  { %6591 = vmatprep.subr.bf16.mxu0 %v6590_v59  ;;  %v6604_v59 = vpack.c.bf16 %v531_v52, %v525_v39  ;;  %v559_v39 = vlaneseq }
  0xb7   :  { %666 = vmatmul.mubr.f32.gmra.mrb[4].mxu0 %v8406_v57  ;;  %v8428_v52 = vshrl.u32 %v559_v39, 7  ;;  %v887_v39 = vld [vmem:[#allocation9 + $0x50] sm:$0xff] }
  0xb8   :  { %671 = vmatprep.mubr.f32.mxu0 %v9281_v54  ;;  %6593 = vmatpush1.bf16.msra.mxu0 %v6592_v41  ;;  %v547_v41 = vld [vmem:[#allocation7 + $0x2b0] sm:$0xff] }
  0xb9   :  { %6595 = vmatprep.subr.bf16.mxu0 %v6594_v55  ;;  %v6606_v55 = vpack.c.bf16 %v544_v53, %v538_v46  ;;  %v6580_v58 = vpack.c.bf16 %v553_v50, %v547_v41 }
  0xbb   :  { %672 = vmatmul.mubr.f32.gmra.mrb[6].mxu0 %v460_v37  ;;  %6581 = vmatpush1.bf16.msra.mxu1 %v6580_v58 }
  0xbc   :  { %6597 = vmatpush1.bf16.msra.mxu0 %v6596_v38  ;;  %831 = vmatprep.mubr.f32.mxu0 %v9281_v54  ;;  %v6608_v38 = vpack.c.bf16 %v543_v48, %v537_v49 }
  0xbd   :  { %6599 = vmatprep.subr.bf16.mxu0 %v6598_v47  ;;  %v550_v47 = vld [vmem:[#allocation7 + $0x2c8] sm:$0xff] }
  0xbe   :  { %v6610_v61 = vpack.c.bf16 %v556_v60, %v550_v47  ;;  %743 = vmatmul.mubr.f32.vlgmr.msra.gmra.mrb[0].mxu1 %v8392_v40 }
  0xbf   :  { %748 = vmatprep.mubr.f32.mxu1 %v9281_v54 }
  0xc0   :  { %6601 = vmatpush1.bf16.msra.mxu0 %v6600_v56  ;;  %v6612_v56 = vpack.c.bf16 %v555_v44, %v549_v45 }
  0xc1   :  { %6603 = vmatprep.subr.bf16.mxu0 %v6602_v43  ;;  %v885_v43 = vld [vmem:[#allocation9 + $0x40] sm:$0xff] }
  0xc2   :  { %749 = vmatmul.mubr.f32.gmra.mrb[2].mxu1 %v8399_v62 }
  0xc3   :  { %754 = vmatprep.mubr.f32.mxu1 %v9281_v54 }
  0xc4   :  { %6605 = vmatpush1.bf16.msra.mxu0 %v6604_v59  ;;  %v8434_v59 = vld [vmem:[%s9141_s2] sm:$0x3f] }
  0xc5   :  { %6607 = vmatprep.subr.bf16.mxu0 %v6606_v55 }
  0xc6   :  { %755 = vmatmul.mubr.f32.gmra.mrb[4].mxu1 %v8406_v57 }
  0xc7   :  { %760 = vmatprep.mubr.f32.mxu1 %v9281_v54 }
  0xc8   :  { %6609 = vmatpush1.bf16.msra.mxu0 %v6608_v38 }
  0xc9   :  { %6611 = vmatprep.subr.bf16.mxu0 %v6610_v61 }
  0xca   :  { %761 = vmatmul.mubr.f32.gmra.mrb[6].mxu1 %v460_v37 }
  0xcb   :  { %5610 = vmatprep.mubr.msk.f32.mxu1 %vm889_vm0, %v885_v43  ;;  %v886_v43 = vld [vmem:[#allocation9 + $0x48] sm:$0xff] }
  0xcc   :  { %6613 = vmatpush1.bf16.msra.mxu0 %v6612_v56 }
  0xcf   :  { %832 = vmatmul.mubr.f32.vlgmr.msra.gmra.mrb[8].mxu0 %v8392_v40  ;;  %v1293_v40 = vld [vmem:[#allocation9 + $0x80] sm:$0xff] }
  0xd0   :  { %837 = vmatprep.mubr.f32.mxu0 %v9281_v54 }
  0xd3   :  { %838 = vmatmul.mubr.f32.gmra.mrb[10].mxu0 %v8399_v62  ;;  %v561_v62 = vsub.s32 0, %v8428_v52 }
  0xd4   :  { %843 = vmatprep.mubr.f32.mxu0 %v9281_v54 }
  0xd7   :  { %844 = vmatmul.mubr.f32.gmra.mrb[12].mxu0 %v8406_v57  ;;  %v565_v57 = vsub.s32 1, %v8428_v52 }
  0xd8   :  { %849 = vmatprep.mubr.f32.mxu0 %v9281_v54  ;;  %v562_v54 = vrot.slane %v8434_v59, %v561_v62  ;;  %v1295_v62 = vld [vmem:[#allocation9 + $0x90] sm:$0xff] }
  0xd9   :  { %v566_v42 = vrot.slane %v8434_v59, %v565_v57  ;;  %v1106_v57 = vld [vmem:[#allocation11 + $0x80] sm:$0xff] }
  0xdb   :  { %850 = vmatmul.mubr.f32.gmra.mrb[14].mxu0 %v460_v37 }
  0xdc   :  { %5714 = vmatprep.mubr.msk.f32.mxu0 %vm889_vm0, %v1293_v40  ;;  %v1294_v40 = vld [vmem:[#allocation9 + $0x88] sm:$0xff] }
 0x182   :  { %v655_v63 = vpop.f32.mrb[0].mxu0 }
 0x183   :  { %v8438_v51 = vadd.f32 %v655_v63, %v562_v54  ;;  %v657_v37 = vpop.f32.mrb[1].mxu0  ;;  %v1107_v63 = vld [vmem:[#allocation11 + $0x88] sm:$0xff] }
 0x184   :  { %v658_v55 = vadd.f32 %v657_v37, %v566_v42  ;;  %v1296_v37 = vld [vmem:[#allocation9 + $0x98] sm:$0xff] }
 0x185   :  { %9282 = vst [vmem:[#allocation150_spill] sm:$0xff] %v8438_v51 }
 0x186   :  { %v661_v46 = vpop.f32.mrb[2].mxu0 }
 0x187   :  { %v8441_v53 = vadd.f32 %v661_v46, %v562_v54  ;;  %v663_v41 = vpop.f32.mrb[3].mxu0  ;;  %v6630_v46 = vpack.c.bf16 %v1107_v63, %v1106_v57  ;;  %v1116_v57 = vld [vmem:[#allocation11 + $0xd0] sm:$0xff]  ;;  %v1117_v63 = vld [vmem:[#allocation11 + $0xd8] sm:$0xff] }
 0x188   :  { %v664_v50 = vadd.f32 %v663_v41, %v566_v42  ;;  %v1108_v41 = vld [vmem:[#allocation11 + $0x90] sm:$0xff] }
 0x189   :  { %9283 = vst [vmem:[#allocation151_spill] sm:$0xff] %v8441_v53 }
 0x18a   :  { %v6614_v49 = vpack.c.bf16 %v664_v50, %v658_v55  ;;  %v667_v48 = vpop.f32.mrb[4].mxu0  ;;  %v1109_v55 = vld [vmem:[#allocation11 + $0x98] sm:$0xff]  ;;  %v1005_v50 = vld [vmem:[#allocation9 + $0x68] sm:$0xff] }
 0x18b   :  { %v8443_v58 = vadd.f32 %v667_v48, %v562_v54  ;;  %v669_v38 = vpop.f32.mrb[5].mxu0  ;;  %v6634_v48 = vpack.c.bf16 %v1109_v55, %v1108_v41  ;;  %v573_v41 = vsub.s32 3, %v8428_v52 }
 0x18c   :  { %6615 = vmatprep.subr.bf16.mxu1 %v6614_v49  ;;  %6695 = vmatprep.subr.bf16.mxu0 %v6614_v49  ;;  %v670_v45 = vadd.f32 %v669_v38, %v566_v42  ;;  %v1110_v38 = vld [vmem:[#allocation11 + $0xa0] sm:$0xff] }
 0x18d   :  { %9284 = vst [vmem:[#allocation152_spill] sm:$0xff] %v8443_v58  ;;  %6617 = vmatpush3.bf16.msra.mxu1 %v6614_v49  ;;  %6697 = vmatpush3.bf16.msra.mxu0 %v6614_v49  ;;  %v574_v55 = vrot.slane %v8434_v59, %v573_v41  ;;  %v581_v41 = vsub.s32 5, %v8428_v52 }
 0x18e   :  { %v673_v47 = vpop.f32.mrb[6].mxu0 }
 0x18f   :  { %v8445_v60 = vadd.f32 %v673_v47, %v562_v54  ;;  %v675_v61 = vpop.f32.mrb[7].mxu0  ;;  %v888_v54 = vld [vmem:[#allocation9 + $0x58] sm:$0xff]  ;;  %v1111_v47 = vld [vmem:[#allocation11 + $0xa8] sm:$0xff] }
 0x190   :  { %v676_v44 = vadd.f32 %v675_v61, %v566_v42  ;;  %v1004_v42 = vld [vmem:[#allocation9 + $0x60] sm:$0xff]  ;;  %v1007_v61 = vld [vmem:[#allocation9 + $0x78] sm:$0xff] }
 0x191   :  { %9285 = vst [vmem:[#allocation153_spill] sm:$0xff] %v8445_v60 }
 0x192   :  { %v6618_v56 = vpack.c.bf16 %v676_v44, %v670_v45  ;;  %v6638_v45 = vpack.c.bf16 %v1111_v47, %v1110_v38  ;;  %v1112_v44 = vld [vmem:[#allocation11 + $0xb0] sm:$0xff] }
 0x194   :  { %6619 = vmatprep.subr.bf16.mxu1 %v6618_v56  ;;  %6699 = vmatprep.subr.bf16.mxu0 %v6618_v56 }
 0x195   :  { %6621 = vmatpush3.bf16.msra.mxu1 %v6618_v56  ;;  %6701 = vmatpush3.bf16.msra.mxu0 %v6618_v56 }
 0x196   :  { %6623 = vmatprep.subr.bf16.mxu1 %v6614_v49 }
 0x198   :  { %5611 = vmatmul.mubr.msk.f32.vlgmr.msra.gmra.mrb[8].mxu1 %vm889_vm0, %v886_v43  ;;  %5715 = vmatmul.mubr.msk.f32.vlgmr.msra.gmra.mrb[16].mxu0 %vm889_vm0, %v1294_v40  ;;  %v1113_v43 = vld [vmem:[#allocation11 + $0xb8] sm:$0xff]  ;;  %v1114_v40 = vld [vmem:[#allocation11 + $0xc0] sm:$0xff] }
 0x199   :  { %6625 = vmatpush3.bf16.msra.mxu1 %v6614_v49  ;;  %5613 = vmatprep.mubr.msk.f32.mxu1 %vm889_vm0, %v887_v39  ;;  %v1006_v49 = vld [vmem:[#allocation9 + $0x70] sm:$0xff]  ;;  %v1115_v39 = vld [vmem:[#allocation11 + $0xc8] sm:$0xff] }
 0x19a   :  { %6627 = vmatprep.subr.bf16.mxu1 %v6618_v56  ;;  %5717 = vmatprep.mubr.msk.f32.mxu0 %vm889_vm0, %v1295_v62  ;;  %v6646_v62 = vpack.c.bf16 %v1115_v39, %v1114_v40 }
 0x19c   :  { %5614 = vmatmul.mubr.msk.f32.gmra.mrb[10].mxu1 %vm889_vm0, %v888_v54  ;;  %5718 = vmatmul.mubr.msk.f32.gmra.mrb[18].mxu0 %vm889_vm0, %v1296_v37  ;;  %v6650_v54 = vpack.c.bf16 %v1117_v63, %v1116_v57  ;;  %v1118_v37 = vld [vmem:[#allocation11 + $0xe0] sm:$0xff]  ;;  %v1121_v57 = vld [vmem:[#allocation11 + $0xf8] sm:$0xff] }
 0x19d   :  { %6629 = vmatpush3.bf16.msra.mxu1 %v6618_v56  ;;  %5624 = vmatprep.mubr.msk.f32.mxu1 %vm889_vm0, %v1004_v42  ;;  %v6642_v56 = vpack.c.bf16 %v1113_v43, %v1112_v44  ;;  %v1119_v42 = vld [vmem:[#allocation11 + $0xe8] sm:$0xff] }
 0x19e   :  { %6631 = vmatprep.subr.bf16.mxu1 %v6630_v46 }
 0x1a0   :  { %5625 = vmatmul.mubr.msk.f32.vlgmr.msra.gmra.mrb[12].mxu1 %vm889_vm0, %v1005_v50  ;;  %v8459_v50 = vpop.f32.mrb[0].mxu1 }
 0x1a1   :  { %5627 = vmatprep.mubr.msk.f32.mxu1 %vm889_vm0, %v1006_v49  ;;  %6633 = vmatpush3.bf16.msra.mxu1 %v6630_v46  ;;  %v6654_v46 = vpack.c.bf16 %v1119_v42, %v1118_v37  ;;  %v746_v49 = vpop.f32.mrb[1].mxu1  ;;  %v988_v37 = vld [vmem:[#allocation11 + $0x8] sm:$0xff] }
 0x1a2   :  { %6635 = vmatprep.subr.bf16.mxu1 %v6634_v48  ;;  %v8463_v38 = vpop.f32.mrb[2].mxu1 }
 0x1a3   :  { %v752_v47 = vpop.f32.mrb[3].mxu1 }
 0x1a4   :  { %5628 = vmatmul.mubr.msk.f32.gmra.mrb[14].mxu1 %vm889_vm0, %v1007_v61  ;;  %v8465_v61 = vadd.f32 %v752_v47, %v574_v55  ;;  %v833_v47 = vpop.f32.mrb[8].mxu0 }
 0x1a5   :  { %6637 = vmatpush3.bf16.msra.mxu1 %v6634_v48  ;;  %v8461_v48 = vadd.f32 %v746_v49, %v574_v55 }
 0x1a6   :  { %6639 = vmatprep.subr.bf16.mxu1 %v6638_v45 }
 0x1a9   :  { %6641 = vmatpush3.bf16.msra.mxu1 %v6638_v45  ;;  %v8467_v45 = vpop.f32.mrb[4].mxu1 }
 0x1aa   :  { %6643 = vmatprep.subr.bf16.mxu1 %v6642_v56  ;;  %v758_v44 = vpop.f32.mrb[5].mxu1 }
 0x1ab   :  { %v8469_v43 = vadd.f32 %v758_v44, %v574_v55  ;;  %v582_v44 = vrot.slane %v8434_v59, %v581_v41 }
 0x1ad   :  { %6645 = vmatpush3.bf16.msra.mxu1 %v6642_v56  ;;  %v8471_v56 = vpop.f32.mrb[6].mxu1 }
 0x1ae   :  { %6647 = vmatprep.subr.bf16.mxu1 %v6646_v62  ;;  %v764_v40 = vpop.f32.mrb[7].mxu1 }
 0x1af   :  { %v8473_v39 = vadd.f32 %v764_v40, %v574_v55  ;;  %v835_v55 = vpop.f32.mrb[9].mxu0 }
 0x1b0   :  { %v8481_v60 = vadd.f32 %v835_v55, %v582_v44 }
 0x1b1   :  { %6649 = vmatpush3.bf16.msra.mxu1 %v6646_v62  ;;  %v1120_v62 = vld [vmem:[#allocation11 + $0xf0] sm:$0xff] }
 0x1b2   :  { %6651 = vmatprep.subr.bf16.mxu1 %v6650_v54  ;;  %v6658_v63 = vpack.c.bf16 %v1121_v57, %v1120_v62  ;;  %9287 = vst [vmem:[#allocation155_spill] sm:$0xff] %v8481_v60  ;;  %v839_v62 = vpop.f32.mrb[10].mxu0 }
 0x1b3   :  { %v841_v57 = vpop.f32.mrb[11].mxu0 }
 0x1b5   :  { %6653 = vmatpush3.bf16.msra.mxu1 %v6650_v54  ;;  %v987_v54 = vld [vmem:[#allocation11] sm:$0xff] }
 0x1b6   :  { %6655 = vmatprep.subr.bf16.mxu1 %v6654_v46  ;;  %v6662_v42 = vpack.c.bf16 %v988_v37, %v987_v54  ;;  %v8485_v54 = vadd.f32 %v841_v57, %v582_v44  ;;  %v845_v37 = vpop.f32.mrb[12].mxu0 }
 0x1b7   :  { %v847_v58 = vpop.f32.mrb[13].mxu0 }
 0x1b8   :  { %9289 = vst [vmem:[#allocation157_spill] sm:$0xff] %v8485_v54  ;;  %v8489_v51 = vadd.f32 %v847_v58, %v582_v44  ;;  %v989_v58 = vld [vmem:[#allocation11 + $0x10] sm:$0xff] }
 0x1b9   :  { %6657 = vmatpush3.bf16.msra.mxu1 %v6654_v46  ;;  %v577_v46 = vsub.s32 4, %v8428_v52 }
 0x1ba   :  { %6659 = vmatprep.subr.bf16.mxu1 %v6658_v63  ;;  %9291 = vst [vmem:[#allocation159_spill] sm:$0xff] %v8489_v51  ;;  %v990_v51 = vld [vmem:[#allocation11 + $0x18] sm:$0xff] }
 0x1bb   :  { %v578_v49 = vrot.slane %v8434_v59, %v577_v46  ;;  %v851_v46 = vpop.f32.mrb[14].mxu0 }
 0x1bc   :  { %v853_v41 = vpop.f32.mrb[15].mxu0 }
 0x1bd   :  { %6661 = vmatpush3.bf16.msra.mxu1 %v6658_v63  ;;  %v8479_v40 = vadd.f32 %v833_v47, %v578_v49  ;;  %v8483_v63 = vadd.f32 %v839_v62, %v578_v49  ;;  %v8487_v53 = vadd.f32 %v845_v37, %v578_v49  ;;  %v8491_v36 = vadd.f32 %v851_v46, %v578_v49 }
 0x1be   :  { %6663 = vmatprep.subr.bf16.mxu1 %v6662_v42  ;;  %v8493_v47 = vadd.f32 %v853_v41, %v582_v44  ;;  %v991_v44 = vld [vmem:[#allocation11 + $0x20] sm:$0xff]  ;;  %v992_v41 = vld [vmem:[#allocation11 + $0x28] sm:$0xff] }
 0x1bf   :  { %9286 = vst [vmem:[#allocation154_spill] sm:$0xff] %v8479_v40  ;;  %9288 = vst [vmem:[#allocation156_spill] sm:$0xff] %v8483_v63  ;;  %v6670_v35 = vpack.c.bf16 %v992_v41, %v991_v44  ;;  %v1000_v44 = vld [vmem:[#allocation11 + $0x68] sm:$0xff]  ;;  %v1399_v41 = vld [vmem:[#allocation11 + $0x120] sm:$0xff] }
 0x1c0   :  { %9290 = vst [vmem:[#allocation158_spill] sm:$0xff] %v8487_v53  ;;  %9292 = vst [vmem:[#allocation160_spill] sm:$0xff] %v8491_v36  ;;  %v6666_v36 = vpack.c.bf16 %v990_v51, %v989_v58  ;;  %v6678_v51 = vpack.c.bf16 %v996_v14, %v995_v15  ;;  %v997_v58 = vld [vmem:[#allocation11 + $0x50] sm:$0xff] }
 0x1c1   :  { %9293 = vst [vmem:[#allocation161_spill] sm:$0xff] %v8493_v47  ;;  %v1397_v15 = vld [vmem:[#allocation11 + $0x110] sm:$0xff] }
 0x26b   :  { %v5612_v55 = vpop.f32.mrb[8].mxu1  ;;  %v8495_v60 = vpop.f32.mrb[16].mxu0 }
 0x26c   :  { %v968_v40 = vpop.f32.mrb[9].mxu1  ;;  %v8497_v62 = vpop.f32.mrb[17].mxu0 }
 0x26f   :  { %v8499_v57 = vpop.f32.mrb[10].mxu1  ;;  %v8501_v54 = vpop.f32.mrb[18].mxu0 }
 0x270   :  { %v978_v37 = vpop.f32.mrb[11].mxu1  ;;  %v8503_v53 = vpop.f32.mrb[19].mxu0 }
 0x273   :  { %v5626_v49 = vpop.f32.mrb[12].mxu1 }
 0x274   :  { %v1086_v46 = vpop.f32.mrb[13].mxu1 }
 0x275   :  { %5662 = vmatprep.mubr.f32.mxu1 %v1086_v46  ;;  %v999_v46 = vld [vmem:[#allocation11 + $0x60] sm:$0xff] }
 0x276   :  { %5663 = vmatmul.mubr.f32.vlgmr.msra.gmra.mrb[16].mxu1 %v5626_v49  ;;  %v998_v49 = vld [vmem:[#allocation11 + $0x58] sm:$0xff] }
 0x277   :  { %6665 = vmatpush3.bf16.msra.mxu1 %v6662_v42  ;;  %v5629_v47 = vpop.f32.mrb[14].mxu1  ;;  %v6682_v42 = vpack.c.bf16 %v998_v49, %v997_v58  ;;  %v1400_v58 = vld [vmem:[#allocation11 + $0x128] sm:$0xff]  ;;  %v1401_v49 = vld [vmem:[#allocation11 + $0x130] sm:$0xff] }
 0x278   :  { %v1096_v63 = vpop.f32.mrb[15].mxu1  ;;  %6667 = vmatprep.subr.bf16.mxu1 %v6666_v36 }
 0x279   :  { %5665 = vmatprep.mubr.f32.mxu1 %v1096_v63  ;;  %v6686_v63 = vpack.c.bf16 %v1000_v44, %v999_v46  ;;  %v1403_v44 = vld [vmem:[#allocation11 + $0x140] sm:$0xff] }
 0x27a   :  { %5666 = vmatmul.mubr.f32.gmra.mrb[18].mxu1 %v5629_v47  ;;  %v1001_v47 = vld [vmem:[#allocation11 + $0x70] sm:$0xff] }
 0x27b   :  { %6669 = vmatpush3.bf16.msra.mxu1 %v6666_v36  ;;  %5700 = vmatprep.mubr.f32.mxu1 %v968_v40  ;;  %v1002_v36 = vld [vmem:[#allocation11 + $0x78] sm:$0xff]  ;;  %v1396_v40 = vld [vmem:[#allocation11 + $0x108] sm:$0xff] }
 0x27c   :  { %6671 = vmatprep.subr.bf16.mxu1 %v6670_v35  ;;  %v6690_v33 = vpack.c.bf16 %v1002_v36, %v1001_v47  ;;  %v6702_v14 = vpack.c.bf16 %v1396_v40, %v1395_v34  ;;  %v1405_v36 = vld [vmem:[#allocation11 + $0x150] sm:$0xff]  ;;  %v1408_v34 = vld [vmem:[#allocation11 + $0x168] sm:$0xff] }
 0x27d   :  { %v1409_v40 = vld [vmem:[#allocation11 + $0x170] sm:$0xff] }
 0x27f   :  { %6673 = vmatpush3.bf16.msra.mxu1 %v6670_v35  ;;  %v1398_v35 = vld [vmem:[#allocation11 + $0x118] sm:$0xff] }
 0x280   :  { %6675 = vmatprep.subr.bf16.mxu1 %v6674_v32 }
 0x283   :  { %6677 = vmatpush3.bf16.msra.mxu1 %v6674_v32  ;;  %v6706_v32 = vpack.c.bf16 %v1398_v35, %v1397_v15 }
 0x284   :  { %6679 = vmatprep.subr.bf16.mxu1 %v6678_v51 }
 0x287   :  { %6681 = vmatpush3.bf16.msra.mxu1 %v6678_v51  ;;  %v6710_v51 = vpack.c.bf16 %v1400_v58, %v1399_v41 }
 0x288   :  { %6683 = vmatprep.subr.bf16.mxu1 %v6682_v42 }
 0x28b   :  { %6685 = vmatpush3.bf16.msra.mxu1 %v6682_v42  ;;  %v1402_v42 = vld [vmem:[#allocation11 + $0x138] sm:$0xff] }
 0x28c   :  { %6687 = vmatprep.subr.bf16.mxu1 %v6686_v63  ;;  %v6714_v46 = vpack.c.bf16 %v1402_v42, %v1401_v49 }
 0x28f   :  { %6689 = vmatpush3.bf16.msra.mxu1 %v6686_v63  ;;  %v1404_v63 = vld [vmem:[#allocation11 + $0x148] sm:$0xff] }
 0x290   :  { %6691 = vmatprep.subr.bf16.mxu1 %v6690_v33  ;;  %v6718_v47 = vpack.c.bf16 %v1404_v63, %v1403_v44 }
 0x293   :  { %6693 = vmatpush3.bf16.msra.mxu1 %v6690_v33  ;;  %v1407_v33 = vld [vmem:[#allocation11 + $0x160] sm:$0xff] }
 0x294   :  { %6703 = vmatprep.subr.bf16.mxu1 %v6702_v14 }
 0x296   :  { %5701 = vmatmul.mubr.f32.vlgmr.msra.gmra.mrb[16].mxu1 %v5612_v55  ;;  %v1406_v55 = vld [vmem:[#allocation11 + $0x158] sm:$0xff] }
 0x297   :  { %5703 = vmatprep.mubr.f32.mxu1 %v978_v37  ;;  %6705 = vmatpush3.bf16.msra.mxu1 %v6702_v14  ;;  %v6722_v37 = vpack.c.bf16 %v1406_v55, %v1405_v36  ;;  %v1410_v14 = vld [vmem:[#allocation11 + $0x178] sm:$0xff] }
 0x298   :  { %6707 = vmatprep.subr.bf16.mxu1 %v6706_v32 }
 0x29a   :  { %5704 = vmatmul.mubr.f32.gmra.mrb[18].mxu1 %v8499_v57  ;;  %v6726_v57 = vpack.c.bf16 %v1408_v34, %v1407_v33 }
 0x29b   :  { %6709 = vmatpush3.bf16.msra.mxu1 %v6706_v32  ;;  %5752 = vmatprep.mubr.f32.mxu1 %v8497_v62  ;;  %v6730_v62 = vpack.c.bf16 %v1410_v14, %v1409_v40 }
 0x29c   :  { %6711 = vmatprep.subr.bf16.mxu1 %v6710_v51 }
 0x29f   :  { %6713 = vmatpush3.bf16.msra.mxu1 %v6710_v51 }
 0x2a0   :  { %6715 = vmatprep.subr.bf16.mxu1 %v6714_v46 }
 0x2a3   :  { %6717 = vmatpush3.bf16.msra.mxu1 %v6714_v46 }
 0x2a4   :  { %6719 = vmatprep.subr.bf16.mxu1 %v6718_v47 }
 0x2a7   :  { %6721 = vmatpush3.bf16.msra.mxu1 %v6718_v47 }
 0x2a8   :  { %6723 = vmatprep.subr.bf16.mxu1 %v6722_v37 }
 0x2ab   :  { %6725 = vmatpush3.bf16.msra.mxu1 %v6722_v37 }
 0x2ac   :  { %6727 = vmatprep.subr.bf16.mxu1 %v6726_v57 }
 0x2af   :  { %6729 = vmatpush3.bf16.msra.mxu1 %v6726_v57 }
 0x2b0   :  { %6731 = vmatprep.subr.bf16.mxu1 %v6730_v62 }
 0x2b3   :  { %6733 = vmatpush3.bf16.msra.mxu1 %v6730_v62 }
 0x2b6   :  { %5753 = vmatmul.mubr.f32.vlgmr.msra.gmra.mrb[16].mxu1 %v8495_v60 }
 0x2b7   :  { %5755 = vmatprep.mubr.f32.mxu1 %v8503_v53 }
 0x2ba   :  { %5756 = vmatmul.mubr.f32.gmra.mrb[18].mxu1 %v8501_v54 }
 0x389   :  { %v8510_v15 = vpop.f32.mrb[16].mxu1 }
 0x38a   :  { %v8513_v35 = vmul.f32 0.70710677, %v8510_v15  ;;  %v8515_v32 = vpop.f32.mrb[17].mxu1 }
 0x38b   :  { %v8518_v41 = vmul.f32 0.70710677, %v8515_v32 }
 0x38c   :  { %v1517_v58 = vand.u32 2147483647, %v8513_v35  ;;  %vm1509_vm1 = vcmp.ge.f32.partialorder %v8513_v35, 0.0 }
 0x38d   :  { %v1516_v51 = vand.u32 2147483647, %v8518_v41  ;;  %v8522_v49 = vpop.f32.mrb[18].mxu1  ;;  %vm1508_vm2 = vcmp.ge.f32.partialorder %v8518_v41, 0.0  ;;  %v1501_v41 = vmul.f32 0.5, %v8510_v15 }
 0x38e   :  { %v1521_v60 = vmul.f32 0.3275911, %v1517_v58  ;;  %v8524_v53 = vpop.f32.mrb[19].mxu1  ;;  %v8527_v42 = vmul.f32 0.70710677, %v8522_v49  ;;  %v1573_v34 = vsub.f32 0.0, %v1517_v58 }
 0x38f   :  { %v1520_v54 = vmul.f32 0.3275911, %v1516_v51  ;;  %v8530_v44 = vmul.f32 0.70710677, %v8524_v53  ;;  %v1572_v40 = vsub.f32 0.0, %v1516_v51 }
 0x390   :  { %v1525_v46 = vadd.f32 1.0, %v1521_v60  ;;  %v1519_v47 = vand.u32 2147483647, %v8527_v42  ;;  %v1577_v62 = vmul.f32 %v1573_v34, %v1517_v58  ;;  %vm1511_vm3 = vcmp.ge.f32.partialorder %v8527_v42, 0.0 }
 0x391   :  { %v1524_v63 = vadd.f32 1.0, %v1520_v54  ;;  %v1518_v55 = vand.u32 2147483647, %v8530_v44  ;;  %v1576_v12 = vmul.f32 %v1572_v40, %v1516_v51  ;;  %vm1510_vm4 = vcmp.ge.f32.partialorder %v8530_v44, 0.0 }
 0x392   :  { %7376 = vrcp.f32 %v1525_v46  ;;  %v1523_v36 = vmul.f32 0.3275911, %v1519_v47  ;;  %v1575_v54 = vsub.f32 0.0, %v1519_v47  ;;  %v1582_v46 = vmul.f32 1.442695, %v1577_v62 }
 0x393   :  { %7378 = vrcp.f32 %v1524_v63  ;;  %v1522_v33 = vmul.f32 0.3275911, %v1518_v55  ;;  %v1574_v9 = vsub.f32 0.0, %v1518_v55  ;;  %v1502_v44 = vmul.f32 0.5, %v8524_v53 }
 0x394   :  { %v1527_v37 = vadd.f32 1.0, %v1523_v36  ;;  %v1580_v36 = vmul.f32 1.442695, %v1576_v12  ;;  %v1579_v6 = vmul.f32 %v1575_v54, %v1519_v47 }
 0x395   :  { %v1526_v57 = vadd.f32 1.0, %v1522_v33  ;;  %v1578_v34 = vmul.f32 %v1574_v9, %v1518_v55 }
 0x396   :  { %7380 = vrcp.f32 %v1527_v37  ;;  %v1586_v51 = vmul.f32 1.442695, %v1579_v6 }
 0x397   :  { %7382 = vrcp.f32 %v1526_v57  ;;  %v1584_v12 = vmul.f32 1.442695, %v1578_v34 }
 0x398   :  { %7384 = vpow2.f32 %v1582_v46 }
 0x399   :  { %7386 = vpow2.f32 %v1580_v36 }
 0x39a   :  { %7388 = vpow2.f32 %v1586_v51  ;;  %v569_v51 = vsub.s32 2, %v8428_v52 }
 0x39b   :  { %7390 = vpow2.f32 %v1584_v12 }
 0x39c   :  { %v7377_v14 = vpop.eup %7376 }
 0x39d   :  { %v7379_v60 = vpop.eup %7378  ;;  %v1537_v13 = vmul.f32 1.0614054, %v7377_v14 }
 0x39e   :  { %v1536_v11 = vmul.f32 1.0614054, %v7379_v60 }
 0x39f   :  { %v1541_v10 = vadd.f32 -1.4531521, %v1537_v13 }
 0x3a0   :  { %v1540_v63 = vadd.f32 -1.4531521, %v1536_v11  ;;  %v7381_v8 = vpop.eup %7380 }
 0x3a1   :  { %v1545_v7 = vmul.f32 %v7377_v14, %v1541_v10  ;;  %v1539_v5 = vmul.f32 1.0614054, %v7381_v8  ;;  %v7383_v4 = vpop.eup %7382 }
 0x3a2   :  { %v1544_v37 = vmul.f32 %v7379_v60, %v1540_v63  ;;  %v1538_v40 = vmul.f32 1.0614054, %v7383_v4  ;;  %v7385_v36 = vpop.eup %7384 }
 0x3a3   :  { %v1549_v33 = vadd.f32 1.4214138, %v1545_v7  ;;  %v1543_v58 = vadd.f32 -1.4531521, %v1539_v5 }
 0x3a4   :  { %v1548_v57 = vadd.f32 1.4214138, %v1544_v37  ;;  %v1542_v2 = vadd.f32 -1.4531521, %v1538_v40 }
 0x3a5   :  { %v1553_v3 = vmul.f32 %v7377_v14, %v1549_v33  ;;  %v1547_v62 = vmul.f32 %v7381_v8, %v1543_v58 }
 0x3a6   :  { %v1552_v13 = vmul.f32 %v7379_v60, %v1548_v57  ;;  %v1546_v54 = vmul.f32 %v7383_v4, %v1542_v2 }
 0x3a7   :  { %v1557_v11 = vadd.f32 -0.28449672, %v1553_v3  ;;  %v1551_v10 = vadd.f32 1.4214138, %v1547_v62  ;;  %v7387_v3 = vpop.eup %7386  ;;  %v7547_v62 = vmov -1.0  }
 0x3a8   :  { %v1556_v1 = vadd.f32 -0.28449672, %v1552_v13  ;;  %v1550_v37 = vadd.f32 1.4214138, %v1546_v54  ;;  %v570_v54 = vrot.slane %v8434_v59, %v569_v51 }
 0x3a9   :  { %v1561_v47 = vmul.f32 %v7377_v14, %v1557_v11  ;;  %v1555_v63 = vmul.f32 %v7381_v8, %v1551_v10 }
 0x3aa   :  { %v1560_v7 = vmul.f32 %v7379_v60, %v1556_v1  ;;  %v1554_v6 = vmul.f32 %v7383_v4, %v1550_v37  ;;  %v745_v42 = vadd.f32 %v8459_v50, %v570_v54  ;;  %v763_v51 = vadd.f32 %v8471_v56, %v570_v54 }
 0x3ab   :  { %v1565_v46 = vadd.f32 0.2548296, %v1561_v47  ;;  %v1559_v9 = vadd.f32 -0.28449672, %v1555_v63  ;;  %v1512_v47 = vsel %vm1508_vm2, 1.0, %v7547_v62 }
 0x3ac   :  { %v1564_v5 = vadd.f32 0.2548296, %v1560_v7  ;;  %v1558_v34 = vadd.f32 -0.28449672, %v1554_v6 }
 0x3ad   :  { %v1569_v55 = vmul.f32 %v7377_v14, %v1565_v46  ;;  %v1563_v57 = vmul.f32 %v7381_v8, %v1559_v9  ;;  %v1513_v14 = vsel %vm1509_vm1, 1.0, %v7547_v62 }
 0x3ae   :  { %v1568_v33 = vmul.f32 %v7379_v60, %v1564_v5  ;;  %v1562_v13 = vmul.f32 %v7383_v4, %v1558_v34  ;;  %v7389_v60 = vpop.eup %7388  ;;  %v751_v5 = vadd.f32 %v8463_v38, %v570_v54  ;;  %v1503_v38 = vmul.f32 0.5, %v8522_v49 }
 0x3af   :  { %v1589_v58 = vmul.f32 %v7385_v36, %v1569_v55  ;;  %v1567_v2 = vadd.f32 0.2548296, %v1563_v57  ;;  %v7391_v37 = vpop.eup %7390  ;;  %v1515_v36 = vsel %vm1511_vm3, 1.0, %v7547_v62 }
 0x3b0   :  { %v1588_v1 = vmul.f32 %v7387_v3, %v1568_v33  ;;  %v1566_v35 = vadd.f32 0.2548296, %v1562_v13 }
 0x3b1   :  { %v1593_v40 = vsub.f32 1.0, %v1589_v58  ;;  %v1571_v10 = vmul.f32 %v7381_v8, %v1567_v2  ;;  %v1500_v8 = vmul.f32 0.5, %v8515_v32  ;;  %v1514_v58 = vsel %vm1510_vm4, 1.0, %v7547_v62 }
 0x3b2   :  { %v1592_v11 = vsub.f32 1.0, %v1588_v1  ;;  %v1570_v46 = vmul.f32 %v7383_v4, %v1566_v35 }
 0x3b3   :  { %v1597_v12 = vmul.f32 %v1593_v40, %v1513_v14  ;;  %v1591_v52 = vmul.f32 %v7389_v60, %v1571_v10  ;;  %v757_v40 = vadd.f32 %v8467_v45, %v570_v54 }
 0x3b4   :  { %v1596_v7 = vmul.f32 %v1592_v11, %v1512_v47  ;;  %v1590_v59 = vmul.f32 %v7391_v37, %v1570_v46 }
 0x3b5   :  { %v1601_v63 = vadd.f32 1.0, %v1597_v12  ;;  %v1595_v55 = vsub.f32 1.0, %v1591_v52 }
 0x3b6   :  { %v1600_v9 = vadd.f32 1.0, %v1596_v7  ;;  %v1594_v4 = vsub.f32 1.0, %v1590_v59 }
 0x3b7   :  { %v1605_v6 = vmul.f32 %v1601_v63, %v1501_v41  ;;  %v1599_v57 = vmul.f32 %v1595_v55, %v1515_v36 }
 0x3b8   :  { %v1604_v33 = vmul.f32 %v1600_v9, %v1500_v8  ;;  %v1598_v34 = vmul.f32 %v1594_v4, %v1514_v58 }
 0x3b9   :  { %v8547_v15 = vmul.f32 %v1605_v6, %v751_v5  ;;  %v1603_v32 = vadd.f32 1.0, %v1599_v57 }
 0x3ba   :  { %v8549_v3 = vmul.f32 %v1604_v33, %v745_v42  ;;  %v1602_v2 = vadd.f32 1.0, %v1598_v34 }
 0x3bb   :  { %v1607_v1 = vmul.f32 %v1603_v32, %v1503_v38 }
 0x3bc   :  { %v1606_v13 = vmul.f32 %v1602_v2, %v1502_v44 }
 0x3bd   :  { %v8555_v50 = vmul.f32 %v1607_v1, %v763_v51 }
 0x3be   :  { %v8558_v14 = vmul.f32 %v1606_v13, %v757_v40 }
 0x3bf   :  { %7532 = dma.done.wait [#allocation6], 10240 }
 0x3c0   :  { %7533 = vsyncadd [#allocation6], 4294957056  ;;  %v6734_v49 = vpack.c.bf16 %v1605_v6, %v1604_v33  ;;  %v8560_v11 = vpack.c.bf16 %v1607_v1, %v1606_v13  ;;  %v1625_v56 = vld [vmem:[#allocation9 + $0x20] sm:$0xff]  ;;  %v1626_v45 = vld [vmem:[#allocation9 + $0x28] sm:$0xff] }
 0x3c1   :  { %5766 = vmatprep.mubr.msk.f32.mxu0 %vm889_vm0, %v1625_v56  ;;  %v1627_v53 = vld [vmem:[#allocation9 + $0x30] sm:$0xff]  ;;  %v2030_v10 = vld [vmem:[#allocation9 + $0x60] sm:$0xff]  ;;  %v2031_v60 = vld [vmem:[#allocation9 + $0x68] sm:$0xff] }
 0x3c2   :  { %6735 = vmatprep.subr.bf16.mxu0 %v6734_v49  ;;  %6815 = vmatprep.subr.bf16.mxu1 %v6734_v49  ;;  %v2032_v12 = vld [vmem:[#allocation9 + $0x70] sm:$0xff]  ;;  %v1628_v47 = vld [vmem:[#allocation9 + $0x38] sm:$0xff]  ;;  %v1742_v35 = vld [vmem:[#allocation9 + $0x40] sm:$0xff] }
 0x3c3   :  { %6737 = vmatpush3.bf16.msra.mxu0 %v6734_v49  ;;  %6817 = vmatpush3.bf16.msra.mxu1 %v6734_v49  ;;  %v2033_v54 = vld [vmem:[#allocation9 + $0x78] sm:$0xff]  ;;  %v1844_v7 = vld [vmem:[#allocation3 + $0x80] sm:$0xff]  ;;  %v1845_v41 = vld [vmem:[#allocation3 + $0x88] sm:$0xff] }
 0x3c4   :  { %6739 = vmatprep.subr.bf16.mxu0 %v8560_v11  ;;  %6819 = vmatprep.subr.bf16.mxu1 %v8560_v11  ;;  %v2237_v52 = vld [vmem:[#allocation9 + $0x80] sm:$0xff]  ;;  %v1743_v63 = vld [vmem:[#allocation9 + $0x48] sm:$0xff]  ;;  %v6750_v46 = vpack.c.bf16 %v1845_v41, %v1844_v7  ;;  %v1744_v37 = vld [vmem:[#allocation9 + $0x50] sm:$0xff] }
 0x3c5   :  { %5870 = vmatprep.mubr.msk.f32.mxu1 %vm889_vm0, %v2030_v10  ;;  %v1846_v5 = vld [vmem:[#allocation3 + $0x90] sm:$0xff]  ;;  %v1847_v8 = vld [vmem:[#allocation3 + $0x98] sm:$0xff]  ;;  %v2238_v9 = vld [vmem:[#allocation9 + $0x88] sm:$0xff] }
 0x3c6   :  { %v2239_v55 = vld [vmem:[#allocation9 + $0x90] sm:$0xff]  ;;  %v1745_v6 = vld [vmem:[#allocation9 + $0x58] sm:$0xff]  ;;  %v6754_v36 = vpack.c.bf16 %v1847_v8, %v1846_v5  ;;  %v1848_v59 = vld [vmem:[#allocation3 + $0xa0] sm:$0xff] }
 0x3c7   :  { %6741 = vmatpush3.bf16.msra.mxu0 %v8560_v11  ;;  %6821 = vmatpush3.bf16.msra.mxu1 %v8560_v11  ;;  %v1849_v42 = vld [vmem:[#allocation3 + $0xa8] sm:$0xff]  ;;  %v2240_v33 = vld [vmem:[#allocation9 + $0x98] sm:$0xff]  ;;  %v2445_v57 = vld [vmem:[#allocation9 + $0xa0] sm:$0xff] }
 0x3c8   :  { %6743 = vmatprep.subr.bf16.mxu0 %v6734_v49  ;;  %6855 = vmatprep.subr.bf16.mxu1 %v6734_v49  ;;  %v6758_v4 = vpack.c.bf16 %v1849_v42, %v1848_v59  ;;  %v1850_v38 = vld [vmem:[#allocation3 + $0xb0] sm:$0xff]  ;;  %v1851_v32 = vld [vmem:[#allocation3 + $0xb8] sm:$0xff]  ;;  %v2446_v58 = vld [vmem:[#allocation9 + $0xa8] sm:$0xff] }
 0x3c9   :  { %v6762_v34 = vpack.c.bf16 %v1851_v32, %v1850_v38  ;;  %v2447_v51 = vld [vmem:[#allocation9 + $0xb0] sm:$0xff]  ;;  %v1852_v1 = vld [vmem:[#allocation3 + $0xc0] sm:$0xff]  ;;  %v1853_v44 = vld [vmem:[#allocation3 + $0xc8] sm:$0xff] }
 0x3ca   :  { %5767 = vmatmul.mubr.msk.f32.vlgmr.msra.gmra.mrb[20].mxu0 %vm889_vm0, %v1626_v45  ;;  %5871 = vmatmul.mubr.msk.f32.vlgmr.msra.gmra.mrb[20].mxu1 %vm889_vm0, %v2031_v60  ;;  %v2448_v2 = vld [vmem:[#allocation9 + $0xb8] sm:$0xff]  ;;  %v6766_v40 = vpack.c.bf16 %v1853_v44, %v1852_v1  ;;  %v1854_v13 = vld [vmem:[#allocation3 + $0xd0] sm:$0xff]  ;;  %v1856_v56 = vld [vmem:[#allocation3 + $0xe0] sm:$0xff] }
 0x3cb   :  { %6745 = vmatpush3.bf16.msra.mxu0 %v6734_v49  ;;  %5769 = vmatprep.mubr.msk.f32.mxu0 %vm889_vm0, %v1627_v53  ;;  %v1857_v45 = vld [vmem:[#allocation3 + $0xe8] sm:$0xff]  ;;  %v1858_v10 = vld [vmem:[#allocation3 + $0xf0] sm:$0xff]  ;;  %v1859_v60 = vld [vmem:[#allocation3 + $0xf8] sm:$0xff] }
 0x3cc   :  { %6747 = vmatprep.subr.bf16.mxu0 %v8560_v11  ;;  %6857 = vmatpush3.bf16.msra.mxu1 %v6734_v49  ;;  %v6774_v53 = vpack.c.bf16 %v1857_v45, %v1856_v56  ;;  %v1728_v5 = vld [vmem:[#allocation3 + $0x10] sm:$0xff]  ;;  %v1729_v8 = vld [vmem:[#allocation3 + $0x18] sm:$0xff]  ;;  %v1730_v42 = vld [vmem:[#allocation3 + $0x20] sm:$0xff] }
 0x3cd   :  { %5873 = vmatprep.mubr.msk.f32.mxu1 %vm889_vm0, %v2032_v12  ;;  %6859 = vmatprep.subr.bf16.mxu1 %v8560_v11  ;;  %v6778_v12 = vpack.c.bf16 %v1859_v60, %v1858_v10  ;;  %v6786_v59 = vpack.c.bf16 %v1729_v8, %v1728_v5  ;;  %v1736_v45 = vld [vmem:[#allocation3 + $0x50] sm:$0xff]  ;;  %v1741_v5 = vld [vmem:[#allocation3 + $0x78] sm:$0xff] }
 0x3ce   :  { %5770 = vmatmul.mubr.msk.f32.gmra.mrb[22].mxu0 %vm889_vm0, %v1628_v47  ;;  %5874 = vmatmul.mubr.msk.f32.gmra.mrb[22].mxu1 %vm889_vm0, %v2033_v54  ;;  %v1726_v47 = vld [vmem:[#allocation3] sm:$0xff] }
 0x3cf   :  { %6749 = vmatpush3.bf16.msra.mxu0 %v8560_v11  ;;  %5780 = vmatprep.mubr.msk.f32.mxu0 %vm889_vm0, %v1742_v35  ;;  %v1727_v35 = vld [vmem:[#allocation3 + $0x8] sm:$0xff] }
 0x3d0   :  { %6861 = vmatpush3.bf16.msra.mxu1 %v8560_v11  ;;  %5922 = vmatprep.mubr.msk.f32.mxu1 %vm889_vm0, %v2237_v52  ;;  %v6782_v54 = vpack.c.bf16 %v1727_v35, %v1726_v47  ;;  %v1738_v47 = vld [vmem:[#allocation3 + $0x60] sm:$0xff]  ;;  %v1739_v35 = vld [vmem:[#allocation3 + $0x68] sm:$0xff] }
 0x3d1   :  { %6895 = vmatprep.subr.bf16.mxu1 %v6734_v49  ;;  %6751 = vmatprep.subr.bf16.mxu0 %v6750_v46 }
 0x3d2   :  { %5781 = vmatmul.mubr.msk.f32.vlgmr.msra.gmra.mrb[24].mxu0 %vm889_vm0, %v1743_v63 }
 0x3d3   :  { %5783 = vmatprep.mubr.msk.f32.mxu0 %vm889_vm0, %v1744_v37  ;;  %5923 = vmatmul.mubr.msk.f32.vlgmr.msra.gmra.mrb[24].mxu1 %vm889_vm0, %v2238_v9 }
 0x3d4   :  { %6753 = vmatpush3.bf16.msra.mxu0 %v6750_v46  ;;  %6897 = vmatpush3.bf16.msra.mxu1 %v6734_v49  ;;  %v1855_v49 = vld [vmem:[#allocation3 + $0xd8] sm:$0xff] }
 0x3d5   :  { %5925 = vmatprep.mubr.msk.f32.mxu1 %vm889_vm0, %v2239_v55  ;;  %6899 = vmatprep.subr.bf16.mxu1 %v8560_v11 }
 0x3d6   :  { %5784 = vmatmul.mubr.msk.f32.gmra.mrb[26].mxu0 %vm889_vm0, %v1745_v6  ;;  %6755 = vmatprep.subr.bf16.mxu0 %v6754_v36 }
 0x3d7   :  { %5926 = vmatmul.mubr.msk.f32.gmra.mrb[26].mxu1 %vm889_vm0, %v2240_v33  ;;  %v1731_v33 = vld [vmem:[#allocation3 + $0x28] sm:$0xff] }
 0x3d8   :  { %6757 = vmatpush3.bf16.msra.mxu0 %v6754_v36  ;;  %6901 = vmatpush3.bf16.msra.mxu1 %v8560_v11  ;;  %v6770_v11 = vpack.c.bf16 %v1855_v49, %v1854_v13  ;;  %v1735_v13 = vld [vmem:[#allocation3 + $0x48] sm:$0xff] }
 0x3d9   :  { %5974 = vmatprep.mubr.msk.f32.mxu1 %vm889_vm0, %v2445_v57  ;;  %6759 = vmatprep.subr.bf16.mxu0 %v6758_v4 }
 0x3db   :  { %5975 = vmatmul.mubr.msk.f32.vlgmr.msra.gmra.mrb[28].mxu1 %vm889_vm0, %v2446_v58  ;;  %v6790_v58 = vpack.c.bf16 %v1731_v33, %v1730_v42  ;;  %v2134_v42 = vld [vmem:[#allocation3 + $0x110] sm:$0xff]  ;;  %v2135_v33 = vld [vmem:[#allocation3 + $0x118] sm:$0xff] }
 0x3dc   :  { %6761 = vmatpush3.bf16.msra.mxu0 %v6758_v4  ;;  %5977 = vmatprep.mubr.msk.f32.mxu1 %vm889_vm0, %v2447_v51  ;;  %v1733_v51 = vld [vmem:[#allocation3 + $0x38] sm:$0xff] }
 0x3dd   :  { %6763 = vmatprep.subr.bf16.mxu0 %v6762_v34 }
 0x3df   :  { %5978 = vmatmul.mubr.msk.f32.gmra.mrb[30].mxu1 %vm889_vm0, %v2448_v2 }
 0x3e0   :  { %6765 = vmatpush3.bf16.msra.mxu0 %v6762_v34  ;;  %v1732_v34 = vld [vmem:[#allocation3 + $0x30] sm:$0xff] }
 0x3e1   :  { %6767 = vmatprep.subr.bf16.mxu0 %v6766_v40  ;;  %v6794_v2 = vpack.c.bf16 %v1733_v51, %v1732_v34  ;;  %v2138_v51 = vld [vmem:[#allocation3 + $0x130] sm:$0xff] }
 0x3e4   :  { %6769 = vmatpush3.bf16.msra.mxu0 %v6766_v40  ;;  %v1734_v40 = vld [vmem:[#allocation3 + $0x40] sm:$0xff] }
 0x3e5   :  { %6771 = vmatprep.subr.bf16.mxu0 %v6770_v11  ;;  %v6798_v56 = vpack.c.bf16 %v1735_v13, %v1734_v40  ;;  %v2140_v13 = vld [vmem:[#allocation3 + $0x140] sm:$0xff] }
 0x3e8   :  { %6773 = vmatpush3.bf16.msra.mxu0 %v6770_v11 }
 0x3e9   :  { %6775 = vmatprep.subr.bf16.mxu0 %v6774_v53 }
 0x3ec   :  { %6777 = vmatpush3.bf16.msra.mxu0 %v6774_v53  ;;  %v1737_v53 = vld [vmem:[#allocation3 + $0x58] sm:$0xff] }
 0x3ed   :  { %6779 = vmatprep.subr.bf16.mxu0 %v6778_v12 }
 0x3f0   :  { %6781 = vmatpush3.bf16.msra.mxu0 %v6778_v12  ;;  %v6802_v12 = vpack.c.bf16 %v1737_v53, %v1736_v45  ;;  %v2143_v53 = vld [vmem:[#allocation3 + $0x158] sm:$0xff] }
 0x3f1   :  { %6783 = vmatprep.subr.bf16.mxu0 %v6782_v54 }
 0x49d   :  { %v8592_v7 = vpop.f32.mrb[20].mxu0  ;;  %v8594_v41 = vpop.f32.mrb[20].mxu1 }
 0x49e   :  { %v1707_v52 = vpop.f32.mrb[21].mxu0  ;;  %v8596_v63 = vpop.f32.mrb[21].mxu1 }
 0x4a1   :  { %v8598_v46 = vpop.f32.mrb[22].mxu0  ;;  %v8602_v9 = vpop.f32.mrb[22].mxu1 }
 0x4a2   :  { %v8600_v37 = vpop.f32.mrb[23].mxu0  ;;  %v8604_v55 = vpop.f32.mrb[23].mxu1 }
 0x4a5   :  { %v5782_v6 = vpop.f32.mrb[24].mxu0 }
 0x4a6   :  { %v1824_v36 = vpop.f32.mrb[25].mxu0  ;;  %v8606_v57 = vpop.f32.mrb[24].mxu1 }
 0x4a7   :  { %5818 = vmatprep.mubr.f32.mxu0 %v1824_v36  ;;  %v8608_v4 = vpop.f32.mrb[25].mxu1  ;;  %v2133_v36 = vld [vmem:[#allocation3 + $0x108] sm:$0xff] }
 0x4a8   :  { %5819 = vmatmul.mubr.f32.vlgmr.msra.gmra.mrb[28].mxu0 %v5782_v6  ;;  %v2132_v6 = vld [vmem:[#allocation3 + $0x100] sm:$0xff] }
 0x4a9   :  { %6785 = vmatpush3.bf16.msra.mxu0 %v6782_v54  ;;  %v5785_v38 = vpop.f32.mrb[26].mxu0  ;;  %v6806_v54 = vpack.c.bf16 %v1739_v35, %v1738_v47  ;;  %v2145_v47 = vld [vmem:[#allocation3 + $0x168] sm:$0xff]  ;;  %v2146_v35 = vld [vmem:[#allocation3 + $0x170] sm:$0xff] }
 0x4aa   :  { %v1834_v32 = vpop.f32.mrb[27].mxu0  ;;  %6787 = vmatprep.subr.bf16.mxu0 %v6786_v59  ;;  %v8610_v1 = vpop.f32.mrb[26].mxu1 }
 0x4ab   :  { %5821 = vmatprep.mubr.f32.mxu0 %v1834_v32  ;;  %v8612_v44 = vpop.f32.mrb[27].mxu1  ;;  %v2136_v32 = vld [vmem:[#allocation3 + $0x120] sm:$0xff] }
 0x4ac   :  { %5822 = vmatmul.mubr.f32.gmra.mrb[30].mxu0 %v5785_v38  ;;  %v6826_v38 = vpack.c.bf16 %v2135_v33, %v2134_v42  ;;  %v2343_v42 = vld [vmem:[#allocation3 + $0x1a0] sm:$0xff]  ;;  %v2344_v33 = vld [vmem:[#allocation3 + $0x1a8] sm:$0xff] }
 0x4ad   :  { %6789 = vmatpush3.bf16.msra.mxu0 %v6786_v59  ;;  %5856 = vmatprep.mubr.f32.mxu0 %v1707_v52  ;;  %v1740_v52 = vld [vmem:[#allocation3 + $0x70] sm:$0xff]  ;;  %v6822_v59 = vpack.c.bf16 %v2133_v36, %v2132_v6  ;;  %v2342_v36 = vld [vmem:[#allocation3 + $0x198] sm:$0xff] }
 0x4ae   :  { %6791 = vmatprep.subr.bf16.mxu0 %v6790_v58  ;;  %v8614_v49 = vpop.f32.mrb[28].mxu1  ;;  %v6810_v8 = vpack.c.bf16 %v1741_v5, %v1740_v52  ;;  %v2339_v52 = vld [vmem:[#allocation3 + $0x180] sm:$0xff]  ;;  %v2340_v5 = vld [vmem:[#allocation3 + $0x188] sm:$0xff]  ;;  %v2341_v6 = vld [vmem:[#allocation3 + $0x190] sm:$0xff] }
 0x4af   :  { %v8616_v11 = vpop.f32.mrb[29].mxu1 }
 0x4b1   :  { %6793 = vmatpush3.bf16.msra.mxu0 %v6790_v58  ;;  %v2137_v58 = vld [vmem:[#allocation3 + $0x128] sm:$0xff] }
 0x4b2   :  { %6795 = vmatprep.subr.bf16.mxu0 %v6794_v2  ;;  %v8618_v10 = vpop.f32.mrb[30].mxu1  ;;  %v6830_v34 = vpack.c.bf16 %v2137_v58, %v2136_v32  ;;  %v2345_v32 = vld [vmem:[#allocation3 + $0x1b0] sm:$0xff]  ;;  %v2346_v58 = vld [vmem:[#allocation3 + $0x1b8] sm:$0xff] }
 0x4b3   :  { %v8620_v60 = vpop.f32.mrb[31].mxu1 }
 0x4b5   :  { %6797 = vmatpush3.bf16.msra.mxu0 %v6794_v2  ;;  %v2139_v2 = vld [vmem:[#allocation3 + $0x138] sm:$0xff] }
 0x4b6   :  { %6799 = vmatprep.subr.bf16.mxu0 %v6798_v56  ;;  %v6834_v40 = vpack.c.bf16 %v2139_v2, %v2138_v51  ;;  %v2347_v51 = vld [vmem:[#allocation3 + $0x1c0] sm:$0xff]  ;;  %v2348_v2 = vld [vmem:[#allocation3 + $0x1c8] sm:$0xff] }
 0x4b9   :  { %6801 = vmatpush3.bf16.msra.mxu0 %v6798_v56  ;;  %v2141_v56 = vld [vmem:[#allocation3 + $0x148] sm:$0xff] }
 0x4ba   :  { %6803 = vmatprep.subr.bf16.mxu0 %v6802_v12  ;;  %v6838_v45 = vpack.c.bf16 %v2141_v56, %v2140_v13  ;;  %v2350_v13 = vld [vmem:[#allocation3 + $0x1d8] sm:$0xff]  ;;  %v2351_v56 = vld [vmem:[#allocation3 + $0x1e0] sm:$0xff] }
 0x4bd   :  { %6805 = vmatpush3.bf16.msra.mxu0 %v6802_v12  ;;  %v2144_v12 = vld [vmem:[#allocation3 + $0x160] sm:$0xff] }
 0x4be   :  { %6807 = vmatprep.subr.bf16.mxu0 %v6806_v54 }
 0x4c1   :  { %6809 = vmatpush3.bf16.msra.mxu0 %v6806_v54  ;;  %v2147_v54 = vld [vmem:[#allocation3 + $0x178] sm:$0xff] }
 0x4c2   :  { %6811 = vmatprep.subr.bf16.mxu0 %v6810_v8 }
 0x4c5   :  { %6813 = vmatpush3.bf16.msra.mxu0 %v6810_v8  ;;  %v6862_v8 = vpack.c.bf16 %v2340_v5, %v2339_v52  ;;  %v2552_v52 = vld [vmem:[#allocation3 + $0x228] sm:$0xff] }
 0x4c6   :  { %6823 = vmatprep.subr.bf16.mxu0 %v6822_v59 }
 0x4c8   :  { %5857 = vmatmul.mubr.f32.vlgmr.msra.gmra.mrb[28].mxu0 %v8592_v7  ;;  %v2142_v7 = vld [vmem:[#allocation3 + $0x150] sm:$0xff] }
 0x4c9   :  { %5859 = vmatprep.mubr.f32.mxu0 %v8600_v37  ;;  %6825 = vmatpush3.bf16.msra.mxu0 %v6822_v59  ;;  %v6842_v37 = vpack.c.bf16 %v2143_v53, %v2142_v7  ;;  %v6866_v59 = vpack.c.bf16 %v2342_v36, %v2341_v6  ;;  %v2353_v7 = vld [vmem:[#allocation3 + $0x1f0] sm:$0xff]  ;;  %v2354_v53 = vld [vmem:[#allocation3 + $0x1f8] sm:$0xff] }
 0x4ca   :  { %6827 = vmatprep.subr.bf16.mxu0 %v6826_v38  ;;  %v2554_v6 = vld [vmem:[#allocation3 + $0x238] sm:$0xff] }
 0x4cc   :  { %5860 = vmatmul.mubr.f32.gmra.mrb[30].mxu0 %v8598_v46  ;;  %v6846_v46 = vpack.c.bf16 %v2145_v47, %v2144_v12  ;;  %v2548_v12 = vld [vmem:[#allocation3 + $0x208] sm:$0xff] }
 0x4cd   :  { %6829 = vmatpush3.bf16.msra.mxu0 %v6826_v38  ;;  %5908 = vmatprep.mubr.f32.mxu0 %v8596_v63  ;;  %v6850_v63 = vpack.c.bf16 %v2147_v54, %v2146_v35  ;;  %v6870_v38 = vpack.c.bf16 %v2344_v33, %v2343_v42  ;;  %v2550_v35 = vld [vmem:[#allocation3 + $0x218] sm:$0xff]  ;;  %v2556_v42 = vld [vmem:[#allocation3 + $0x248] sm:$0xff] }
 0x4ce   :  { %6831 = vmatprep.subr.bf16.mxu0 %v6830_v34 }
 0x4d1   :  { %6833 = vmatpush3.bf16.msra.mxu0 %v6830_v34  ;;  %v6874_v34 = vpack.c.bf16 %v2346_v58, %v2345_v32  ;;  %v2559_v32 = vld [vmem:[#allocation3 + $0x260] sm:$0xff]  ;;  %v2560_v58 = vld [vmem:[#allocation3 + $0x268] sm:$0xff] }
 0x4d2   :  { %6835 = vmatprep.subr.bf16.mxu0 %v6834_v40 }
 0x4d5   :  { %6837 = vmatpush3.bf16.msra.mxu0 %v6834_v40  ;;  %v6878_v40 = vpack.c.bf16 %v2348_v2, %v2347_v51  ;;  %v2562_v51 = vld [vmem:[#allocation3 + $0x278] sm:$0xff] }
 0x4d6   :  { %6839 = vmatprep.subr.bf16.mxu0 %v6838_v45 }
 0x4d9   :  { %6841 = vmatpush3.bf16.msra.mxu0 %v6838_v45  ;;  %v2352_v45 = vld [vmem:[#allocation3 + $0x1e8] sm:$0xff] }
 0x4da   :  { %6843 = vmatprep.subr.bf16.mxu0 %v6842_v37 }
 0x4dd   :  { %6845 = vmatpush3.bf16.msra.mxu0 %v6842_v37  ;;  %v2547_v37 = vld [vmem:[#allocation3 + $0x200] sm:$0xff] }
 0x4de   :  { %6847 = vmatprep.subr.bf16.mxu0 %v6846_v46  ;;  %v6902_v47 = vpack.c.bf16 %v2548_v12, %v2547_v37 }
 0x4e1   :  { %6849 = vmatpush3.bf16.msra.mxu0 %v6846_v46  ;;  %v2549_v46 = vld [vmem:[#allocation3 + $0x210] sm:$0xff] }
 0x4e2   :  { %6851 = vmatprep.subr.bf16.mxu0 %v6850_v63  ;;  %v6906_v54 = vpack.c.bf16 %v2550_v35, %v2549_v46 }
 0x4e5   :  { %6853 = vmatpush3.bf16.msra.mxu0 %v6850_v63  ;;  %v2551_v63 = vld [vmem:[#allocation3 + $0x220] sm:$0xff] }
 0x4e6   :  { %6863 = vmatprep.subr.bf16.mxu0 %v6862_v8  ;;  %v6910_v5 = vpack.c.bf16 %v2552_v52, %v2551_v63 }
 0x4e8   :  { %5909 = vmatmul.mubr.f32.vlgmr.msra.gmra.mrb[28].mxu0 %v8594_v41  ;;  %v2349_v41 = vld [vmem:[#allocation3 + $0x1d0] sm:$0xff] }
 0x4e9   :  { %6865 = vmatpush3.bf16.msra.mxu0 %v6862_v8  ;;  %5911 = vmatprep.mubr.f32.mxu0 %v8604_v55  ;;  %v6882_v55 = vpack.c.bf16 %v2350_v13, %v2349_v41  ;;  %v2553_v8 = vld [vmem:[#allocation3 + $0x230] sm:$0xff] }
 0x4ea   :  { %6867 = vmatprep.subr.bf16.mxu0 %v6866_v59  ;;  %v6914_v36 = vpack.c.bf16 %v2554_v6, %v2553_v8 }
 0x4ec   :  { %5912 = vmatmul.mubr.f32.gmra.mrb[30].mxu0 %v8602_v9  ;;  %v6886_v9 = vpack.c.bf16 %v2352_v45, %v2351_v56 }
 0x4ed   :  { %6869 = vmatpush3.bf16.msra.mxu0 %v6866_v59  ;;  %5960 = vmatprep.mubr.f32.mxu0 %v8608_v4  ;;  %v6890_v4 = vpack.c.bf16 %v2354_v53, %v2353_v7  ;;  %v2555_v59 = vld [vmem:[#allocation3 + $0x240] sm:$0xff] }
 0x4ee   :  { %6871 = vmatprep.subr.bf16.mxu0 %v6870_v38  ;;  %v6918_v33 = vpack.c.bf16 %v2556_v42, %v2555_v59 }
 0x4f1   :  { %6873 = vmatpush3.bf16.msra.mxu0 %v6870_v38  ;;  %v2558_v38 = vld [vmem:[#allocation3 + $0x258] sm:$0xff] }
 0x4f2   :  { %6875 = vmatprep.subr.bf16.mxu0 %v6874_v34 }
 0x4f5   :  { %6877 = vmatpush3.bf16.msra.mxu0 %v6874_v34  ;;  %v2561_v34 = vld [vmem:[#allocation3 + $0x270] sm:$0xff] }
 0x4f6   :  { %6879 = vmatprep.subr.bf16.mxu0 %v6878_v40 }
 0x4f9   :  { %6881 = vmatpush3.bf16.msra.mxu0 %v6878_v40 }
 0x4fa   :  { %6883 = vmatprep.subr.bf16.mxu0 %v6882_v55 }
 0x4fd   :  { %6885 = vmatpush3.bf16.msra.mxu0 %v6882_v55 }
 0x4fe   :  { %6887 = vmatprep.subr.bf16.mxu0 %v6886_v9 }
 0x501   :  { %6889 = vmatpush3.bf16.msra.mxu0 %v6886_v9 }
 0x502   :  { %6891 = vmatprep.subr.bf16.mxu0 %v6890_v4 }
 0x505   :  { %6893 = vmatpush3.bf16.msra.mxu0 %v6890_v4 }
 0x506   :  { %6903 = vmatprep.subr.bf16.mxu0 %v6902_v47 }
 0x508   :  { %5961 = vmatmul.mubr.f32.vlgmr.msra.gmra.mrb[28].mxu0 %v8606_v57  ;;  %v2557_v57 = vld [vmem:[#allocation3 + $0x250] sm:$0xff] }
 0x509   :  { %6905 = vmatpush3.bf16.msra.mxu0 %v6902_v47  ;;  %5963 = vmatprep.mubr.f32.mxu0 %v8612_v44  ;;  %v6922_v44 = vpack.c.bf16 %v2558_v38, %v2557_v57 }
 0x50a   :  { %6907 = vmatprep.subr.bf16.mxu0 %v6906_v54 }
 0x50c   :  { %5964 = vmatmul.mubr.f32.gmra.mrb[30].mxu0 %v8610_v1  ;;  %v6926_v1 = vpack.c.bf16 %v2560_v58, %v2559_v32 }
 0x50d   :  { %6909 = vmatpush3.bf16.msra.mxu0 %v6906_v54  ;;  %6012 = vmatprep.mubr.f32.mxu0 %v8616_v11  ;;  %v6930_v11 = vpack.c.bf16 %v2562_v51, %v2561_v34 }
 0x50e   :  { %6911 = vmatprep.subr.bf16.mxu0 %v6910_v5 }
 0x511   :  { %6913 = vmatpush3.bf16.msra.mxu0 %v6910_v5 }
 0x512   :  { %6915 = vmatprep.subr.bf16.mxu0 %v6914_v36 }
 0x515   :  { %6917 = vmatpush3.bf16.msra.mxu0 %v6914_v36 }
 0x516   :  { %6919 = vmatprep.subr.bf16.mxu0 %v6918_v33 }
 0x519   :  { %6921 = vmatpush3.bf16.msra.mxu0 %v6918_v33 }
 0x51a   :  { %6923 = vmatprep.subr.bf16.mxu0 %v6922_v44 }
 0x51d   :  { %6925 = vmatpush3.bf16.msra.mxu0 %v6922_v44 }
 0x51e   :  { %6927 = vmatprep.subr.bf16.mxu0 %v6926_v1 }
 0x521   :  { %6929 = vmatpush3.bf16.msra.mxu0 %v6926_v1 }
 0x522   :  { %6931 = vmatprep.subr.bf16.mxu0 %v6930_v11 }
 0x525   :  { %6933 = vmatpush3.bf16.msra.mxu0 %v6930_v11 }
 0x528   :  { %6013 = vmatmul.mubr.f32.vlgmr.msra.gmra.mrb[28].mxu0 %v8614_v49 }
 0x529   :  { %6015 = vmatprep.mubr.f32.mxu0 %v8620_v60 }
 0x52c   :  { %6016 = vmatmul.mubr.f32.gmra.mrb[30].mxu0 %v8618_v10 }
 0x5fb   :  { %v8637_v2 = vpop.f32.mrb[28].mxu0 }
 0x5fc   :  { %v8640_v40 = vmul.f32 0.70710677, %v8637_v2  ;;  %v8642_v41 = vpop.f32.mrb[29].mxu0 }
 0x5fd   :  { %v8645_v13 = vmul.f32 0.70710677, %v8642_v41 }
 0x5fe   :  { %v2669_v55 = vand.u32 2147483647, %v8640_v40  ;;  %vm2661_vm5 = vcmp.ge.f32.partialorder %v8640_v40, 0.0 }
 0x5ff   :  { %v2668_v56 = vand.u32 2147483647, %v8645_v13  ;;  %v8649_v45 = vpop.f32.mrb[30].mxu0  ;;  %vm2660_vm6 = vcmp.ge.f32.partialorder %v8645_v13, 0.0 }
 0x600   :  { %v2673_v49 = vmul.f32 0.3275911, %v2669_v55  ;;  %v8651_v60 = vpop.f32.mrb[31].mxu0  ;;  %v8654_v9 = vmul.f32 0.70710677, %v8649_v45  ;;  %v2725_v54 = vsub.f32 0.0, %v2669_v55 }
 0x601   :  { %v2672_v10 = vmul.f32 0.3275911, %v2668_v56  ;;  %v8657_v53 = vmul.f32 0.70710677, %v8651_v60  ;;  %v2724_v52 = vsub.f32 0.0, %v2668_v56 }
 0x602   :  { %v2677_v7 = vadd.f32 1.0, %v2673_v49  ;;  %v2671_v37 = vand.u32 2147483647, %v8654_v9  ;;  %v2729_v8 = vmul.f32 %v2725_v54, %v2669_v55  ;;  %vm2663_vm7 = vcmp.ge.f32.partialorder %v8654_v9, 0.0 }
 0x603   :  { %v2676_v4 = vadd.f32 1.0, %v2672_v10  ;;  %v2670_v47 = vand.u32 2147483647, %v8657_v53  ;;  %v2728_v59 = vmul.f32 %v2724_v52, %v2668_v56  ;;  %vm2662_vm8 = vcmp.ge.f32.partialorder %v8657_v53, 0.0 }
 0x604   :  { %7392 = vrcp.f32 %v2677_v7  ;;  %v2675_v12 = vmul.f32 0.3275911, %v2671_v37  ;;  %v2727_v42 = vsub.f32 0.0, %v2671_v37  ;;  %v2734_v38 = vmul.f32 1.442695, %v2729_v8 }
 0x605   :  { %7394 = vrcp.f32 %v2676_v4  ;;  %v2674_v35 = vmul.f32 0.3275911, %v2670_v47  ;;  %v2726_v32 = vsub.f32 0.0, %v2670_v47  ;;  %v2732_v34 = vmul.f32 1.442695, %v2728_v59 }
 0x606   :  { %v2679_v46 = vadd.f32 1.0, %v2675_v12  ;;  %v2731_v51 = vmul.f32 %v2727_v42, %v2671_v37 }
 0x607   :  { %v2678_v63 = vadd.f32 1.0, %v2674_v35  ;;  %v2730_v12 = vmul.f32 %v2726_v32, %v2670_v47 }
 0x608   :  { %7396 = vrcp.f32 %v2679_v46  ;;  %v2738_v56 = vmul.f32 1.442695, %v2731_v51 }
 0x609   :  { %7398 = vrcp.f32 %v2678_v63  ;;  %v2736_v59 = vmul.f32 1.442695, %v2730_v12 }
 0x60a   :  { %7400 = vpow2.f32 %v2734_v38 }
 0x60b   :  { %7402 = vpow2.f32 %v2732_v34 }
 0x60c   :  { %7404 = vpow2.f32 %v2738_v56 }
 0x60d   :  { %7406 = vpow2.f32 %v2736_v59 }
 0x60e   :  { %v7393_v5 = vpop.eup %7392 }
 0x60f   :  { %v7395_v6 = vpop.eup %7394  ;;  %v2689_v36 = vmul.f32 1.0614054, %v7393_v5 }
 0x610   :  { %v2688_v33 = vmul.f32 1.0614054, %v7395_v6 }
 0x611   :  { %v2693_v57 = vadd.f32 -1.4531521, %v2689_v36 }
 0x612   :  { %v2692_v44 = vadd.f32 -1.4531521, %v2688_v33  ;;  %v7397_v58 = vpop.eup %7396 }
 0x613   :  { %v2697_v1 = vmul.f32 %v7393_v5, %v2693_v57  ;;  %v2691_v49 = vmul.f32 1.0614054, %v7397_v58  ;;  %v7399_v7 = vpop.eup %7398 }
 0x614   :  { %v2696_v11 = vmul.f32 %v7395_v6, %v2692_v44  ;;  %v2690_v35 = vmul.f32 1.0614054, %v7399_v7  ;;  %v7401_v51 = vpop.eup %7400 }
 0x615   :  { %v2701_v10 = vadd.f32 1.4214138, %v2697_v1  ;;  %v2695_v55 = vadd.f32 -1.4531521, %v2691_v49 }
 0x616   :  { %v2700_v4 = vadd.f32 1.4214138, %v2696_v11  ;;  %v2694_v8 = vadd.f32 -1.4531521, %v2690_v35 }
 0x617   :  { %v2705_v46 = vmul.f32 %v7393_v5, %v2701_v10  ;;  %v2699_v63 = vmul.f32 %v7397_v58, %v2695_v55 }
 0x618   :  { %v2704_v54 = vmul.f32 %v7395_v6, %v2700_v4  ;;  %v2698_v42 = vmul.f32 %v7399_v7, %v2694_v8  ;;  %v7403_v4 = vpop.eup %7402 }
 0x619   :  { %v2709_v52 = vadd.f32 -0.28449672, %v2705_v46  ;;  %v2703_v33 = vadd.f32 1.4214138, %v2699_v63  ;;  %v2665_v63 = vsel %vm2661_vm5, 1.0, %v7547_v62 }
 0x61a   :  { %v2708_v36 = vadd.f32 -0.28449672, %v2704_v54  ;;  %v2702_v1 = vadd.f32 1.4214138, %v2698_v42 }
 0x61b   :  { %v2713_v37 = vmul.f32 %v7393_v5, %v2709_v52  ;;  %v2707_v44 = vmul.f32 %v7397_v58, %v2703_v33 }
 0x61c   :  { %v2712_v57 = vmul.f32 %v7395_v6, %v2708_v36  ;;  %v2706_v34 = vmul.f32 %v7399_v7, %v2702_v1 }
 0x61d   :  { %v2717_v38 = vadd.f32 0.2548296, %v2713_v37  ;;  %v2711_v47 = vadd.f32 -0.28449672, %v2707_v44  ;;  %v2653_v37 = vmul.f32 0.5, %v8637_v2  ;;  %v2652_v44 = vmul.f32 0.5, %v8642_v41 }
 0x61e   :  { %v2716_v11 = vadd.f32 0.2548296, %v2712_v57  ;;  %v2710_v12 = vadd.f32 -0.28449672, %v2706_v34  ;;  %v2666_v41 = vsel %vm2662_vm8, 1.0, %v7547_v62 }
 0x61f   :  { %v2721_v32 = vmul.f32 %v7393_v5, %v2717_v38  ;;  %v2715_v10 = vmul.f32 %v7397_v58, %v2711_v47  ;;  %v7405_v5 = vpop.eup %7404 }
 0x620   :  { %v2720_v49 = vmul.f32 %v7395_v6, %v2716_v11  ;;  %v2714_v54 = vmul.f32 %v7399_v7, %v2710_v12  ;;  %v2664_v6 = vsel %vm2660_vm6, 1.0, %v7547_v62  ;;  %v7407_v57 = vpop.eup %7406  ;;  %v2654_v12 = vmul.f32 0.5, %v8651_v60 }
 0x621   :  { %v2741_v55 = vmul.f32 %v7401_v51, %v2721_v32  ;;  %v2719_v56 = vadd.f32 0.2548296, %v2715_v10 }
 0x622   :  { %v2740_v46 = vmul.f32 %v7403_v4, %v2720_v49  ;;  %v2718_v33 = vadd.f32 0.2548296, %v2714_v54 }
 0x623   :  { %v2745_v35 = vsub.f32 1.0, %v2741_v55  ;;  %v2723_v8 = vmul.f32 %v7397_v58, %v2719_v56  ;;  %v2667_v58 = vsel %vm2663_vm7, 1.0, %v7547_v62 }
 0x624   :  { %v2744_v52 = vsub.f32 1.0, %v2740_v46  ;;  %v2722_v42 = vmul.f32 %v7399_v7, %v2718_v33  ;;  %v2655_v7 = vmul.f32 0.5, %v8649_v45 }
 0x625   :  { %v2749_v36 = vmul.f32 %v2745_v35, %v2665_v63  ;;  %v2743_v40 = vmul.f32 %v7405_v5, %v2723_v8 }
 0x626   :  { %v2748_v59 = vmul.f32 %v2744_v52, %v2664_v6  ;;  %v2742_v47 = vmul.f32 %v7407_v57, %v2722_v42 }
 0x627   :  { %v2753_v13 = vadd.f32 1.0, %v2749_v36  ;;  %v2747_v1 = vsub.f32 1.0, %v2743_v40 }
 0x628   :  { %v2752_v38 = vadd.f32 1.0, %v2748_v59  ;;  %v2746_v51 = vsub.f32 1.0, %v2742_v47 }
 0x629   :  { %v2757_v11 = vmul.f32 %v2753_v13, %v2653_v37  ;;  %v2751_v34 = vmul.f32 %v2747_v1, %v2667_v58 }
 0x62a   :  { %v2756_v32 = vmul.f32 %v2752_v38, %v2652_v44  ;;  %v2750_v4 = vmul.f32 %v2746_v51, %v2666_v41 }
 0x62b   :  { %v2765_v9 = vmul.f32 %v2757_v11, %v8465_v61  ;;  %v2755_v49 = vadd.f32 1.0, %v2751_v34 }
 0x62c   :  { %v2764_v2 = vmul.f32 %v2756_v32, %v8461_v48  ;;  %v2754_v46 = vadd.f32 1.0, %v2750_v4 }
 0x62d   :  { %v8675_v10 = vadd.f32 %v2765_v9, %v8547_v15  ;;  %v2759_v53 = vmul.f32 %v2755_v49, %v2655_v7 }
 0x62e   :  { %v8678_v55 = vadd.f32 %v2764_v2, %v8549_v3  ;;  %v2758_v56 = vmul.f32 %v2754_v46, %v2654_v12 }
 0x62f   :  { %v2767_v61 = vmul.f32 %v2759_v53, %v8473_v39 }
 0x630   :  { %v2766_v45 = vmul.f32 %v2758_v56, %v8469_v43 }
 0x631   :  { %v8683_v48 = vadd.f32 %v2767_v61, %v8555_v50 }
 0x632   :  { %v8687_v35 = vadd.f32 %v2766_v45, %v8558_v14 }
 0x633   :  { %7534 = dma.done.wait [#allocation6 + $0x1], 14336 }
 0x634   :  { %7535 = vsyncadd [#allocation6 + $0x1], 4294952960  ;;  %v8689_v15 = vpack.c.bf16 %v2757_v11, %v2756_v32  ;;  %v8691_v3 = vpack.c.bf16 %v2759_v53, %v2758_v56  ;;  %v2776_v43 = vld [vmem:[#allocation9] sm:$0xff]  ;;  %v2777_v39 = vld [vmem:[#allocation9 + $0x8] sm:$0xff]  ;;  %v6950_v8 = vpack.c.bf16 %v7755_v17, %v7750_v16  ;;  %v6954_v16 = vpack.c.bf16 %v7765_v19, %v7760_v18 }
 0x635   :  { %6026 = vmatprep.mubr.msk.f32.mxu1 %vm889_vm0, %v2776_v43  ;;  %v2778_v50 = vld [vmem:[#allocation9 + $0x10] sm:$0xff]  ;;  %v3181_v14 = vld [vmem:[#allocation9 + $0x40] sm:$0xff]  ;;  %v3182_v60 = vld [vmem:[#allocation9 + $0x48] sm:$0xff]  ;;  %v6958_v18 = vpack.c.bf16 %v7775_v21, %v7770_v20  ;;  %v6962_v13 = vpack.c.bf16 %v7785_v23, %v7780_v22  ;;  %v6966_v42 = vpack.c.bf16 %v7795_v25, %v7790_v24  ;;  %v6970_v57 = vpack.c.bf16 %v7805_v27, %v7800_v26 }
 0x636   :  { %6935 = vmatprep.subr.bf16.mxu1 %v8689_v15  ;;  %7015 = vmatprep.subr.bf16.mxu0 %v8689_v15  ;;  %v3183_v54 = vld [vmem:[#allocation9 + $0x50] sm:$0xff]  ;;  %v2779_v63 = vld [vmem:[#allocation9 + $0x18] sm:$0xff]  ;;  %v2893_v52 = vld [vmem:[#allocation9 + $0x20] sm:$0xff]  ;;  %v6974_v11 = vpack.c.bf16 %v7815_v29, %v7810_v28  ;;  %v6978_v58 = vpack.c.bf16 %v7825_v31, %v7820_v30  ;;  %vm4540_vm13 = vcmask 64512  }
 0x637   :  { %6937 = vmatpush3.bf16.msra.mxu1 %v8689_v15  ;;  %7017 = vmatpush3.bf16.msra.mxu0 %v8689_v15  ;;  %v3184_v5 = vld [vmem:[#allocation9 + $0x58] sm:$0xff]  ;;  %v3388_v36 = vld [vmem:[#allocation9 + $0x60] sm:$0xff]  ;;  %v2894_v6 = vld [vmem:[#allocation9 + $0x28] sm:$0xff] }
 0x638   :  { %6939 = vmatprep.subr.bf16.mxu1 %v8691_v3  ;;  %7019 = vmatprep.subr.bf16.mxu0 %v8691_v3  ;;  %v2895_v33 = vld [vmem:[#allocation9 + $0x30] sm:$0xff]  ;;  %v3389_v17 = vld [vmem:[#allocation9 + $0x68] sm:$0xff]  ;;  %v2896_v40 = vld [vmem:[#allocation9 + $0x38] sm:$0xff] }
 0x639   :  { %6130 = vmatprep.mubr.msk.f32.mxu0 %vm889_vm0, %v3181_v14  ;;  %v3390_v59 = vld [vmem:[#allocation9 + $0x70] sm:$0xff]  ;;  %v3391_v19 = vld [vmem:[#allocation9 + $0x78] sm:$0xff]  ;;  %v3595_v37 = vld [vmem:[#allocation9 + $0x80] sm:$0xff] }
 0x63a   :  { %v3596_v20 = vld [vmem:[#allocation9 + $0x88] sm:$0xff]  ;;  %v3597_v21 = vld [vmem:[#allocation9 + $0x90] sm:$0xff]  ;;  %v3598_v22 = vld [vmem:[#allocation9 + $0x98] sm:$0xff] }
 0x63b   :  { %6941 = vmatpush3.bf16.msra.mxu1 %v8691_v3  ;;  %7021 = vmatpush3.bf16.msra.mxu0 %v8691_v3  ;;  %v3802_v23 = vld [vmem:[#allocation9 + $0xa0] sm:$0xff]  ;;  %v3803_v24 = vld [vmem:[#allocation9 + $0xa8] sm:$0xff]  ;;  %v3804_v25 = vld [vmem:[#allocation9 + $0xb0] sm:$0xff] }
 0x63c   :  { %6943 = vmatprep.subr.bf16.mxu1 %v8689_v15  ;;  %7055 = vmatprep.subr.bf16.mxu0 %v8689_v15  ;;  %v3805_v44 = vld [vmem:[#allocation9 + $0xb8] sm:$0xff]  ;;  %v4010_v26 = vld [vmem:[#allocation9 + $0xc0] sm:$0xff]  ;;  %v4011_v27 = vld [vmem:[#allocation9 + $0xc8] sm:$0xff] }
 0x63d   :  { %v4012_v38 = vld [vmem:[#allocation9 + $0xd0] sm:$0xff]  ;;  %v4013_v1 = vld [vmem:[#allocation9 + $0xd8] sm:$0xff]  ;;  %v9294_v47 = vld [vmem:[#allocation23_spill] sm:$0xff] }
 0x63e   :  { %6027 = vmatmul.mubr.msk.f32.vlgmr.msra.gmra.mrb[32].mxu1 %vm889_vm0, %v2777_v39  ;;  %6131 = vmatmul.mubr.msk.f32.vlgmr.msra.gmra.mrb[32].mxu0 %vm889_vm0, %v3182_v60  ;;  %v6982_v32 = vpack.c.bf16 %v9294_v47, %v7670_v0  ;;  %v9295_v30 = vld [vmem:[#allocation24_spill] sm:$0xff]  ;;  %v9296_v31 = vld [vmem:[#allocation25_spill] sm:$0xff]  ;;  %v9297_v56 = vld [vmem:[#allocation26_spill] sm:$0xff] }
 0x63f   :  { %6945 = vmatpush3.bf16.msra.mxu1 %v8689_v15  ;;  %6029 = vmatprep.mubr.msk.f32.mxu1 %vm889_vm0, %v2778_v50  ;;  %v6986_v53 = vpack.c.bf16 %v9296_v31, %v9295_v30  ;;  %v9298_v45 = vld [vmem:[#allocation27_spill] sm:$0xff]  ;;  %v9299_v39 = vld [vmem:[#allocation28_spill] sm:$0xff]  ;;  %v9300_v50 = vld [vmem:[#allocation29_spill] sm:$0xff] }
 0x640   :  { %6947 = vmatprep.subr.bf16.mxu1 %v8691_v3  ;;  %7057 = vmatpush3.bf16.msra.mxu0 %v8689_v15  ;;  %v6994_v14 = vpack.c.bf16 %v9300_v50, %v9299_v39  ;;  %v9324_v30 = vld [vmem:[#allocation53_spill] sm:$0xff]  ;;  %v9327_v50 = vld [vmem:[#allocation56_spill] sm:$0xff] }
 0x641   :  { %6133 = vmatprep.mubr.msk.f32.mxu0 %vm889_vm0, %v3183_v54  ;;  %7059 = vmatprep.subr.bf16.mxu0 %v8691_v3 }
 0x642   :  { %6030 = vmatmul.mubr.msk.f32.gmra.mrb[34].mxu1 %vm889_vm0, %v2779_v63  ;;  %6134 = vmatmul.mubr.msk.f32.gmra.mrb[34].mxu0 %vm889_vm0, %v3184_v5  ;;  %v9301_v63 = vld [vmem:[#allocation30_spill] sm:$0xff]  ;;  %v9303_v5 = vld [vmem:[#allocation32_spill] sm:$0xff] }
 0x643   :  { %6949 = vmatpush3.bf16.msra.mxu1 %v8691_v3  ;;  %6040 = vmatprep.mubr.msk.f32.mxu1 %vm889_vm0, %v2893_v52  ;;  %v9302_v52 = vld [vmem:[#allocation31_spill] sm:$0xff] }
 0x644   :  { %6951 = vmatprep.subr.bf16.mxu1 %v6950_v8  ;;  %7061 = vmatpush3.bf16.msra.mxu0 %v8691_v3 }
 0x645   :  { %6182 = vmatprep.mubr.msk.f32.mxu0 %vm889_vm0, %v3388_v36  ;;  %7095 = vmatprep.subr.bf16.mxu0 %v8689_v15  ;;  %v9304_v36 = vld [vmem:[#allocation33_spill] sm:$0xff] }
 0x646   :  { %6041 = vmatmul.mubr.msk.f32.vlgmr.msra.gmra.mrb[36].mxu1 %vm889_vm0, %v2894_v6  ;;  %v7002_v6 = vpack.c.bf16 %v9304_v36, %v9303_v5  ;;  %v9330_v5 = vld [vmem:[#allocation59_spill] sm:$0xff] }
 0x647   :  { %6043 = vmatprep.mubr.msk.f32.mxu1 %vm889_vm0, %v2895_v33  ;;  %6953 = vmatpush3.bf16.msra.mxu1 %v6950_v8  ;;  %v6998_v8 = vpack.c.bf16 %v9302_v52, %v9301_v63  ;;  %v9305_v33 = vld [vmem:[#allocation34_spill] sm:$0xff] }
 0x648   :  { %6183 = vmatmul.mubr.msk.f32.vlgmr.msra.gmra.mrb[36].mxu0 %vm889_vm0, %v3389_v17  ;;  %6955 = vmatprep.subr.bf16.mxu1 %v6954_v16 }
 0x649   :  { %7097 = vmatpush3.bf16.msra.mxu0 %v8689_v15  ;;  %6185 = vmatprep.mubr.msk.f32.mxu0 %vm889_vm0, %v3390_v59 }
 0x64a   :  { %6044 = vmatmul.mubr.msk.f32.gmra.mrb[38].mxu1 %vm889_vm0, %v2896_v40  ;;  %7099 = vmatprep.subr.bf16.mxu0 %v8691_v3  ;;  %v9307_v40 = vld [vmem:[#allocation36_spill] sm:$0xff] }
 0x64b   :  { %6957 = vmatpush3.bf16.msra.mxu1 %v6954_v16  ;;  %v9306_v16 = vld [vmem:[#allocation35_spill] sm:$0xff] }
 0x64c   :  { %6186 = vmatmul.mubr.msk.f32.gmra.mrb[38].mxu0 %vm889_vm0, %v3391_v19  ;;  %6959 = vmatprep.subr.bf16.mxu1 %v6958_v18  ;;  %v7006_v17 = vpack.c.bf16 %v9306_v16, %v9305_v33  ;;  %v9332_v33 = vld [vmem:[#allocation61_spill] sm:$0xff] }
 0x64d   :  { %7101 = vmatpush3.bf16.msra.mxu0 %v8691_v3  ;;  %6234 = vmatprep.mubr.msk.f32.mxu0 %vm889_vm0, %v3595_v37 }
 0x64e   :  { %7135 = vmatprep.subr.bf16.mxu0 %v8689_v15 }
 0x64f   :  { %6961 = vmatpush3.bf16.msra.mxu1 %v6958_v18  ;;  %v9308_v18 = vld [vmem:[#allocation37_spill] sm:$0xff] }
 0x650   :  { %6235 = vmatmul.mubr.msk.f32.vlgmr.msra.gmra.mrb[40].mxu0 %vm889_vm0, %v3596_v20  ;;  %6963 = vmatprep.subr.bf16.mxu1 %v6962_v13  ;;  %v7010_v19 = vpack.c.bf16 %v9308_v18, %v9307_v40  ;;  %v9310_v20 = vld [vmem:[#allocation39_spill] sm:$0xff]  ;;  %v9336_v18 = vld [vmem:[#allocation65_spill] sm:$0xff] }
 0x651   :  { %7137 = vmatpush3.bf16.msra.mxu0 %v8689_v15  ;;  %6237 = vmatprep.mubr.msk.f32.mxu0 %vm889_vm0, %v3597_v21 }
 0x652   :  { %7139 = vmatprep.subr.bf16.mxu0 %v8691_v3 }
 0x653   :  { %6965 = vmatpush3.bf16.msra.mxu1 %v6962_v13  ;;  %v9309_v13 = vld [vmem:[#allocation38_spill] sm:$0xff] }
 0x654   :  { %6238 = vmatmul.mubr.msk.f32.gmra.mrb[42].mxu0 %vm889_vm0, %v3598_v22  ;;  %6967 = vmatprep.subr.bf16.mxu1 %v6966_v42  ;;  %v7022_v21 = vpack.c.bf16 %v9310_v20, %v9309_v13  ;;  %v9338_v13 = vld [vmem:[#allocation67_spill] sm:$0xff] }
 0x655   :  { %7141 = vmatpush3.bf16.msra.mxu0 %v8691_v3  ;;  %6286 = vmatprep.mubr.msk.f32.mxu0 %vm889_vm0, %v3802_v23  ;;  %v9311_v23 = vld [vmem:[#allocation40_spill] sm:$0xff] }
 0x656   :  { %7175 = vmatprep.subr.bf16.mxu0 %v8689_v15 }
 0x657   :  { %6969 = vmatpush3.bf16.msra.mxu1 %v6966_v42 }
 0x658   :  { %6287 = vmatmul.mubr.msk.f32.vlgmr.msra.gmra.mrb[44].mxu0 %vm889_vm0, %v3803_v24  ;;  %6971 = vmatprep.subr.bf16.mxu1 %v6970_v57 }
 0x659   :  { %7177 = vmatpush3.bf16.msra.mxu0 %v8689_v15  ;;  %6289 = vmatprep.mubr.msk.f32.mxu0 %vm889_vm0, %v3804_v25  ;;  %v6990_v15 = vpack.c.bf16 %v9298_v45, %v9297_v56  ;;  %v9313_v25 = vld [vmem:[#allocation42_spill] sm:$0xff]  ;;  %v9326_v56 = vld [vmem:[#allocation55_spill] sm:$0xff] }
 0x65a   :  { %7179 = vmatprep.subr.bf16.mxu0 %v8691_v3 }
 0x65b   :  { %6973 = vmatpush3.bf16.msra.mxu1 %v6970_v57  ;;  %v9312_v57 = vld [vmem:[#allocation41_spill] sm:$0xff] }
 0x65c   :  { %6290 = vmatmul.mubr.msk.f32.gmra.mrb[46].mxu0 %vm889_vm0, %v3805_v44  ;;  %6975 = vmatprep.subr.bf16.mxu1 %v6974_v11  ;;  %v7026_v24 = vpack.c.bf16 %v9312_v57, %v9311_v23  ;;  %v9314_v44 = vld [vmem:[#allocation43_spill] sm:$0xff]  ;;  %v9341_v57 = vld [vmem:[#allocation70_spill] sm:$0xff] }
 0x65d   :  { %7181 = vmatpush3.bf16.msra.mxu0 %v8691_v3  ;;  %6338 = vmatprep.mubr.msk.f32.mxu0 %vm889_vm0, %v4010_v26  ;;  %v7030_v26 = vpack.c.bf16 %v9314_v44, %v9313_v25  ;;  %v9343_v44 = vld [vmem:[#allocation72_spill] sm:$0xff] }
 0x65f   :  { %6977 = vmatpush3.bf16.msra.mxu1 %v6974_v11  ;;  %v9317_v11 = vld [vmem:[#allocation46_spill] sm:$0xff] }
 0x660   :  { %6339 = vmatmul.mubr.msk.f32.vlgmr.msra.gmra.mrb[48].mxu0 %vm889_vm0, %v4011_v27  ;;  %6979 = vmatprep.subr.bf16.mxu1 %v6978_v58  ;;  %v9315_v27 = vld [vmem:[#allocation44_spill] sm:$0xff] }
 0x661   :  { %6341 = vmatprep.mubr.msk.f32.mxu0 %vm889_vm0, %v4012_v38  ;;  %v9316_v38 = vld [vmem:[#allocation45_spill] sm:$0xff] }
 0x663   :  { %6981 = vmatpush3.bf16.msra.mxu1 %v6978_v58  ;;  %v9318_v58 = vld [vmem:[#allocation47_spill] sm:$0xff] }
 0x664   :  { %6342 = vmatmul.mubr.msk.f32.gmra.mrb[50].mxu0 %vm889_vm0, %v4013_v1  ;;  %6983 = vmatprep.subr.bf16.mxu1 %v6982_v32  ;;  %v7034_v1 = vpack.c.bf16 %v9316_v38, %v9315_v27  ;;  %v7038_v47 = vpack.c.bf16 %v9318_v58, %v9317_v11  ;;  %v9345_v38 = vld [vmem:[#allocation74_spill] sm:$0xff]  ;;  %v9347_v58 = vld [vmem:[#allocation76_spill] sm:$0xff] }
 0x711   :  { %v6028_v34 = vpop.f32.mrb[32].mxu1  ;;  %v8767_v51 = vpop.f32.mrb[32].mxu0 }
 0x712   :  { %v2858_v9 = vpop.f32.mrb[33].mxu1  ;;  %v3263_v2 = vpop.f32.mrb[33].mxu0 }
 0x715   :  { %v6031_v7 = vpop.f32.mrb[34].mxu1  ;;  %v8769_v41 = vpop.f32.mrb[34].mxu0 }
 0x716   :  { %v2868_v49 = vpop.f32.mrb[35].mxu1  ;;  %v8771_v28 = vpop.f32.mrb[35].mxu0 }
 0x719   :  { %v6042_v29 = vpop.f32.mrb[36].mxu1 }
 0x71a   :  { %v2975_v4 = vpop.f32.mrb[37].mxu1 }
 0x71b   :  { %6078 = vmatprep.mubr.f32.mxu1 %v2975_v4  ;;  %v8775_v12 = vpop.f32.mrb[36].mxu0  ;;  %v9323_v4 = vld [vmem:[#allocation52_spill] sm:$0xff] }
 0x71c   :  { %6079 = vmatmul.mubr.f32.vlgmr.msra.gmra.mrb[40].mxu1 %v6042_v29  ;;  %v8777_v0 = vpop.f32.mrb[37].mxu0  ;;  %v7050_v31 = vpack.c.bf16 %v9324_v30, %v9323_v4  ;;  %v9356_v30 = vld [vmem:[#allocation85_spill] sm:$0xff] }
 0x71d   :  { %6985 = vmatpush3.bf16.msra.mxu1 %v6982_v32  ;;  %v6045_v46 = vpop.f32.mrb[38].mxu1  ;;  %v9319_v32 = vld [vmem:[#allocation48_spill] sm:$0xff] }
 0x71e   :  { %v2985_v61 = vpop.f32.mrb[39].mxu1  ;;  %6987 = vmatprep.subr.bf16.mxu1 %v6986_v53 }
 0x71f   :  { %6081 = vmatprep.mubr.f32.mxu1 %v2985_v61  ;;  %v8781_v3 = vpop.f32.mrb[38].mxu0  ;;  %v9325_v61 = vld [vmem:[#allocation54_spill] sm:$0xff] }
 0x720   :  { %6082 = vmatmul.mubr.f32.gmra.mrb[42].mxu1 %v6045_v46  ;;  %v8783_v43 = vpop.f32.mrb[39].mxu0  ;;  %v7062_v45 = vpack.c.bf16 %v9326_v56, %v9325_v61  ;;  %v9357_v61 = vld [vmem:[#allocation86_spill] sm:$0xff]  ;;  %v9358_v56 = vld [vmem:[#allocation87_spill] sm:$0xff] }
 0x721   :  { %6989 = vmatpush3.bf16.msra.mxu1 %v6986_v53  ;;  %6116 = vmatprep.mubr.f32.mxu1 %v2858_v9 }
 0x722   :  { %6991 = vmatprep.subr.bf16.mxu1 %v6990_v15 }
 0x723   :  { %v8787_v60 = vpop.f32.mrb[40].mxu0 }
 0x724   :  { %v8789_v54 = vpop.f32.mrb[41].mxu0 }
 0x725   :  { %6993 = vmatpush3.bf16.msra.mxu1 %v6990_v15 }
 0x726   :  { %6995 = vmatprep.subr.bf16.mxu1 %v6994_v14 }
 0x727   :  { %v8797_v59 = vpop.f32.mrb[42].mxu0 }
 0x728   :  { %v8801_v37 = vpop.f32.mrb[43].mxu0 }
 0x729   :  { %6997 = vmatpush3.bf16.msra.mxu1 %v6994_v14  ;;  %v9328_v14 = vld [vmem:[#allocation57_spill] sm:$0xff] }
 0x72a   :  { %6999 = vmatprep.subr.bf16.mxu1 %v6998_v8  ;;  %v7066_v63 = vpack.c.bf16 %v9328_v14, %v9327_v50  ;;  %v9359_v50 = vld [vmem:[#allocation88_spill] sm:$0xff]  ;;  %v9360_v14 = vld [vmem:[#allocation89_spill] sm:$0xff] }
 0x72b   :  { %v8805_v42 = vpop.f32.mrb[44].mxu0 }
 0x72c   :  { %v8807_v22 = vpop.f32.mrb[45].mxu0 }
 0x72d   :  { %7001 = vmatpush3.bf16.msra.mxu1 %v6998_v8  ;;  %v9329_v8 = vld [vmem:[#allocation58_spill] sm:$0xff] }
 0x72e   :  { %7003 = vmatprep.subr.bf16.mxu1 %v7002_v6  ;;  %v7070_v36 = vpack.c.bf16 %v9330_v5, %v9329_v8  ;;  %v9361_v8 = vld [vmem:[#allocation90_spill] sm:$0xff]  ;;  %v9362_v5 = vld [vmem:[#allocation91_spill] sm:$0xff] }
 0x731   :  { %7005 = vmatpush3.bf16.msra.mxu1 %v7002_v6  ;;  %v9331_v6 = vld [vmem:[#allocation60_spill] sm:$0xff] }
 0x732   :  { %7007 = vmatprep.subr.bf16.mxu1 %v7006_v17  ;;  %v7074_v16 = vpack.c.bf16 %v9332_v33, %v9331_v6  ;;  %v9363_v6 = vld [vmem:[#allocation92_spill] sm:$0xff]  ;;  %v9364_v33 = vld [vmem:[#allocation93_spill] sm:$0xff] }
 0x735   :  { %7009 = vmatpush3.bf16.msra.mxu1 %v7006_v17  ;;  %v9334_v17 = vld [vmem:[#allocation63_spill] sm:$0xff] }
 0x736   :  { %7011 = vmatprep.subr.bf16.mxu1 %v7010_v19 }
 0x739   :  { %7013 = vmatpush3.bf16.msra.mxu1 %v7010_v19 }
 0x73a   :  { %7023 = vmatprep.subr.bf16.mxu1 %v7022_v21 }
 0x73c   :  { %6117 = vmatmul.mubr.f32.vlgmr.msra.gmra.mrb[40].mxu1 %v6028_v34  ;;  %v9320_v34 = vld [vmem:[#allocation49_spill] sm:$0xff] }
 0x73d   :  { %6119 = vmatprep.mubr.f32.mxu1 %v2868_v49  ;;  %7025 = vmatpush3.bf16.msra.mxu1 %v7022_v21  ;;  %v7042_v9 = vpack.c.bf16 %v9320_v34, %v9319_v32  ;;  %v9321_v49 = vld [vmem:[#allocation50_spill] sm:$0xff]  ;;  %v9340_v21 = vld [vmem:[#allocation69_spill] sm:$0xff] }
 0x73e   :  { %7027 = vmatprep.subr.bf16.mxu1 %v7026_v24  ;;  %v9349_v34 = vld [vmem:[#allocation78_spill] sm:$0xff] }
 0x740   :  { %6120 = vmatmul.mubr.f32.gmra.mrb[42].mxu1 %v6031_v7  ;;  %v9322_v7 = vld [vmem:[#allocation51_spill] sm:$0xff] }
 0x741   :  { %7029 = vmatpush3.bf16.msra.mxu1 %v7026_v24  ;;  %6168 = vmatprep.mubr.f32.mxu1 %v3263_v2  ;;  %v7046_v29 = vpack.c.bf16 %v9322_v7, %v9321_v49  ;;  %v8821_v2 = vpop.f32.mrb[46].mxu0  ;;  %v9342_v24 = vld [vmem:[#allocation71_spill] sm:$0xff]  ;;  %v9352_v49 = vld [vmem:[#allocation81_spill] sm:$0xff] }
 0x742   :  { %7031 = vmatprep.subr.bf16.mxu1 %v7030_v26  ;;  %v8825_v53 = vpop.f32.mrb[47].mxu0  ;;  %v7102_v25 = vpack.c.bf16 %v9342_v24, %v9341_v57  ;;  %v9376_v57 = vld [vmem:[#allocation105_spill] sm:$0xff] }
 0x743   :  { %v8827_v46 = vpop.f32.mrb[48].mxu0 }
 0x744   :  { %v8831_v15 = vpop.f32.mrb[49].mxu0 }
 0x745   :  { %7033 = vmatpush3.bf16.msra.mxu1 %v7030_v26  ;;  %v8833_v39 = vpop.f32.mrb[50].mxu0  ;;  %v9344_v26 = vld [vmem:[#allocation73_spill] sm:$0xff] }
 0x746   :  { %7035 = vmatprep.subr.bf16.mxu1 %v7034_v1  ;;  %v8838_v52 = vpop.f32.mrb[51].mxu0  ;;  %v7106_v27 = vpack.c.bf16 %v9344_v26, %v9343_v44  ;;  %v9378_v44 = vld [vmem:[#allocation107_spill] sm:$0xff] }
 0x749   :  { %7037 = vmatpush3.bf16.msra.mxu1 %v7034_v1  ;;  %v9346_v1 = vld [vmem:[#allocation75_spill] sm:$0xff] }
 0x74a   :  { %7039 = vmatprep.subr.bf16.mxu1 %v7038_v47  ;;  %v7110_v11 = vpack.c.bf16 %v9346_v1, %v9345_v38  ;;  %v9380_v38 = vld [vmem:[#allocation109_spill] sm:$0xff] }
 0x74d   :  { %7041 = vmatpush3.bf16.msra.mxu1 %v7038_v47  ;;  %v9348_v47 = vld [vmem:[#allocation77_spill] sm:$0xff] }
 0x74e   :  { %7043 = vmatprep.subr.bf16.mxu1 %v7042_v9  ;;  %v7114_v32 = vpack.c.bf16 %v9348_v47, %v9347_v58  ;;  %v9384_v47 = vld [vmem:[#allocation113_spill] sm:$0xff] }
 0x751   :  { %7045 = vmatpush3.bf16.msra.mxu1 %v7042_v9 }
 0x752   :  { %7047 = vmatprep.subr.bf16.mxu1 %v7046_v29 }
 0x755   :  { %7049 = vmatpush3.bf16.msra.mxu1 %v7046_v29  ;;  %v9354_v29 = vld [vmem:[#allocation83_spill] sm:$0xff] }
 0x756   :  { %7051 = vmatprep.subr.bf16.mxu1 %v7050_v31 }
 0x759   :  { %7053 = vmatpush3.bf16.msra.mxu1 %v7050_v31 }
 0x75a   :  { %7063 = vmatprep.subr.bf16.mxu1 %v7062_v45 }
 0x75c   :  { %6169 = vmatmul.mubr.f32.vlgmr.msra.gmra.mrb[40].mxu1 %v8767_v51  ;;  %v9333_v51 = vld [vmem:[#allocation62_spill] sm:$0xff] }
 0x75d   :  { %7065 = vmatpush3.bf16.msra.mxu1 %v7062_v45  ;;  %6171 = vmatprep.mubr.f32.mxu1 %v8771_v28  ;;  %v7078_v40 = vpack.c.bf16 %v9334_v17, %v9333_v51  ;;  %v9335_v28 = vld [vmem:[#allocation64_spill] sm:$0xff]  ;;  %v7142_v45 = vpack.c.bf16 %v9358_v56, %v9357_v61  ;;  %v9365_v51 = vld [vmem:[#allocation94_spill] sm:$0xff]  ;;  %v4345_v56 = vld [vmem:[%s9144_s5 + $0x40] sm:$0xff] }
 0x75e   :  { %7067 = vmatprep.subr.bf16.mxu1 %v7066_v63  ;;  %v7082_v19 = vpack.c.bf16 %v9336_v18, %v9335_v28  ;;  %v9370_v18 = vld [vmem:[#allocation99_spill] sm:$0xff] }
 0x760   :  { %6172 = vmatmul.mubr.f32.gmra.mrb[42].mxu1 %v8769_v41  ;;  %v9337_v41 = vld [vmem:[#allocation66_spill] sm:$0xff] }
 0x761   :  { %7069 = vmatpush3.bf16.msra.mxu1 %v7066_v63  ;;  %6220 = vmatprep.mubr.f32.mxu1 %v8777_v0  ;;  %v7086_v20 = vpack.c.bf16 %v9338_v13, %v9337_v41  ;;  %v9339_v0 = vld [vmem:[#allocation68_spill] sm:$0xff]  ;;  %v7146_v63 = vpack.c.bf16 %v9360_v14, %v9359_v50  ;;  %v9372_v41 = vld [vmem:[#allocation101_spill] sm:$0xff] }
 0x762   :  { %7071 = vmatprep.subr.bf16.mxu1 %v7070_v36  ;;  %v7090_v23 = vpack.c.bf16 %v9340_v21, %v9339_v0  ;;  %v9374_v0 = vld [vmem:[#allocation103_spill] sm:$0xff]  ;;  %v4347_v14 = vld [vmem:[%s9144_s5 + $0x50] sm:$0xff] }
 0x765   :  { %7073 = vmatpush3.bf16.msra.mxu1 %v7070_v36  ;;  %v7150_v36 = vpack.c.bf16 %v9362_v5, %v9361_v8  ;;  %v4349_v5 = vld [vmem:[%s9144_s5 + $0x60] sm:$0xff] }
 0x766   :  { %7075 = vmatprep.subr.bf16.mxu1 %v7074_v16 }
 0x769   :  { %7077 = vmatpush3.bf16.msra.mxu1 %v7074_v16  ;;  %v7154_v16 = vpack.c.bf16 %v9364_v33, %v9363_v6  ;;  %v4351_v33 = vld [vmem:[%s9144_s5 + $0x70] sm:$0xff] }
 0x76a   :  { %7079 = vmatprep.subr.bf16.mxu1 %v7078_v40 }
 0x76d   :  { %7081 = vmatpush3.bf16.msra.mxu1 %v7078_v40  ;;  %v9368_v40 = vld [vmem:[#allocation97_spill] sm:$0xff] }
 0x76e   :  { %7083 = vmatprep.subr.bf16.mxu1 %v7082_v19 }
 0x771   :  { %7085 = vmatpush3.bf16.msra.mxu1 %v7082_v19 }
 0x772   :  { %7087 = vmatprep.subr.bf16.mxu1 %v7086_v20 }
 0x775   :  { %7089 = vmatpush3.bf16.msra.mxu1 %v7086_v20  ;;  %v9373_v20 = vld [vmem:[#allocation102_spill] sm:$0xff] }
 0x776   :  { %7091 = vmatprep.subr.bf16.mxu1 %v7090_v23  ;;  %v7182_v21 = vpack.c.bf16 %v9374_v0, %v9373_v20 }
 0x779   :  { %7093 = vmatpush3.bf16.msra.mxu1 %v7090_v23  ;;  %v9375_v23 = vld [vmem:[#allocation104_spill] sm:$0xff] }
 0x77a   :  { %7103 = vmatprep.subr.bf16.mxu1 %v7102_v25  ;;  %v7186_v24 = vpack.c.bf16 %v9376_v57, %v9375_v23 }
 0x77c   :  { %6221 = vmatmul.mubr.f32.vlgmr.msra.gmra.mrb[40].mxu1 %v8775_v12  ;;  %v9350_v12 = vld [vmem:[#allocation79_spill] sm:$0xff] }
 0x77d   :  { %7105 = vmatpush3.bf16.msra.mxu1 %v7102_v25  ;;  %6223 = vmatprep.mubr.f32.mxu1 %v8783_v43  ;;  %v7118_v9 = vpack.c.bf16 %v9350_v12, %v9349_v34  ;;  %v9351_v43 = vld [vmem:[#allocation80_spill] sm:$0xff]  ;;  %v9377_v25 = vld [vmem:[#allocation106_spill] sm:$0xff]  ;;  %v9386_v34 = vld [vmem:[#allocation115_spill] sm:$0xff] }
 0x77e   :  { %7107 = vmatprep.subr.bf16.mxu1 %v7106_v27  ;;  %v7122_v7 = vpack.c.bf16 %v9352_v49, %v9351_v43  ;;  %v7190_v26 = vpack.c.bf16 %v9378_v44, %v9377_v25  ;;  %v4337_v49 = vld [vmem:[%s9144_s5] sm:$0xff] }
 0x780   :  { %6224 = vmatmul.mubr.f32.gmra.mrb[42].mxu1 %v8781_v3  ;;  %v9353_v3 = vld [vmem:[#allocation82_spill] sm:$0xff] }
 0x781   :  { %7109 = vmatpush3.bf16.msra.mxu1 %v7106_v27  ;;  %6272 = vmatprep.mubr.f32.mxu1 %v8789_v54  ;;  %v7126_v4 = vpack.c.bf16 %v9354_v29, %v9353_v3  ;;  %v9355_v54 = vld [vmem:[#allocation84_spill] sm:$0xff]  ;;  %v4339_v29 = vld [vmem:[%s9144_s5 + $0x10] sm:$0xff] }
 0x782   :  { %7111 = vmatprep.subr.bf16.mxu1 %v7110_v11  ;;  %v7130_v31 = vpack.c.bf16 %v9356_v30, %v9355_v54  ;;  %v9379_v27 = vld [vmem:[#allocation108_spill] sm:$0xff]  ;;  %v4343_v30 = vld [vmem:[%s9144_s5 + $0x30] sm:$0xff] }
 0x783   :  { %v7194_v1 = vpack.c.bf16 %v9380_v38, %v9379_v27 }
 0x785   :  { %7113 = vmatpush3.bf16.msra.mxu1 %v7110_v11  ;;  %v9381_v11 = vld [vmem:[#allocation110_spill] sm:$0xff] }
 0x786   :  { %7115 = vmatprep.subr.bf16.mxu1 %v7114_v32 }
 0x789   :  { %7117 = vmatpush3.bf16.msra.mxu1 %v7114_v32 }
 0x78a   :  { %7119 = vmatprep.subr.bf16.mxu1 %v7118_v9 }
 0x78d   :  { %7121 = vmatpush3.bf16.msra.mxu1 %v7118_v9  ;;  %v9388_v9 = vld [vmem:[#allocation117_spill] sm:$0xff] }
 0x78e   :  { %7123 = vmatprep.subr.bf16.mxu1 %v7122_v7 }
 0x791   :  { %7125 = vmatpush3.bf16.msra.mxu1 %v7122_v7  ;;  %v4338_v7 = vld [vmem:[%s9144_s5 + $0x8] sm:$0xff] }
 0x792   :  { %7127 = vmatprep.subr.bf16.mxu1 %v7126_v4  ;;  %v7214_v3 = vpack.c.bf16 %v4338_v7, %v4337_v49 }
 0x794   :  { %7215 = vmatprep.subr.bf16.mxu0 %v7214_v3 }
 0x795   :  { %7129 = vmatpush3.bf16.msra.mxu1 %v7126_v4  ;;  %7217 = vmatpush3.bf16.msra.mxu0 %v7214_v3  ;;  %v4342_v4 = vld [vmem:[%s9144_s5 + $0x28] sm:$0xff] }
 0x796   :  { %7131 = vmatprep.subr.bf16.mxu1 %v7130_v31 }
 0x799   :  { %7133 = vmatpush3.bf16.msra.mxu1 %v7130_v31  ;;  %v4344_v31 = vld [vmem:[%s9144_s5 + $0x38] sm:$0xff] }
 0x79a   :  { %7143 = vmatprep.subr.bf16.mxu1 %v7142_v45  ;;  %v7226_v61 = vpack.c.bf16 %v4344_v31, %v4343_v30 }
 0x79c   :  { %6273 = vmatmul.mubr.f32.vlgmr.msra.gmra.mrb[40].mxu1 %v8787_v60  ;;  %v9366_v60 = vld [vmem:[#allocation95_spill] sm:$0xff] }
 0x79d   :  { %7145 = vmatpush3.bf16.msra.mxu1 %v7142_v45  ;;  %6275 = vmatprep.mubr.f32.mxu1 %v8801_v37  ;;  %v7158_v17 = vpack.c.bf16 %v9366_v60, %v9365_v51  ;;  %v9367_v37 = vld [vmem:[#allocation96_spill] sm:$0xff] }
 0x79e   :  { %7147 = vmatprep.subr.bf16.mxu1 %v7146_v63  ;;  %v7162_v28 = vpack.c.bf16 %v9368_v40, %v9367_v37  ;;  %v4346_v45 = vld [vmem:[%s9144_s5 + $0x48] sm:$0xff] }
 0x79f   :  { %v7230_v50 = vpack.c.bf16 %v4346_v45, %v4345_v56 }
 0x7a0   :  { %6276 = vmatmul.mubr.f32.gmra.mrb[42].mxu1 %v8797_v59  ;;  %v9369_v59 = vld [vmem:[#allocation98_spill] sm:$0xff] }
 0x7a1   :  { %7149 = vmatpush3.bf16.msra.mxu1 %v7146_v63  ;;  %6324 = vmatprep.mubr.f32.mxu1 %v8807_v22  ;;  %v7166_v19 = vpack.c.bf16 %v9370_v18, %v9369_v59  ;;  %v9371_v22 = vld [vmem:[#allocation100_spill] sm:$0xff]  ;;  %v4348_v63 = vld [vmem:[%s9144_s5 + $0x58] sm:$0xff] }
 0x7a2   :  { %7151 = vmatprep.subr.bf16.mxu1 %v7150_v36  ;;  %v7170_v13 = vpack.c.bf16 %v9372_v41, %v9371_v22  ;;  %v7234_v8 = vpack.c.bf16 %v4348_v63, %v4347_v14 }
 0x7a5   :  { %7153 = vmatpush3.bf16.msra.mxu1 %v7150_v36  ;;  %v4350_v36 = vld [vmem:[%s9144_s5 + $0x68] sm:$0xff] }
 0x7a6   :  { %7155 = vmatprep.subr.bf16.mxu1 %v7154_v16  ;;  %v7238_v6 = vpack.c.bf16 %v4350_v36, %v4349_v5 }
 0x7a9   :  { %7157 = vmatpush3.bf16.msra.mxu1 %v7154_v16  ;;  %v4352_v16 = vld [vmem:[%s9144_s5 + $0x78] sm:$0xff] }
 0x7aa   :  { %7159 = vmatprep.subr.bf16.mxu1 %v7158_v17  ;;  %v7242_v51 = vpack.c.bf16 %v4352_v16, %v4351_v33 }
 0x7ad   :  { %7161 = vmatpush3.bf16.msra.mxu1 %v7158_v17 }
 0x7ae   :  { %7163 = vmatprep.subr.bf16.mxu1 %v7162_v28 }
 0x7b1   :  { %7165 = vmatpush3.bf16.msra.mxu1 %v7162_v28 }
 0x7b2   :  { %7167 = vmatprep.subr.bf16.mxu1 %v7166_v19 }
 0x7b5   :  { %7169 = vmatpush3.bf16.msra.mxu1 %v7166_v19 }
 0x7b6   :  { %7171 = vmatprep.subr.bf16.mxu1 %v7170_v13 }
 0x7b9   :  { %7173 = vmatpush3.bf16.msra.mxu1 %v7170_v13 }
 0x7ba   :  { %7183 = vmatprep.subr.bf16.mxu1 %v7182_v21 }
 0x7bc   :  { %6325 = vmatmul.mubr.f32.vlgmr.msra.gmra.mrb[40].mxu1 %v8805_v42  ;;  %v9382_v42 = vld [vmem:[#allocation111_spill] sm:$0xff] }
 0x7bd   :  { %7185 = vmatpush3.bf16.msra.mxu1 %v7182_v21  ;;  %6327 = vmatprep.mubr.f32.mxu1 %v8825_v53  ;;  %v7198_v58 = vpack.c.bf16 %v9382_v42, %v9381_v11  ;;  %v9383_v53 = vld [vmem:[#allocation112_spill] sm:$0xff] }
 0x7be   :  { %7187 = vmatprep.subr.bf16.mxu1 %v7186_v24  ;;  %v7202_v32 = vpack.c.bf16 %v9384_v47, %v9383_v53 }
 0x7c0   :  { %6328 = vmatmul.mubr.f32.gmra.mrb[42].mxu1 %v8821_v2  ;;  %v9385_v2 = vld [vmem:[#allocation114_spill] sm:$0xff] }
 0x7c1   :  { %7189 = vmatpush3.bf16.msra.mxu1 %v7186_v24  ;;  %6376 = vmatprep.mubr.f32.mxu1 %v8831_v15  ;;  %v7206_v12 = vpack.c.bf16 %v9386_v34, %v9385_v2  ;;  %v9387_v15 = vld [vmem:[#allocation116_spill] sm:$0xff] }
 0x7c2   :  { %7191 = vmatprep.subr.bf16.mxu1 %v7190_v26  ;;  %v7210_v43 = vpack.c.bf16 %v9388_v9, %v9387_v15 }
 0x7c5   :  { %7193 = vmatpush3.bf16.msra.mxu1 %v7190_v26 }
 0x7c6   :  { %7195 = vmatprep.subr.bf16.mxu1 %v7194_v1 }
 0x7c9   :  { %7197 = vmatpush3.bf16.msra.mxu1 %v7194_v1 }
 0x7ca   :  { %7199 = vmatprep.subr.bf16.mxu1 %v7198_v58 }
 0x7cd   :  { %7201 = vmatpush3.bf16.msra.mxu1 %v7198_v58 }
 0x7ce   :  { %7203 = vmatprep.subr.bf16.mxu1 %v7202_v32 }
 0x7d1   :  { %7205 = vmatpush3.bf16.msra.mxu1 %v7202_v32 }
 0x7d2   :  { %7207 = vmatprep.subr.bf16.mxu1 %v7206_v12 }
 0x7d5   :  { %7209 = vmatpush3.bf16.msra.mxu1 %v7206_v12 }
 0x7d6   :  { %7211 = vmatprep.subr.bf16.mxu1 %v7210_v43 }
 0x7d9   :  { %7213 = vmatpush3.bf16.msra.mxu1 %v7210_v43 }
 0x7dc   :  { %6377 = vmatmul.mubr.f32.vlgmr.msra.gmra.mrb[40].mxu1 %v8827_v46  ;;  %v4340_v46 = vld [vmem:[%s9144_s5 + $0x18] sm:$0xff] }
 0x7dd   :  { %6379 = vmatprep.mubr.f32.mxu1 %v8838_v52  ;;  %v4341_v52 = vld [vmem:[%s9144_s5 + $0x20] sm:$0xff] }
 0x7de   :  { %v7222_v54 = vpack.c.bf16 %v4342_v4, %v4341_v52 }
 0x7e0   :  { %6380 = vmatmul.mubr.f32.gmra.mrb[42].mxu1 %v8833_v39  ;;  %v7218_v39 = vpack.c.bf16 %v4340_v46, %v4339_v29 }
 0x7e2   :  { %7219 = vmatprep.subr.bf16.mxu0 %v7218_v39 }
 0x7e3   :  { %7221 = vmatpush3.bf16.msra.mxu0 %v7218_v39 }
 0x7e4   :  { %7223 = vmatprep.subr.bf16.mxu0 %v7222_v54 }
 0x7e7   :  { %7225 = vmatpush3.bf16.msra.mxu0 %v7222_v54 }
 0x7e8   :  { %7227 = vmatprep.subr.bf16.mxu0 %v7226_v61 }
 0x7eb   :  { %7229 = vmatpush3.bf16.msra.mxu0 %v7226_v61 }
 0x7ec   :  { %7231 = vmatprep.subr.bf16.mxu0 %v7230_v50 }
 0x7ef   :  { %7233 = vmatpush3.bf16.msra.mxu0 %v7230_v50 }
 0x7f0   :  { %7235 = vmatprep.subr.bf16.mxu0 %v7234_v8 }
 0x7f3   :  { %7237 = vmatpush3.bf16.msra.mxu0 %v7234_v8 }
 0x7f4   :  { %7239 = vmatprep.subr.bf16.mxu0 %v7238_v6 }
 0x7f7   :  { %7241 = vmatpush3.bf16.msra.mxu0 %v7238_v6 }
 0x7f8   :  { %7243 = vmatprep.subr.bf16.mxu0 %v7242_v51 }
 0x7fb   :  { %7245 = vmatpush3.bf16.msra.mxu0 %v7242_v51 }
 0x8af   :  { %v8966_v60 = vpop.f32.mrb[40].mxu1 }
 0x8b0   :  { %v8969_v17 = vmul.f32 0.70710677, %v8966_v60  ;;  %v8971_v37 = vpop.f32.mrb[41].mxu1 }
 0x8b1   :  { %v8974_v40 = vmul.f32 0.70710677, %v8971_v37 }
 0x8b2   :  { %v4234_v28 = vand.u32 2147483647, %v8969_v17  ;;  %vm4226_vm9 = vcmp.ge.f32.partialorder %v8969_v17, 0.0 }
 0x8b3   :  { %v4233_v59 = vand.u32 2147483647, %v8974_v40  ;;  %v8978_v18 = vpop.f32.mrb[42].mxu1  ;;  %vm4225_vm10 = vcmp.ge.f32.partialorder %v8974_v40, 0.0 }
 0x8b4   :  { %v4238_v19 = vmul.f32 0.3275911, %v4234_v28  ;;  %v8980_v22 = vpop.f32.mrb[43].mxu1  ;;  %v8983_v13 = vmul.f32 0.70710677, %v8978_v18  ;;  %v4290_v26 = vsub.f32 0.0, %v4234_v28 }
 0x8b5   :  { %v4237_v41 = vmul.f32 0.3275911, %v4233_v59  ;;  %v8986_v0 = vmul.f32 0.70710677, %v8980_v22  ;;  %v4289_v38 = vsub.f32 0.0, %v4233_v59 }
 0x8b6   :  { %v4242_v20 = vadd.f32 1.0, %v4238_v19  ;;  %v4236_v23 = vand.u32 2147483647, %v8983_v13  ;;  %v4294_v11 = vmul.f32 %v4290_v26, %v4234_v28  ;;  %vm4228_vm11 = vcmp.ge.f32.partialorder %v8983_v13, 0.0 }
 0x8b7   :  { %v4241_v21 = vadd.f32 1.0, %v4237_v41  ;;  %v4235_v24 = vand.u32 2147483647, %v8986_v0  ;;  %v4293_v53 = vmul.f32 %v4289_v38, %v4233_v59  ;;  %vm4227_vm12 = vcmp.ge.f32.partialorder %v8986_v0, 0.0 }
 0x8b8   :  { %7408 = vrcp.f32 %v4242_v20  ;;  %v4240_v57 = vmul.f32 0.3275911, %v4236_v23  ;;  %v4292_v47 = vsub.f32 0.0, %v4236_v23  ;;  %v4299_v34 = vmul.f32 1.442695, %v4294_v11 }
 0x8b9   :  { %7410 = vrcp.f32 %v4241_v21  ;;  %v4239_v44 = vmul.f32 0.3275911, %v4235_v24  ;;  %v4291_v15 = vsub.f32 0.0, %v4235_v24  ;;  %v4297_v49 = vmul.f32 1.442695, %v4293_v53 }
 0x8ba   :  { %v4244_v25 = vadd.f32 1.0, %v4240_v57  ;;  %v4296_v7 = vmul.f32 %v4292_v47, %v4236_v23  ;;  %v4220_v0 = vmul.f32 0.5, %v8978_v18 }
 0x8bb   :  { %v4243_v27 = vadd.f32 1.0, %v4239_v44  ;;  %v4295_v54 = vmul.f32 %v4291_v15, %v4235_v24 }
 0x8bc   :  { %7412 = vrcp.f32 %v4244_v25  ;;  %v4303_v31 = vmul.f32 1.442695, %v4296_v7 }
 0x8bd   :  { %7414 = vrcp.f32 %v4243_v27  ;;  %v4301_v5 = vmul.f32 1.442695, %v4295_v54 }
 0x8be   :  { %7416 = vpow2.f32 %v4299_v34 }
 0x8bf   :  { %7418 = vpow2.f32 %v4297_v49 }
 0x8c0   :  { %7420 = vpow2.f32 %v4303_v31 }
 0x8c1   :  { %7422 = vpow2.f32 %v4301_v5  ;;  %v4439_v5 = vld [vmem:[%s9146_s7 + $0x8] sm:$0xff] }
 0x8c2   :  { %v7409_v1 = vpop.eup %7408 }
 0x8c3   :  { %v7411_v42 = vpop.eup %7410  ;;  %v4254_v58 = vmul.f32 1.0614054, %v7409_v1 }
 0x8c4   :  { %v4253_v32 = vmul.f32 1.0614054, %v7411_v42 }
 0x8c5   :  { %v4258_v2 = vadd.f32 -1.4531521, %v4254_v58  ;;  %v4230_v58 = vsel %vm4226_vm9, 1.0, %v7547_v62 }
 0x8c6   :  { %v4257_v12 = vadd.f32 -1.4531521, %v4253_v32  ;;  %v7413_v9 = vpop.eup %7412 }
 0x8c7   :  { %v4262_v43 = vmul.f32 %v7409_v1, %v4258_v2  ;;  %v4256_v29 = vmul.f32 1.0614054, %v7413_v9  ;;  %v7415_v39 = vpop.eup %7414 }
 0x8c8   :  { %v4261_v3 = vmul.f32 %v7411_v42, %v4257_v12  ;;  %v4255_v61 = vmul.f32 1.0614054, %v7415_v39  ;;  %v7417_v21 = vpop.eup %7416 }
 0x8c9   :  { %v4266_v46 = vadd.f32 1.4214138, %v4262_v43  ;;  %v4260_v4 = vadd.f32 -1.4531521, %v4256_v29  ;;  %v7419_v24 = vpop.eup %7418  ;;  %v4217_v43 = vmul.f32 0.5, %v8971_v37 }
 0x8ca   :  { %v4265_v52 = vadd.f32 1.4214138, %v4261_v3  ;;  %v4259_v14 = vadd.f32 -1.4531521, %v4255_v61  ;;  %v4218_v3 = vmul.f32 0.5, %v8966_v60  ;;  %v4219_v60 = vmul.f32 0.5, %v8980_v22 }
 0x8cb   :  { %v4270_v30 = vmul.f32 %v7409_v1, %v4266_v46  ;;  %v4264_v45 = vmul.f32 %v7413_v9, %v4260_v4 }
 0x8cc   :  { %v4269_v56 = vmul.f32 %v7411_v42, %v4265_v52  ;;  %v4263_v6 = vmul.f32 %v7415_v39, %v4259_v14 }
 0x8cd   :  { %v4274_v50 = vadd.f32 -0.28449672, %v4270_v30  ;;  %v4268_v8 = vadd.f32 1.4214138, %v4264_v45 }
 0x8ce   :  { %v4273_v63 = vadd.f32 -0.28449672, %v4269_v56  ;;  %v4267_v28 = vadd.f32 1.4214138, %v4263_v6  ;;  %v4438_v56 = vld [vmem:[%s9146_s7] sm:$0xff]  ;;  %v4441_v6 = vld [vmem:[%s9146_s7 + $0x18] sm:$0xff] }
 0x8cf   :  { %v4278_v36 = vmul.f32 %v7409_v1, %v4274_v50  ;;  %v4272_v16 = vmul.f32 %v7413_v9, %v4268_v8  ;;  %v4539_v8 = vld [vmem:[%s9145_s6] sm:$0xff] }
 0x8d0   :  { %v4277_v33 = vmul.f32 %v7411_v42, %v4273_v63  ;;  %v4271_v20 = vmul.f32 %v7415_v39, %v4267_v28 }
 0x8d1   :  { %v4282_v51 = vadd.f32 0.2548296, %v4278_v36  ;;  %v4276_v19 = vadd.f32 -0.28449672, %v4272_v16  ;;  %v4440_v36 = vld [vmem:[%s9146_s7 + $0x10] sm:$0xff] }
 0x8d2   :  { %v4281_v59 = vadd.f32 0.2548296, %v4277_v33  ;;  %v4275_v44 = vadd.f32 -0.28449672, %v4271_v20 }
 0x8d3   :  { %v4286_v41 = vmul.f32 %v7409_v1, %v4282_v51  ;;  %v4280_v57 = vmul.f32 %v7413_v9, %v4276_v19  ;;  %v7421_v1 = vpop.eup %7420 }
 0x8d4   :  { %v4285_v23 = vmul.f32 %v7411_v42, %v4281_v59  ;;  %v4279_v11 = vmul.f32 %v7415_v39, %v4275_v44  ;;  %v4229_v42 = vsel %vm4225_vm10, 1.0, %v7547_v62  ;;  %v7423_v40 = vpop.eup %7422 }
 0x8d5   :  { %v4306_v25 = vmul.f32 %v7417_v21, %v4286_v41  ;;  %v4284_v27 = vadd.f32 0.2548296, %v4280_v57 }
 0x8d6   :  { %v4305_v26 = vmul.f32 %v7419_v24, %v4285_v23  ;;  %v4283_v2 = vadd.f32 0.2548296, %v4279_v11 }
 0x8d7   :  { %v4310_v38 = vsub.f32 1.0, %v4306_v25  ;;  %v4288_v47 = vmul.f32 %v7413_v9, %v4284_v27  ;;  %v4232_v9 = vsel %vm4228_vm11, 1.0, %v7547_v62 }
 0x8d8   :  { %v4309_v53 = vsub.f32 1.0, %v4305_v26  ;;  %v4287_v15 = vmul.f32 %v7415_v39, %v4283_v2  ;;  %v4231_v39 = vsel %vm4227_vm12, 1.0, %v7547_v62 }
 0x8d9   :  { %v4314_v32 = vmul.f32 %v4310_v38, %v4230_v58  ;;  %v4308_v17 = vmul.f32 %v7421_v1, %v4288_v47 }
 0x8da   :  { %v4313_v34 = vmul.f32 %v4309_v53, %v4229_v42  ;;  %v4307_v29 = vmul.f32 %v7423_v40, %v4287_v15 }
 0x8db   :  { %v4318_v12 = vadd.f32 1.0, %v4314_v32  ;;  %v4312_v7 = vsub.f32 1.0, %v4308_v17 }
 0x8dc   :  { %v4317_v49 = vadd.f32 1.0, %v4313_v34  ;;  %v4311_v13 = vsub.f32 1.0, %v4307_v29 }
 0x8dd   :  { %v4316_v52 = vmul.f32 %v4312_v7, %v4232_v9  ;;  %v9001_v4 = vmul.f32 %v4318_v12, %v4218_v3 }
 0x8de   :  { %v8999_v46 = vmul.f32 %v4317_v49, %v4217_v43  ;;  %v4315_v37 = vmul.f32 %v4311_v13, %v4231_v39 }
 0x8df   :  { %v4320_v54 = vadd.f32 1.0, %v4316_v52 }
 0x8e0   :  { %6414 = vmatprep.mubr.f32.mxu0 %v8999_v46  ;;  %v4319_v30 = vadd.f32 1.0, %v4315_v37 }
 0x8e1   :  { %6415 = vmatmul.mubr.f32.vlgmr.msra.gmra.mrb[52].mxu0 %v9001_v4  ;;  %v9010_v61 = vmul.f32 %v4320_v54, %v4220_v0 }
 0x8e2   :  { %v9008_v31 = vmul.f32 %v4319_v30, %v4219_v60 }
 0x8e4   :  { %6417 = vmatprep.mubr.f32.mxu0 %v9008_v31 }
 0x8e5   :  { %6418 = vmatmul.mubr.f32.gmra.mrb[54].mxu0 %v9010_v61 }
 0x8e6   :  { %6428 = vmatprep.mubr.msk.f32.mxu0 %vm889_vm0, %v4438_v56 }
 0x9b4   :  { %v6416_v45 = vpop.f32.mrb[52].mxu0 }
 0x9b5   :  { %v4419_v50 = vpop.f32.mrb[53].mxu0 }
 0x9b6   :  { %v7246_v22 = vpack.c.bf16 %v6416_v45, %v4419_v50 }
 0x9b8   :  { %7247 = vmatprep.subr.bf16.mxu0 %v7246_v22  ;;  %v6419_v18 = vpop.f32.mrb[54].mxu0 }
 0x9b9   :  { %7249 = vmatpush3.bf16.msra.mxu0 %v7246_v22  ;;  %v4429_v14 = vpop.f32.mrb[55].mxu0 }
 0x9ba   :  { %v7250_v63 = vpack.c.bf16 %v6419_v18, %v4429_v14 }
 0x9bc   :  { %7251 = vmatprep.subr.bf16.mxu0 %v7250_v63 }
 0x9bd   :  { %7253 = vmatpush3.bf16.msra.mxu0 %v7250_v63 }
 0x9be   :  { %6434 = vmatprep.subr.mxu0 %v4539_v8 }
 0x9c0   :  { %6429 = vmatmul.mubr.msk.f32.vlgmr.msra.gmra.mrb[56].mxu0 %vm889_vm0, %v4439_v5 }
 0x9c1   :  { %6431 = vmatprep.mubr.msk.f32.mxu0 %vm889_vm0, %v4440_v36  ;;  %6435 = vmatpush3.msra.mxu0 %v4539_v8 }
 0x9c4   :  { %6432 = vmatmul.mubr.msk.f32.gmra.mrb[58].mxu0 %vm889_vm0, %v4441_v6 }
 0xa93   :  { %v6430_v33 = vpop.f32.mrb[56].mxu0 }
 0xa94   :  { %v4520_v16 = vpop.f32.mrb[57].mxu0 }
 0xa95   :  { %6436 = vmatprep.mubr.msk.f32.mxu0 %vm4540_vm13, %v4520_v16 }
 0xa96   :  { %6437 = vmatmul.mubr.msk.f32.vlgmr.msra.gmra.mrb[60].mxu0 %vm4540_vm13, %v6430_v33 }
 0xa97   :  { %v6433_v51 = vpop.f32.mrb[58].mxu0 }
 0xa98   :  { %v4530_v28 = vpop.f32.mrb[59].mxu0 }
 0xa99   :  { %6439 = vmatprep.mubr.msk.f32.mxu0 %vm4540_vm13, %v4530_v28 }
 0xa9a   :  { %6440 = vmatmul.mubr.msk.f32.gmra.mrb[62].mxu0 %vm4540_vm13, %v6433_v51 }
 0xb69   :  { %v6438_v59 = vpop.f32.mrb[60].mxu0 }
 0xb6a   :  { %v9033_v19 = vmul.f32 0.00390625, %v6438_v59  ;;  %v4619_v41 = vpop.f32.mrb[61].mxu0 }
 0xb6b   :  { %v9035_v20 = vmul.f32 0.00390625, %v4619_v41 }
 0xb6c   :  { %v9038_v21 = vmul.f32 0.70710677, %v9033_v19 }
 0xb6d   :  { %v9041_v23 = vmul.f32 0.70710677, %v9035_v20  ;;  %v6441_v57 = vpop.f32.mrb[62].mxu0 }
 0xb6e   :  { %v4659_v24 = vand.u32 2147483647, %v9038_v21  ;;  %v9044_v25 = vmul.f32 0.00390625, %v6441_v57  ;;  %v4629_v44 = vpop.f32.mrb[63].mxu0  ;;  %vm4651_vm14 = vcmp.ge.f32.partialorder %v9038_v21, 0.0 }
 0xb6f   :  { %v4658_v26 = vand.u32 2147483647, %v9041_v23  ;;  %v9047_v27 = vmul.f32 0.00390625, %v4629_v44  ;;  %vm4650_vm15 = vcmp.ge.f32.partialorder %v9041_v23, 0.0 }
 0xb70   :  { %v4663_v38 = vmul.f32 0.3275911, %v4659_v24  ;;  %v9050_v58 = vmul.f32 0.70710677, %v9044_v25  ;;  %v4715_v12 = vsub.f32 0.0, %v4659_v24 }
 0xb71   :  { %v4662_v11 = vmul.f32 0.3275911, %v4658_v26  ;;  %v9053_v47 = vmul.f32 0.70710677, %v9047_v27  ;;  %v4714_v40 = vsub.f32 0.0, %v4658_v26 }
 0xb72   :  { %v4667_v53 = vadd.f32 1.0, %v4663_v38  ;;  %v4661_v32 = vand.u32 2147483647, %v9050_v58  ;;  %v4719_v49 = vmul.f32 %v4715_v12, %v4659_v24  ;;  %vm4653_vm0 = vcmp.ge.f32.partialorder %v9050_v58, 0.0 }
 0xb73   :  { %v4666_v1 = vadd.f32 1.0, %v4662_v11  ;;  %v4660_v2 = vand.u32 2147483647, %v9053_v47  ;;  %v4718_v9 = vmul.f32 %v4714_v40, %v4658_v26  ;;  %vm4652_vm1 = vcmp.ge.f32.partialorder %v9053_v47, 0.0 }
 0xb74   :  { %7424 = vrcp.f32 %v4667_v53  ;;  %v4665_v42 = vmul.f32 0.3275911, %v4661_v32  ;;  %v4717_v29 = vsub.f32 0.0, %v4661_v32  ;;  %v4724_v39 = vmul.f32 1.442695, %v4719_v49 }
 0xb75   :  { %7426 = vrcp.f32 %v4666_v1  ;;  %v4664_v17 = vmul.f32 0.3275911, %v4660_v2  ;;  %v4716_v54 = vsub.f32 0.0, %v4660_v2  ;;  %v4722_v0 = vmul.f32 1.442695, %v4718_v9 }
 0xb76   :  { %v4669_v34 = vadd.f32 1.0, %v4665_v42  ;;  %v4721_v56 = vmul.f32 %v4717_v29, %v4661_v32  ;;  %v4656_v47 = vsel %vm4652_vm1, 1.0, %v7547_v62 }
 0xb77   :  { %v4668_v15 = vadd.f32 1.0, %v4664_v17  ;;  %v4720_v8 = vmul.f32 %v4716_v54, %v4660_v2 }
 0xb78   :  { %7428 = vrcp.f32 %v4669_v34  ;;  %v4728_v36 = vmul.f32 1.442695, %v4721_v56 }
 0xb79   :  { %7430 = vrcp.f32 %v4668_v15  ;;  %v4726_v57 = vmul.f32 1.442695, %v4720_v8  ;;  %v4642_v8 = vmul.f32 0.5, %v9035_v20 }
 0xb7a   :  { %7432 = vpow2.f32 %v4724_v39 }
 0xb7b   :  { %7434 = vpow2.f32 %v4722_v0  ;;  %v9389_v0 = vld [vmem:[#allocation156_spill] sm:$0xff] }
 0xb7c   :  { %7436 = vpow2.f32 %v4728_v36  ;;  %v4330_v21 = vmul.f32 %v9001_v4, %v9389_v0 }
 0xb7d   :  { %7438 = vpow2.f32 %v4726_v57 }
 0xb7e   :  { %v7425_v43 = vpop.eup %7424  ;;  %v4334_v58 = vadd.f32 %v4330_v21, %v8675_v10 }
 0xb7f   :  { %v7427_v7 = vpop.eup %7426  ;;  %v4679_v3 = vmul.f32 1.0614054, %v7425_v43 }
 0xb80   :  { %v4678_v52 = vmul.f32 1.0614054, %v7427_v7 }
 0xb81   :  { %v4683_v13 = vadd.f32 -1.4531521, %v4679_v3 }
 0xb82   :  { %v4682_v37 = vadd.f32 -1.4531521, %v4678_v52  ;;  %v7429_v60 = vpop.eup %7428 }
 0xb83   :  { %v4687_v30 = vmul.f32 %v7425_v43, %v4683_v13  ;;  %v4681_v50 = vmul.f32 1.0614054, %v7429_v60  ;;  %v7431_v18 = vpop.eup %7430  ;;  %v4655_v13 = vsel %vm4651_vm14, 1.0, %v7547_v62 }
 0xb84   :  { %v4686_v45 = vmul.f32 %v7427_v7, %v4682_v37  ;;  %v4680_v6 = vmul.f32 1.0614054, %v7431_v18  ;;  %v7433_v34 = vpop.eup %7432 }
 0xb85   :  { %v4691_v22 = vadd.f32 1.4214138, %v4687_v30  ;;  %v4685_v63 = vadd.f32 -1.4531521, %v4681_v50  ;;  %v7435_v15 = vpop.eup %7434 }
 0xb86   :  { %v4690_v14 = vadd.f32 1.4214138, %v4686_v45  ;;  %v4684_v28 = vadd.f32 -1.4531521, %v4680_v6  ;;  %v9390_v45 = vld [vmem:[#allocation154_spill] sm:$0xff] }
 0xb87   :  { %v4695_v5 = vmul.f32 %v7425_v43, %v4691_v22  ;;  %v4689_v16 = vmul.f32 %v7429_v60, %v4685_v63  ;;  %v4329_v50 = vmul.f32 %v8999_v46, %v9390_v45  ;;  %v4643_v22 = vmul.f32 0.5, %v9033_v19  ;;  %v9391_v19 = vld [vmem:[#allocation160_spill] sm:$0xff] }
 0xb88   :  { %v4694_v33 = vmul.f32 %v7427_v7, %v4690_v14  ;;  %v4688_v44 = vmul.f32 %v7431_v18, %v4684_v28  ;;  %v9392_v28 = vld [vmem:[#allocation157_spill] sm:$0xff] }
 0xb89   :  { %v4699_v51 = vadd.f32 -0.28449672, %v4695_v5  ;;  %v4693_v41 = vadd.f32 1.4214138, %v4689_v16  ;;  %v4333_v46 = vadd.f32 %v4329_v50, %v8678_v55 }
 0xb8a   :  { %v4698_v59 = vadd.f32 -0.28449672, %v4694_v33  ;;  %v4692_v53 = vadd.f32 1.4214138, %v4688_v44  ;;  %v4657_v33 = vsel %vm4653_vm0, 1.0, %v7547_v62 }
 0xb8b   :  { %v4703_v24 = vmul.f32 %v7425_v43, %v4699_v51  ;;  %v4697_v38 = vmul.f32 %v7429_v60, %v4693_v41  ;;  %v9393_v41 = vld [vmem:[#allocation155_spill] sm:$0xff] }
 0xb8c   :  { %v4702_v26 = vmul.f32 %v7427_v7, %v4698_v59  ;;  %v4696_v2 = vmul.f32 %v7431_v18, %v4692_v53  ;;  %v9394_v53 = vld [vmem:[#allocation158_spill] sm:$0xff] }
 0xb8d   :  { %v4707_v11 = vadd.f32 0.2548296, %v4703_v24  ;;  %v4701_v32 = vadd.f32 -0.28449672, %v4697_v38  ;;  %v4645_v24 = vmul.f32 0.5, %v9044_v25  ;;  %v4331_v55 = vmul.f32 %v9008_v31, %v9394_v53 }
 0xb8e   :  { %v4706_v1 = vadd.f32 0.2548296, %v4702_v26  ;;  %v4700_v49 = vadd.f32 -0.28449672, %v4696_v2 }
 0xb8f   :  { %v4711_v42 = vmul.f32 %v7425_v43, %v4707_v11  ;;  %v4705_v12 = vmul.f32 %v7429_v60, %v4701_v32  ;;  %v7437_v43 = vpop.eup %7436  ;;  %v4335_v25 = vadd.f32 %v4331_v55, %v8687_v35 }
 0xb90   :  { %v4710_v17 = vmul.f32 %v7427_v7, %v4706_v1  ;;  %v4704_v52 = vmul.f32 %v7431_v18, %v4700_v49  ;;  %v4654_v7 = vsel %vm4650_vm15, 1.0, %v7547_v62  ;;  %v4644_v1 = vmul.f32 0.5, %v9047_v27  ;;  %v9398_v49 = vld [vmem:[#allocation120_spill] sm:$0xff] }
 0xb91   :  { %v4731_v40 = vmul.f32 %v7433_v34, %v4711_v42  ;;  %v4709_v9 = vadd.f32 0.2548296, %v4705_v12  ;;  %v9395_v42 = vld [vmem:[#allocation161_spill] sm:$0xff]  ;;  %v9396_v12 = vld [vmem:[#allocation159_spill] sm:$0xff] }
 0xb92   :  { %v4730_v3 = vmul.f32 %v7435_v15, %v4710_v17  ;;  %v4708_v30 = vadd.f32 0.2548296, %v4704_v52 }
 0xb93   :  { %v4735_v29 = vsub.f32 1.0, %v4731_v40  ;;  %v4713_v37 = vmul.f32 %v7429_v60, %v4709_v9  ;;  %v7439_v60 = vpop.eup %7438  ;;  %v9397_v40 = vld [vmem:[#allocation118_spill] sm:$0xff] }
 0xb94   :  { %v4734_v39 = vsub.f32 1.0, %v4730_v3  ;;  %v4712_v63 = vmul.f32 %v7431_v18, %v4708_v30  ;;  %v4332_v18 = vmul.f32 %v9010_v61, %v9391_v19  ;;  %v7254_v3 = vpack.c.bf16 %v9398_v49, %v9397_v40  ;;  %v9399_v9 = vld [vmem:[#allocation122_spill] sm:$0xff] }
 0xb95   :  { %v4739_v54 = vmul.f32 %v4735_v29, %v4655_v13  ;;  %v4733_v23 = vmul.f32 %v7437_v43, %v4713_v37  ;;  %v9400_v29 = vld [vmem:[#allocation124_spill] sm:$0xff] }
 0xb96   :  { %v4738_v56 = vmul.f32 %v4734_v39, %v4654_v7  ;;  %v4732_v4 = vmul.f32 %v7439_v60, %v4712_v63  ;;  %v4336_v32 = vadd.f32 %v4332_v18, %v8683_v48  ;;  %v7258_v31 = vpack.c.bf16 %v9400_v29, %v9399_v9 }
 0xb97   :  { %v4743_v14 = vadd.f32 1.0, %v4739_v54  ;;  %v4737_v36 = vsub.f32 1.0, %v4733_v23 }
 0xb98   :  { %v4742_v5 = vadd.f32 1.0, %v4738_v56  ;;  %v4736_v20 = vsub.f32 1.0, %v4732_v4 }
 0xb99   :  { %v4747_v6 = vmul.f32 %v4743_v14, %v4643_v22  ;;  %v4741_v51 = vmul.f32 %v4737_v36, %v4657_v33 }
 0xb9a   :  { %v4746_v16 = vmul.f32 %v4742_v5, %v4642_v8  ;;  %v4740_v38 = vmul.f32 %v4736_v20, %v4656_v47 }
 0xb9b   :  { %v4755_v59 = vmul.f32 %v4747_v6, %v9392_v28  ;;  %v4745_v44 = vadd.f32 1.0, %v4741_v51 }
 0xb9c   :  { %v4754_v57 = vmul.f32 %v4746_v16, %v9393_v41  ;;  %v4744_v61 = vadd.f32 1.0, %v4740_v38 }
 0xb9d   :  { %v4759_v26 = vadd.f32 %v4755_v59, %v4334_v58  ;;  %v4749_v11 = vmul.f32 %v4745_v44, %v4645_v24 }
 0xb9e   :  { %v4758_v10 = vadd.f32 %v4754_v57, %v4333_v46  ;;  %v4748_v34 = vmul.f32 %v4744_v61, %v4644_v1 }
 0xb9f   :  { %v4757_v2 = vmul.f32 %v4749_v11, %v9395_v42 }
 0xba0   :  { %v4756_v62 = vmul.f32 %v4748_v34, %v9396_v12  ;;  %6474 = vmatprep.mubr.f32.mxu0 %v4758_v10 }
 0xba1   :  { %v4761_v17 = vadd.f32 %v4757_v2, %v4336_v32 }
 0xba2   :  { %v4760_v15 = vadd.f32 %v4756_v62, %v4335_v25 }
 0xba3   :  { %7536 = dma.done.wait [#allocation6 + $0x2], 4096 }
 0xba4   :  { %7537 = vsyncadd [#allocation6 + $0x2], 4294963200  ;;  %7255 = vmatprep.subr.bf16.mxu0 %v7254_v3  ;;  %v9401_v48 = vld [vmem:[#allocation126_spill] sm:$0xff]  ;;  %v9402_v27 = vld [vmem:[#allocation128_spill] sm:$0xff] }
 0xba5   :  { %7257 = vmatpush3.bf16.msra.mxu0 %v7254_v3  ;;  %v7262_v52 = vpack.c.bf16 %v9402_v27, %v9401_v48  ;;  %v9403_v35 = vld [vmem:[#allocation130_spill] sm:$0xff]  ;;  %v9404_v13 = vld [vmem:[#allocation132_spill] sm:$0xff]  ;;  %v9413_v14 = vld [vmem:[#allocation119_spill] sm:$0xff] }
 0xba6   :  { %7259 = vmatprep.subr.bf16.mxu0 %v7258_v31  ;;  %v7266_v39 = vpack.c.bf16 %v9404_v13, %v9403_v35  ;;  %v9405_v37 = vld [vmem:[#allocation134_spill] sm:$0xff]  ;;  %v9406_v43 = vld [vmem:[#allocation136_spill] sm:$0xff]  ;;  %v9414_v63 = vld [vmem:[#allocation121_spill] sm:$0xff] }
 0xba7   :  { %v7270_v54 = vpack.c.bf16 %v9406_v43, %v9405_v37  ;;  %v9407_v7 = vld [vmem:[#allocation138_spill] sm:$0xff]  ;;  %v9408_v30 = vld [vmem:[#allocation140_spill] sm:$0xff]  ;;  %v7286_v60 = vpack.c.bf16 %v9414_v63, %v9413_v14  ;;  %v9415_v8 = vld [vmem:[#allocation123_spill] sm:$0xff] }
 0xba8   :  { %v7274_v0 = vpack.c.bf16 %v9408_v30, %v9407_v7  ;;  %v9409_v21 = vld [vmem:[#allocation142_spill] sm:$0xff]  ;;  %v9410_v56 = vld [vmem:[#allocation144_spill] sm:$0xff]  ;;  %v9416_v5 = vld [vmem:[#allocation125_spill] sm:$0xff] }
 0xba9   :  { %7261 = vmatpush3.bf16.msra.mxu0 %v7258_v31  ;;  %v7278_v23 = vpack.c.bf16 %v9410_v56, %v9409_v21  ;;  %v9411_v45 = vld [vmem:[#allocation146_spill] sm:$0xff]  ;;  %v9412_v50 = vld [vmem:[#allocation148_spill] sm:$0xff]  ;;  %v7290_v36 = vpack.c.bf16 %v9416_v5, %v9415_v8  ;;  %v9417_v6 = vld [vmem:[#allocation127_spill] sm:$0xff] }
 0xbaa   :  { %7263 = vmatprep.subr.bf16.mxu0 %v7262_v52  ;;  %v7282_v22 = vpack.c.bf16 %v9412_v50, %v9411_v45  ;;  %v9418_v33 = vld [vmem:[#allocation129_spill] sm:$0xff]  ;;  %v9419_v58 = vld [vmem:[#allocation131_spill] sm:$0xff]  ;;  %v9429_v1 = vld [vmem:[#allocation150_spill] sm:$0xff] }
 0xbab   :  { %v7294_v4 = vpack.c.bf16 %v9418_v33, %v9417_v6  ;;  %v9420_v16 = vld [vmem:[#allocation133_spill] sm:$0xff]  ;;  %v9421_v46 = vld [vmem:[#allocation135_spill] sm:$0xff]  ;;  %v9431_v12 = vld [vmem:[#allocation152_spill] sm:$0xff] }
 0xbac   :  { %v7298_v51 = vpack.c.bf16 %v9420_v16, %v9419_v58  ;;  %v9422_v19 = vld [vmem:[#allocation137_spill] sm:$0xff]  ;;  %v9423_v28 = vld [vmem:[#allocation139_spill] sm:$0xff] }
 0xbad   :  { %7265 = vmatpush3.bf16.msra.mxu0 %v7262_v52  ;;  %v7302_v18 = vpack.c.bf16 %v9422_v19, %v9421_v46  ;;  %v9424_v59 = vld [vmem:[#allocation141_spill] sm:$0xff]  ;;  %v9425_v41 = vld [vmem:[#allocation143_spill] sm:$0xff] }
 0xbae   :  { %7267 = vmatprep.subr.bf16.mxu0 %v7266_v39  ;;  %v7306_v20 = vpack.c.bf16 %v9424_v59, %v9423_v28  ;;  %v9426_v57 = vld [vmem:[#allocation145_spill] sm:$0xff]  ;;  %v9427_v44 = vld [vmem:[#allocation147_spill] sm:$0xff] }
 0xbaf   :  { %v7310_v24 = vpack.c.bf16 %v9426_v57, %v9425_v41  ;;  %v9428_v47 = vld [vmem:[#allocation149_spill] sm:$0xff]  ;;  %v5104_v38 = vld [vmem:[%s9147_s8] ss:$0 sm:$0xff]  ;;  %v5105_v49 = vld [vmem:[%s9147_s8 + $0x1] ss:$0 sm:$0xff] }
 0xbb0   :  { %v9430_v42 = vld [vmem:[#allocation151_spill] sm:$0xff] }
 0xbb1   :  { %7269 = vmatpush3.bf16.msra.mxu0 %v7266_v39 }
 0xbb2   :  { %7271 = vmatprep.subr.bf16.mxu0 %v7270_v54 }
 0xbb5   :  { %7273 = vmatpush3.bf16.msra.mxu0 %v7270_v54 }
 0xbb6   :  { %7275 = vmatprep.subr.bf16.mxu0 %v7274_v0 }
 0xbb9   :  { %7277 = vmatpush3.bf16.msra.mxu0 %v7274_v0 }
 0xbba   :  { %7279 = vmatprep.subr.bf16.mxu0 %v7278_v23 }
 0xbbd   :  { %7281 = vmatpush3.bf16.msra.mxu0 %v7278_v23 }
 0xbbe   :  { %7283 = vmatprep.subr.bf16.mxu0 %v7282_v22 }
 0xbc1   :  { %7285 = vmatpush3.bf16.msra.mxu0 %v7282_v22 }
 0xbc2   :  { %7287 = vmatprep.subr.bf16.mxu0 %v7286_v60 }
 0xbc4   :  { %6475 = vmatmul.mubr.f32.vlgmr.msra.gmra.mrb[64].mxu0 %v4759_v26  ;;  %v7314_v26 = vpack.c.bf16 %v9428_v47, %v9427_v44 }
 0xbc5   :  { %6477 = vmatprep.mubr.f32.mxu0 %v4760_v15  ;;  %7289 = vmatpush3.bf16.msra.mxu0 %v7286_v60  ;;  %v9432_v15 = vld [vmem:[#allocation153_spill] sm:$0xff] }
 0xbc6   :  { %7291 = vmatprep.subr.bf16.mxu0 %v7290_v36 }
 0xbc8   :  { %6478 = vmatmul.mubr.f32.gmra.mrb[66].mxu0 %v4761_v17 }
 0xbc9   :  { %7293 = vmatpush3.bf16.msra.mxu0 %v7290_v36 }
 0xbca   :  { %7295 = vmatprep.subr.bf16.mxu0 %v7294_v4 }
 0xbcd   :  { %7297 = vmatpush3.bf16.msra.mxu0 %v7294_v4 }
 0xbce   :  { %7299 = vmatprep.subr.bf16.mxu0 %v7298_v51 }
 0xbd1   :  { %7301 = vmatpush3.bf16.msra.mxu0 %v7298_v51 }
 0xbd2   :  { %7303 = vmatprep.subr.bf16.mxu0 %v7302_v18 }
 0xbd5   :  { %7305 = vmatpush3.bf16.msra.mxu0 %v7302_v18 }
 0xbd6   :  { %7307 = vmatprep.subr.bf16.mxu0 %v7306_v20 }
 0xbd9   :  { %7309 = vmatpush3.bf16.msra.mxu0 %v7306_v20 }
 0xbda   :  { %7311 = vmatprep.subr.bf16.mxu0 %v7310_v24 }
 0xbdd   :  { %7313 = vmatpush3.bf16.msra.mxu0 %v7310_v24 }
 0xbde   :  { %7315 = vmatprep.subr.bf16.mxu0 %v7314_v26 }
 0xbe1   :  { %7317 = vmatpush3.bf16.msra.mxu0 %v7314_v26 }
 0xc97   :  { %v6476_v10 = vpop.f32.mrb[64].mxu0 }
 0xc98   :  { %v4861_v11 = vadd.f32 %v6476_v10, %v5104_v38  ;;  %v4855_v53 = vpop.f32.mrb[65].mxu0 }
 0xc99   :  { %v4856_v55 = vadd.f32 %v5104_v38, %v4855_v53 }
 0xc9a   :  { %v4879_v2 = vmul.f32 %v4861_v11, %v9430_v42 }
 0xc9b   :  { %v4878_v61 = vmul.f32 %v4856_v55, %v9429_v1  ;;  %v6479_v32 = vpop.f32.mrb[66].mxu0 }
 0xc9c   :  { %v4871_v34 = vadd.f32 %v6479_v32, %v5104_v38  ;;  %v4865_v17 = vpop.f32.mrb[67].mxu0 }
 0xc9d   :  { %v4866_v25 = vadd.f32 %v5104_v38, %v4865_v17  ;;  %6512 = vmatprep.mubr.f32.mxu0 %v4878_v61 }
 0xc9e   :  { %6513 = vmatmul.mubr.f32.vlgmr.msra.gmra.mrb[68].mxu0 %v4879_v2  ;;  %v4881_v40 = vmul.f32 %v4871_v34, %v9432_v15 }
 0xc9f   :  { %v4880_v62 = vmul.f32 %v4866_v25, %v9431_v12 }
 0xca1   :  { %6515 = vmatprep.mubr.f32.mxu0 %v4880_v62 }
 0xca2   :  { %6516 = vmatmul.mubr.f32.gmra.mrb[70].mxu0 %v4881_v40 }
 0xd71   :  { %v6514_v3 = vpop.f32.mrb[68].mxu0 }
 0xd72   :  { %v4977_v9 = vadd.f32 %v6514_v3, %v5105_v49  ;;  %v4971_v29 = vpop.f32.mrb[69].mxu0 }
 0xd73   :  { %v4972_v31 = vadd.f32 %v5105_v49, %v4971_v29 }
 0xd74   :  { %4991 = vst [vmem:[%s9151_s12 + $0x8] sm:$0xff] %v4977_v9 }
 0xd75   :  { %4990 = vst [vmem:[%s9151_s12] sm:$0xff] %v4972_v31  ;;  %v6517_v48 = vpop.f32.mrb[70].mxu0 }
 0xd76   :  { %v4987_v27 = vadd.f32 %v6517_v48, %v5105_v49  ;;  %v4981_v52 = vpop.f32.mrb[71].mxu0 }
 0xd77   :  { %v4982_v35 = vadd.f32 %v5105_v49, %v4981_v52 }
 0xd78   :  { %4993 = vst [vmem:[%s9151_s12 + $0x18] sm:$0xff] %v4987_v27 }
 0xd79   :  { %4992 = vst [vmem:[%s9151_s12 + $0x10] sm:$0xff] %v4982_v35 }
 0xd7a   :  { %4998 = vsyncpa [#allocation8], 1 }
 0xd7b   :  { %4999 = vsyncpa [#allocation10], 1 }
 0xd7c   :  { %5000 = vsyncmov [#allocation6] }
 0xd7f   :  { %s5001_s0 = vpop.sfrf %5000 }
 0xd80   :  { %p5106_p4 = scmp.ne.s32.totalorder %s5001_s0, 0 }
 0xd82   :  { %5005 = shalt.err (%p5106_p4)  }
 0xd83   :  { %5007 = vsyncmov [#allocation6 + $0x1] }
 0xd86   :  { %s5008_s25 = vpop.sfrf %5007 }
 0xd87   :  { %p5107_p5 = scmp.ne.s32.totalorder %s5008_s25, 0 }
 0xd89   :  { %5012 = shalt.err (%p5107_p5)  }
 0xd8a   :  { %5014 = vsyncmov [#allocation6 + $0x2] }
 0xd8d   :  { %s5015_s2 = vpop.sfrf %5014 }
 0xd8e   :  { %p5108_p6 = scmp.ne.s32.totalorder %s5015_s2, 0 }
 0xd90   :  { %5019 = shalt.err (%p5108_p6)  }

</bundles_post_ra>
